<compile_context>
chip_gen: v7x
topology: tpu7x:2x2x1
jax: 0.10.0
libtpu: 0.0.40
codegen_flags: <defaults>
</compile_context>

<pallas_src>
import numpy as np

import jax
import jax.numpy as jnp
from jax import lax
from jax.experimental import pallas as pl
from jax.experimental.pallas import tpu as pltpu

NB = 8           # images per grid step (multiple of 8 keeps slices sublane-aligned)
C1, C2 = 16, 32  # conv output channels
LP = 256         # conv output lane padding (>= 14*16 = 7*32 = 224)
FCP = 128        # fc output lane padding (>= 10)
K1 = 5 * 28      # conv1 matmul K: kh folded into K, horizontal pad folded into slab


def _cdiv(a, b):
    return (a + b - 1) // b


# ---------------------------------------------------------------------------
# Fused kernel
# ---------------------------------------------------------------------------
def _cnn_fused_kernel(xw1_ref, w1_ref, b1_ref, w2_ref, b2_ref, wfc_ref,
                      bfc_ref, o_ref, s_ref):
    """One grid step = NB images end to end.

    xw1_ref : (2, 14*NB, K1) bf16  conv1 row windows; dim0 = vertical pool tap
              dr; rows ordered (parity of pooled row, pooled row // 2, image).
    w1_ref  : (K1, 2*LP)     bf16  conv1 Toeplitz slab (dc tap in lane halves).
    w2_ref  : (5, LP, 2*LP)  bf16  conv2 Toeplitz slab, one K=LP tap per kh.
    wfc_ref : (7, LP, FCP)   bf16  fc weights per conv2 output row.
    b1/b2   : (1, LP) f32, bfc_ref: (1, FCP) f32  (zero in padded lanes).
    o_ref   : (NB, FCP) f32        logits (first 10 lanes are real).
    s_ref   : (2, 9*NB, LP) bf16   conv2 input scratch: parity plane x
              (vertically padded row, image) x lane.
    """
    zrow = jnp.zeros((NB, LP), s_ref.dtype)

    # ---- conv1 + ReLU + 2x2 max-pool, one row-parity plane at a time -------
    for p in range(2):
        hmax = None
        for dr in range(2):                                   # vertical pool tap
            lhs = xw1_ref[dr, p * 7 * NB:(p + 1) * 7 * NB, :]           # (7NB,K1)
            acc = jnp.dot(lhs, w1_ref[...],
                          preferred_element_type=jnp.float32)           # (7NB,2LP)
            m = jnp.maximum(acc[:, :LP], acc[:, LP:])                   # col pool
            hmax = m if hmax is None else jnp.maximum(hmax, m)          # row pool
        y1 = jnp.maximum(hmax + b1_ref[...], 0.0)                       # bias+ReLU
        s_ref[p, 0:NB, :] = zrow                                        # top v-pad
        s_ref[p, 8 * NB:9 * NB, :] = zrow                               # bottom v-pad
        s_ref[p, NB:8 * NB, :] = y1.astype(s_ref.dtype)

    # ---- conv2 + ReLU + 2x2 max-pool ----------------------------------------
    hmax = None
    for dr in range(2):
        acc = None
        for kh in range(5):
            r = dr + kh                            # padded conv2 input row tap
            lhs = s_ref[r % 2, (r // 2) * NB:(r // 2 + 7) * NB, :]      # (7NB,LP)
            t = jnp.dot(lhs, w2_ref[kh], preferred_element_type=jnp.float32)
            acc = t if acc is None else acc + t                         # (7NB,2LP)
        m = jnp.maximum(acc[:, :LP], acc[:, LP:])
        hmax = m if hmax is None else jnp.maximum(hmax, m)
    y2 = jnp.maximum(hmax + b2_ref[...], 0.0).astype(jnp.bfloat16)      # (7NB,LP)

    # ---- flatten + fc: rows of y2 are (conv2 row h, image) ordered ----------
    logits = None
    for h in range(7):
        t = jnp.dot(y2[h * NB:(h + 1) * NB, :], wfc_ref[h],
                    preferred_element_type=jnp.float32)                 # (NB,FCP)
        logits = t if logits is None else logits + t
    o_ref[...] = logits + bfc_ref[...]


def _cnn_fused_call(xw1, w1, b1, w2, b2, wfc, bfc):
    g = xw1.shape[0]
    n_pad = g * NB
    m = 7 * NB
    flops = g * 2 * (4 * m * K1 * 2 * LP + 10 * m * LP * 2 * LP
                     + 7 * NB * LP * FCP)
    bytes_accessed = (xw1.size * 2 + w1.size * 2 + w2.size * 2 + wfc.size * 2
                      + (b1.size + b2.size + bfc.size) * 4 + n_pad * FCP * 4)
    return pl.pallas_call(
        _cnn_fused_kernel,
        out_shape=jax.ShapeDtypeStruct((n_pad, FCP), jnp.float32),
        grid=(g,),
        in_specs=[
            pl.BlockSpec((None, 2, 14 * NB, K1), lambda i: (i, 0, 0, 0)),
            pl.BlockSpec((K1, 2 * LP), lambda i: (0, 0)),
            pl.BlockSpec((1, LP), lambda i: (0, 0)),
            pl.BlockSpec((5, LP, 2 * LP), lambda i: (0, 0, 0)),
            pl.BlockSpec((1, LP), lambda i: (0, 0)),
            pl.BlockSpec((7, LP, FCP), lambda i: (0, 0, 0)),
            pl.BlockSpec((1, FCP), lambda i: (0, 0)),
        ],
        out_specs=pl.BlockSpec((NB, FCP), lambda i: (i, 0)),
        scratch_shapes=[pltpu.VMEM((2, 9 * NB, LP), jnp.bfloat16)],
        compiler_params=pltpu.CompilerParams(
            dimension_semantics=("parallel",)),
        cost_estimate=pl.CostEstimate(flops=flops, transcendentals=0,
                                      bytes_accessed=bytes_accessed),
    )(xw1, w1, b1, w2, b2, wfc, bfc)


# ---------------------------------------------------------------------------
# Input window packing (tiny, input-side only glue)
# ---------------------------------------------------------------------------
# (dr, pooled-row-in-parity-order, kh) -> vertically padded input row index
_POOL_ROWS = np.concatenate([np.arange(0, 14, 2), np.arange(1, 14, 2)])
_ROW_IDX = (2 * _POOL_ROWS[None, :, None] + np.arange(2)[:, None, None]
            + np.arange(5)[None, None, :])                       # (2, 14, 5)


def _pack_conv1_windows(x_nchw, dtype=jnp.bfloat16):
    """(N, 1, 28, 28) -> (G, 2, 14*NB, K1) conv1 row windows."""
    n = x_nchw.shape[0]
    g = _cdiv(n, NB)
    x = x_nchw.reshape(n, 28, 28)
    if g * NB != n:
        x = jnp.pad(x, ((0, g * NB - n), (0, 0), (0, 0)))
    xv = jnp.pad(x, ((0, 0), (2, 2), (0, 0)))              # vertical pad only
    xw = xv[:, _ROW_IDX, :]                                 # (G*NB, 2, 14, 5, 28)
    xw = xw.reshape(g, NB, 2, 14, K1).transpose(0, 2, 3, 1, 4)
    return xw.reshape(g, 2, 14 * NB, K1).astype(dtype)


# ---------------------------------------------------------------------------
# One-time parameter repack (PyTorch layout -> kernel slabs)
# ---------------------------------------------------------------------------
def _toeplitz_pool_slab(w_oihw, w_in, lane_pad):
    """5x5 conv (pad=2) + 2x-pool Toeplitz slab.

    Returns (k, w_in*cin, 2*lane_pad) f32 with
      slab[kh, j*cin+ci, dc*lane_pad + wo*cout + co] = w[co, ci, kh, kw],
      kw = j + 2 - 2*wo - dc (zero outside [0, k)).  Horizontal zero padding
    is folded in (out-of-range columns never contribute); the horizontal pool
    tap dc lives in the lane halves.
    """
    cout, cin, k, _ = w_oihw.shape
    wo_n = w_in // 2
    j = jnp.arange(w_in)[:, None, None]
    wo = jnp.arange(wo_n)[None, :, None]
    dc = jnp.arange(2)[None, None, :]
    kw = j + 2 - 2 * wo - dc                                  # (w_in, wo_n, 2)
    valid = (kw >= 0) & (kw < k)
    kwc = jnp.clip(kw, 0, k - 1)
    wt = jnp.transpose(w_oihw, (2, 1, 0, 3))                  # (kh, cin, cout, kw)
    g = wt[:, :, :, kwc]                                      # (kh,cin,cout,w_in,wo,2)
    g = jnp.where(valid[None, None, None], g, 0.0)
    m = jnp.transpose(g, (0, 3, 1, 5, 4, 2))                  # (kh,w_in,cin,2,wo,cout)
    m = m.reshape(k, w_in * cin, 2, wo_n * cout)
    m = jnp.pad(m, ((0, 0), (0, 0), (0, 0), (0, lane_pad - wo_n * cout)))
    return m.reshape(k, w_in * cin, 2 * lane_pad)


def _tile_bias(b, rep, pad_to):
    bt = jnp.tile(b.astype(jnp.float32), rep)
    return jnp.pad(bt, (0, pad_to - bt.shape[0])).reshape(1, pad_to)


def prepare_params(params, compute_dtype=jnp.bfloat16):
    # conv1: fold kh into K (K = 5*28 = 140), Cin = 1.
    s1 = _toeplitz_pool_slab(params["conv1_w"], 28, LP)       # (5, 28, 512)
    w1 = s1.reshape(K1, 2 * LP)
    # conv2: keep kh as 5 taps; K = 14*16 = 224, padded to LP = 256.
    s2 = _toeplitz_pool_slab(params["conv2_w"], 14, LP)       # (5, 224, 512)
    w2 = jnp.pad(s2, ((0, 0), (0, LP - 14 * C1), (0, 0)))     # (5, 256, 512)
    # fc: NCHW-flatten (c*49 + h*7 + w) -> per-row (h) slabs over (w*32 + c).
    f = params["fc_w"].reshape(10, C2, 7, 7).transpose(2, 3, 1, 0)   # (h,w,c,o)
    f = f.reshape(7, 7 * C2, 10)
    wfc = jnp.pad(f, ((0, 0), (0, LP - 7 * C2), (0, FCP - 10)))
    return {
        "w1": w1.astype(compute_dtype),
        "b1": _tile_bias(params["conv1_b"], 14, LP),
        "w2": w2.astype(compute_dtype),
        "b2": _tile_bias(params["conv2_b"], 7, LP),
        "wfc": wfc.astype(compute_dtype),
        "bfc": jnp.pad(params["fc_b"].astype(jnp.float32),
                       (0, FCP - 10)).reshape(1, FCP),
    }


@jax.jit
def cnn_forward(x_nchw, kp):
    assert x_nchw.shape[1:] == (1, 28, 28), x_nchw.shape
    n = x_nchw.shape[0]
    xw1 = _pack_conv1_windows(x_nchw)
    out = _cnn_fused_call(xw1, kp["w1"], kp["b1"], kp["w2"], kp["b2"],
                          kp["wfc"], kp["bfc"])
    return out[:n, :10]


# ---------------------------------------------------------------------------
# Parameters + independent reference (same bf16-operand / f32-accum contract)
# ---------------------------------------------------------------------------
def init_params(key):
    ks = jax.random.split(key, 6)

    def unif(k, shape, fan_in):
        bound = 1.0 / jnp.sqrt(jnp.float32(fan_in))
        return jax.random.uniform(k, shape, jnp.float32, -bound, bound)

    return {
        "conv1_w": unif(ks[0], (16, 1, 5, 5), 1 * 25),
        "conv1_b": unif(ks[1], (16,), 1 * 25),
        "conv2_w": unif(ks[2], (32, 16, 5, 5), 16 * 25),
        "conv2_b": unif(ks[3], (32,), 16 * 25),
        "fc_w":    unif(ks[4], (10, 32 * 7 * 7), 32 * 7 * 7),
        "fc_b":    unif(ks[5], (10,), 32 * 7 * 7),
    }


def cnn_reference(x, p):
    cdt = jnp.bfloat16

    def conv(x, w, b):
        y = lax.conv_general_dilated(
            x.astype(cdt), w.astype(cdt), (1, 1), ((2, 2), (2, 2)),
            dimension_numbers=("NCHW", "OIHW", "NCHW"),
            preferred_element_type=jnp.float32)
        return jax.nn.relu(y + b[None, :, None, None])

    def pool(x):
        return lax.reduce_window(x, -jnp.inf, lax.max,
                                 (1, 1, 2, 2), (1, 1, 2, 2), "VALID")

    y = pool(conv(x, p["conv1_w"], p["conv1_b"])).astype(cdt)
    y = pool(conv(y, p["conv2_w"], p["conv2_b"])).astype(cdt)
    flat = y.reshape(y.shape[0], -1)
    return (jnp.dot(flat, p["fc_w"].T.astype(cdt),
                    preferred_element_type=jnp.float32) + p["fc_b"])


if __name__ == "__main__":
    key = jax.random.PRNGKey(0)
    kx, kp = jax.random.split(key)
    params = init_params(kp)
    kparams = prepare_params(params)            # one-time weight repack

    # Batch 2: exercises the N -> NB=8 padding path (single grid step).
    x = jax.random.normal(kx, (2, 1, 28, 28), jnp.float32)
    out = jax.block_until_ready(cnn_forward(x, kparams))
    ref = cnn_reference(x, params)
    assert out.shape == (2, 10), out.shape
    assert bool(jnp.all(jnp.isfinite(out)))
    assert bool(jnp.allclose(out, ref, atol=2e-2, rtol=2e-2)), (
        f"max abs diff {float(jnp.abs(out - ref).max())}")

    # Batch 18: exercises a multi-step grid (G=3) plus the remainder images.
    x2 = jax.random.normal(jax.random.PRNGKey(1), (18, 1, 28, 28), jnp.float32)
    out2 = jax.block_until_ready(cnn_forward(x2, kparams))
    ref2 = cnn_reference(x2, params)
    assert out2.shape == (18, 10), out2.shape
    assert bool(jnp.allclose(out2, ref2, atol=2e-2, rtol=2e-2)), (
        f"max abs diff {float(jnp.abs(out2 - ref2).max())}")

    print("KERNEL_OK")
</pallas_src>

<mosaic_0001>
module attributes {stable_mosaic.version = 11 : i64} {
  func.func @_cnn_fused_kernel(%arg0: i32, %arg1: memref<1x2x112x140xbf16, #tpu.memory_space<vmem>>, %arg2: memref<140x512xbf16, #tpu.memory_space<vmem>>, %arg3: memref<1x256xf32, #tpu.memory_space<vmem>>, %arg4: memref<5x256x512xbf16, #tpu.memory_space<vmem>>, %arg5: memref<1x256xf32, #tpu.memory_space<vmem>>, %arg6: memref<7x256x128xbf16, #tpu.memory_space<vmem>>, %arg7: memref<1x128xf32, #tpu.memory_space<vmem>>, %arg8: memref<8x128xf32, #tpu.memory_space<vmem>>, %arg9: memref<2x72x256xbf16, #tpu.memory_space<vmem>>) attributes {dimension_semantics = [#tpu.dimension_semantics<parallel>], iteration_bounds = array<i64: 1>, scalar_prefetch = 0 : i64, scratch_operands = 1 : i64, tpu.core_type = #tpu.core_type<tc>, window_params = [{transform_indices = @transform_0, window_bounds = array<i64: 1, 2, 112, 140>}, {pipeline_mode = #tpu.pipeline_mode<synchronous>, transform_indices = @transform_1, window_bounds = array<i64: 140, 512>}, {pipeline_mode = #tpu.pipeline_mode<synchronous>, transform_indices = @transform_2, window_bounds = array<i64: 1, 256>}, {pipeline_mode = #tpu.pipeline_mode<synchronous>, transform_indices = @transform_3, window_bounds = array<i64: 5, 256, 512>}, {pipeline_mode = #tpu.pipeline_mode<synchronous>, transform_indices = @transform_4, window_bounds = array<i64: 1, 256>}, {pipeline_mode = #tpu.pipeline_mode<synchronous>, transform_indices = @transform_5, window_bounds = array<i64: 7, 256, 128>}, {pipeline_mode = #tpu.pipeline_mode<synchronous>, transform_indices = @transform_6, window_bounds = array<i64: 1, 128>}, {transform_indices = @transform_7, window_bounds = array<i64: 8, 128>}]} {
    %cst = arith.constant 0.000000e+00 : bf16
    %0 = vector.broadcast %cst : bf16 to vector<8x256xbf16>
    %c0 = arith.constant 0 : index
    %c0_0 = arith.constant 0 : index
    %c0_1 = arith.constant 0 : index
    %c0_2 = arith.constant 0 : index
    %1 = vector.load %arg1[%c0, %c0_0, %c0_1, %c0_2] : memref<1x2x112x140xbf16, #tpu.memory_space<vmem>>, vector<1x1x56x140xbf16>
    %2 = vector.shape_cast %1 : vector<1x1x56x140xbf16> to vector<56x140xbf16>
    %c0_3 = arith.constant 0 : index
    %c0_4 = arith.constant 0 : index
    %3 = vector.load %arg2[%c0_3, %c0_4] : memref<140x512xbf16, #tpu.memory_space<vmem>>, vector<140x512xbf16>
    %cst_5 = arith.constant dense<0.000000e+00> : vector<56x512xf32>
    %4 = tpu.matmul %2, %3, %cst_5 {dimension_numbers = #tpu.dot_dimension_numbers<[1], [0], [0], [1], [0, 0, 1, 1], [], []>} : vector<56x140xbf16>, vector<140x512xbf16>, vector<56x512xf32> -> vector<56x512xf32>
    %5 = vector.extract_strided_slice %4 {offsets = [0, 0], sizes = [56, 256], strides = [1, 1]} : vector<56x512xf32> to vector<56x256xf32>
    %6 = vector.extract_strided_slice %4 {offsets = [0, 256], sizes = [56, 256], strides = [1, 1]} : vector<56x512xf32> to vector<56x256xf32>
    %7 = arith.maximumf %5, %6 : vector<56x256xf32>
    %c0_6 = arith.constant 0 : index
    %c1 = arith.constant 1 : index
    %c0_7 = arith.constant 0 : index
    %c0_8 = arith.constant 0 : index
    %8 = vector.load %arg1[%c0_6, %c1, %c0_7, %c0_8] : memref<1x2x112x140xbf16, #tpu.memory_space<vmem>>, vector<1x1x56x140xbf16>
    %9 = vector.shape_cast %8 : vector<1x1x56x140xbf16> to vector<56x140xbf16>
    %c0_9 = arith.constant 0 : index
    %c0_10 = arith.constant 0 : index
    %10 = vector.load %arg2[%c0_9, %c0_10] : memref<140x512xbf16, #tpu.memory_space<vmem>>, vector<140x512xbf16>
    %cst_11 = arith.constant dense<0.000000e+00> : vector<56x512xf32>
    %11 = tpu.matmul %9, %10, %cst_11 {dimension_numbers = #tpu.dot_dimension_numbers<[1], [0], [0], [1], [0, 0, 1, 1], [], []>} : vector<56x140xbf16>, vector<140x512xbf16>, vector<56x512xf32> -> vector<56x512xf32>
    %12 = vector.extract_strided_slice %11 {offsets = [0, 0], sizes = [56, 256], strides = [1, 1]} : vector<56x512xf32> to vector<56x256xf32>
    %13 = vector.extract_strided_slice %11 {offsets = [0, 256], sizes = [56, 256], strides = [1, 1]} : vector<56x512xf32> to vector<56x256xf32>
    %14 = arith.maximumf %12, %13 : vector<56x256xf32>
    %15 = arith.maximumf %7, %14 : vector<56x256xf32>
    %c0_12 = arith.constant 0 : index
    %c0_13 = arith.constant 0 : index
    %16 = vector.load %arg3[%c0_12, %c0_13] : memref<1x256xf32, #tpu.memory_space<vmem>>, vector<1x256xf32>
    %17 = vector.broadcast %16 : vector<1x256xf32> to vector<56x256xf32>
    %18 = arith.addf %15, %17 : vector<56x256xf32>
    %cst_14 = arith.constant 0.000000e+00 : f32
    %19 = vector.broadcast %cst_14 : f32 to vector<56x256xf32>
    %20 = arith.maximumf %18, %19 : vector<56x256xf32>
    %c0_15 = arith.constant 0 : index
    %c0_16 = arith.constant 0 : index
    %c0_17 = arith.constant 0 : index
    %21 = vector.load %arg9[%c0_15, %c0_16, %c0_17] : memref<2x72x256xbf16, #tpu.memory_space<vmem>>, vector<1x8x256xbf16>
    %22 = vector.shape_cast %21 : vector<1x8x256xbf16> to vector<8x256xbf16>
    %23 = vector.shape_cast %0 : vector<8x256xbf16> to vector<1x8x256xbf16>
    tpu.vector_store %arg9[%c0_15, %c0_16, %c0_17], %23 {strides = array<i32>} : memref<2x72x256xbf16, #tpu.memory_space<vmem>>, vector<1x8x256xbf16>,
    %c0_18 = arith.constant 0 : index
    %c64 = arith.constant 64 : index
    %c0_19 = arith.constant 0 : index
    %24 = vector.load %arg9[%c0_18, %c64, %c0_19] : memref<2x72x256xbf16, #tpu.memory_space<vmem>>, vector<1x8x256xbf16>
    %25 = vector.shape_cast %24 : vector<1x8x256xbf16> to vector<8x256xbf16>
    %26 = vector.shape_cast %0 : vector<8x256xbf16> to vector<1x8x256xbf16>
    tpu.vector_store %arg9[%c0_18, %c64, %c0_19], %26 {strides = array<i32>} : memref<2x72x256xbf16, #tpu.memory_space<vmem>>, vector<1x8x256xbf16>,
    %27 = arith.truncf %20 : vector<56x256xf32> to vector<56x256xbf16>
    %c0_20 = arith.constant 0 : index
    %c8 = arith.constant 8 : index
    %c0_21 = arith.constant 0 : index
    %28 = vector.load %arg9[%c0_20, %c8, %c0_21] : memref<2x72x256xbf16, #tpu.memory_space<vmem>>, vector<1x56x256xbf16>
    %29 = vector.shape_cast %28 : vector<1x56x256xbf16> to vector<56x256xbf16>
    %30 = vector.shape_cast %27 : vector<56x256xbf16> to vector<1x56x256xbf16>
    tpu.vector_store %arg9[%c0_20, %c8, %c0_21], %30 {strides = array<i32>} : memref<2x72x256xbf16, #tpu.memory_space<vmem>>, vector<1x56x256xbf16>,
    %c0_22 = arith.constant 0 : index
    %c0_23 = arith.constant 0 : index
    %c56 = arith.constant 56 : index
    %c0_24 = arith.constant 0 : index
    %31 = vector.load %arg1[%c0_22, %c0_23, %c56, %c0_24] : memref<1x2x112x140xbf16, #tpu.memory_space<vmem>>, vector<1x1x56x140xbf16>
    %32 = vector.shape_cast %31 : vector<1x1x56x140xbf16> to vector<56x140xbf16>
    %c0_25 = arith.constant 0 : index
    %c0_26 = arith.constant 0 : index
    %33 = vector.load %arg2[%c0_25, %c0_26] : memref<140x512xbf16, #tpu.memory_space<vmem>>, vector<140x512xbf16>
    %cst_27 = arith.constant dense<0.000000e+00> : vector<56x512xf32>
    %34 = tpu.matmul %32, %33, %cst_27 {dimension_numbers = #tpu.dot_dimension_numbers<[1], [0], [0], [1], [0, 0, 1, 1], [], []>} : vector<56x140xbf16>, vector<140x512xbf16>, vector<56x512xf32> -> vector<56x512xf32>
    %35 = vector.extract_strided_slice %34 {offsets = [0, 0], sizes = [56, 256], strides = [1, 1]} : vector<56x512xf32> to vector<56x256xf32>
    %36 = vector.extract_strided_slice %34 {offsets = [0, 256], sizes = [56, 256], strides = [1, 1]} : vector<56x512xf32> to vector<56x256xf32>
    %37 = arith.maximumf %35, %36 : vector<56x256xf32>
    %c0_28 = arith.constant 0 : index
    %c1_29 = arith.constant 1 : index
    %c56_30 = arith.constant 56 : index
    %c0_31 = arith.constant 0 : index
    %38 = vector.load %arg1[%c0_28, %c1_29, %c56_30, %c0_31] : memref<1x2x112x140xbf16, #tpu.memory_space<vmem>>, vector<1x1x56x140xbf16>
    %39 = vector.shape_cast %38 : vector<1x1x56x140xbf16> to vector<56x140xbf16>
    %c0_32 = arith.constant 0 : index
    %c0_33 = arith.constant 0 : index
    %40 = vector.load %arg2[%c0_32, %c0_33] : memref<140x512xbf16, #tpu.memory_space<vmem>>, vector<140x512xbf16>
    %cst_34 = arith.constant dense<0.000000e+00> : vector<56x512xf32>
    %41 = tpu.matmul %39, %40, %cst_34 {dimension_numbers = #tpu.dot_dimension_numbers<[1], [0], [0], [1], [0, 0, 1, 1], [], []>} : vector<56x140xbf16>, vector<140x512xbf16>, vector<56x512xf32> -> vector<56x512xf32>
    %42 = vector.extract_strided_slice %41 {offsets = [0, 0], sizes = [56, 256], strides = [1, 1]} : vector<56x512xf32> to vector<56x256xf32>
    %43 = vector.extract_strided_slice %41 {offsets = [0, 256], sizes = [56, 256], strides = [1, 1]} : vector<56x512xf32> to vector<56x256xf32>
    %44 = arith.maximumf %42, %43 : vector<56x256xf32>
    %45 = arith.maximumf %37, %44 : vector<56x256xf32>
    %c0_35 = arith.constant 0 : index
    %c0_36 = arith.constant 0 : index
    %46 = vector.load %arg3[%c0_35, %c0_36] : memref<1x256xf32, #tpu.memory_space<vmem>>, vector<1x256xf32>
    %47 = vector.broadcast %46 : vector<1x256xf32> to vector<56x256xf32>
    %48 = arith.addf %45, %47 : vector<56x256xf32>
    %cst_37 = arith.constant 0.000000e+00 : f32
    %49 = vector.broadcast %cst_37 : f32 to vector<56x256xf32>
    %50 = arith.maximumf %48, %49 : vector<56x256xf32>
    %c1_38 = arith.constant 1 : index
    %c0_39 = arith.constant 0 : index
    %c0_40 = arith.constant 0 : index
    %51 = vector.load %arg9[%c1_38, %c0_39, %c0_40] : memref<2x72x256xbf16, #tpu.memory_space<vmem>>, vector<1x8x256xbf16>
    %52 = vector.shape_cast %51 : vector<1x8x256xbf16> to vector<8x256xbf16>
    %53 = vector.shape_cast %0 : vector<8x256xbf16> to vector<1x8x256xbf16>
    tpu.vector_store %arg9[%c1_38, %c0_39, %c0_40], %53 {strides = array<i32>} : memref<2x72x256xbf16, #tpu.memory_space<vmem>>, vector<1x8x256xbf16>,
    %c1_41 = arith.constant 1 : index
    %c64_42 = arith.constant 64 : index
    %c0_43 = arith.constant 0 : index
    %54 = vector.load %arg9[%c1_41, %c64_42, %c0_43] : memref<2x72x256xbf16, #tpu.memory_space<vmem>>, vector<1x8x256xbf16>
    %55 = vector.shape_cast %54 : vector<1x8x256xbf16> to vector<8x256xbf16>
    %56 = vector.shape_cast %0 : vector<8x256xbf16> to vector<1x8x256xbf16>
    tpu.vector_store %arg9[%c1_41, %c64_42, %c0_43], %56 {strides = array<i32>} : memref<2x72x256xbf16, #tpu.memory_space<vmem>>, vector<1x8x256xbf16>,
    %57 = arith.truncf %50 : vector<56x256xf32> to vector<56x256xbf16>
    %c1_44 = arith.constant 1 : index
    %c8_45 = arith.constant 8 : index
    %c0_46 = arith.constant 0 : index
    %58 = vector.load %arg9[%c1_44, %c8_45, %c0_46] : memref<2x72x256xbf16, #tpu.memory_space<vmem>>, vector<1x56x256xbf16>
    %59 = vector.shape_cast %58 : vector<1x56x256xbf16> to vector<56x256xbf16>
    %60 = vector.shape_cast %57 : vector<56x256xbf16> to vector<1x56x256xbf16>
    tpu.vector_store %arg9[%c1_44, %c8_45, %c0_46], %60 {strides = array<i32>} : memref<2x72x256xbf16, #tpu.memory_space<vmem>>, vector<1x56x256xbf16>,
    %c0_47 = arith.constant 0 : index
    %c0_48 = arith.constant 0 : index
    %c0_49 = arith.constant 0 : index
    %61 = vector.load %arg9[%c0_47, %c0_48, %c0_49] : memref<2x72x256xbf16, #tpu.memory_space<vmem>>, vector<1x56x256xbf16>
    %62 = vector.shape_cast %61 : vector<1x56x256xbf16> to vector<56x256xbf16>
    %c0_50 = arith.constant 0 : index
    %c0_51 = arith.constant 0 : index
    %c0_52 = arith.constant 0 : index
    %63 = vector.load %arg4[%c0_50, %c0_51, %c0_52] : memref<5x256x512xbf16, #tpu.memory_space<vmem>>, vector<1x256x512xbf16>
    %64 = vector.shape_cast %63 : vector<1x256x512xbf16> to vector<256x512xbf16>
    %cst_53 = arith.constant dense<0.000000e+00> : vector<56x512xf32>
    %65 = tpu.matmul %62, %64, %cst_53 {dimension_numbers = #tpu.dot_dimension_numbers<[1], [0], [0], [1], [0, 0, 1, 1], [], []>} : vector<56x256xbf16>, vector<256x512xbf16>, vector<56x512xf32> -> vector<56x512xf32>
    %c1_54 = arith.constant 1 : index
    %c0_55 = arith.constant 0 : index
    %c0_56 = arith.constant 0 : index
    %66 = vector.load %arg9[%c1_54, %c0_55, %c0_56] : memref<2x72x256xbf16, #tpu.memory_space<vmem>>, vector<1x56x256xbf16>
    %67 = vector.shape_cast %66 : vector<1x56x256xbf16> to vector<56x256xbf16>
    %c1_57 = arith.constant 1 : index
    %c0_58 = arith.constant 0 : index
    %c0_59 = arith.constant 0 : index
    %68 = vector.load %arg4[%c1_57, %c0_58, %c0_59] : memref<5x256x512xbf16, #tpu.memory_space<vmem>>, vector<1x256x512xbf16>
    %69 = vector.shape_cast %68 : vector<1x256x512xbf16> to vector<256x512xbf16>
    %cst_60 = arith.constant dense<0.000000e+00> : vector<56x512xf32>
    %70 = tpu.matmul %67, %69, %cst_60 {dimension_numbers = #tpu.dot_dimension_numbers<[1], [0], [0], [1], [0, 0, 1, 1], [], []>} : vector<56x256xbf16>, vector<256x512xbf16>, vector<56x512xf32> -> vector<56x512xf32>
    %71 = arith.addf %65, %70 : vector<56x512xf32>
    %c0_61 = arith.constant 0 : index
    %c8_62 = arith.constant 8 : index
    %c0_63 = arith.constant 0 : index
    %72 = vector.load %arg9[%c0_61, %c8_62, %c0_63] : memref<2x72x256xbf16, #tpu.memory_space<vmem>>, vector<1x56x256xbf16>
    %73 = vector.shape_cast %72 : vector<1x56x256xbf16> to vector<56x256xbf16>
    %c2 = arith.constant 2 : index
    %c0_64 = arith.constant 0 : index
    %c0_65 = arith.constant 0 : index
    %74 = vector.load %arg4[%c2, %c0_64, %c0_65] : memref<5x256x512xbf16, #tpu.memory_space<vmem>>, vector<1x256x512xbf16>
    %75 = vector.shape_cast %74 : vector<1x256x512xbf16> to vector<256x512xbf16>
    %cst_66 = arith.constant dense<0.000000e+00> : vector<56x512xf32>
    %76 = tpu.matmul %73, %75, %cst_66 {dimension_numbers = #tpu.dot_dimension_numbers<[1], [0], [0], [1], [0, 0, 1, 1], [], []>} : vector<56x256xbf16>, vector<256x512xbf16>, vector<56x512xf32> -> vector<56x512xf32>
    %77 = arith.addf %71, %76 : vector<56x512xf32>
    %c1_67 = arith.constant 1 : index
    %c8_68 = arith.constant 8 : index
    %c0_69 = arith.constant 0 : index
    %78 = vector.load %arg9[%c1_67, %c8_68, %c0_69] : memref<2x72x256xbf16, #tpu.memory_space<vmem>>, vector<1x56x256xbf16>
    %79 = vector.shape_cast %78 : vector<1x56x256xbf16> to vector<56x256xbf16>
    %c3 = arith.constant 3 : index
    %c0_70 = arith.constant 0 : index
    %c0_71 = arith.constant 0 : index
    %80 = vector.load %arg4[%c3, %c0_70, %c0_71] : memref<5x256x512xbf16, #tpu.memory_space<vmem>>, vector<1x256x512xbf16>
    %81 = vector.shape_cast %80 : vector<1x256x512xbf16> to vector<256x512xbf16>
    %cst_72 = arith.constant dense<0.000000e+00> : vector<56x512xf32>
    %82 = tpu.matmul %79, %81, %cst_72 {dimension_numbers = #tpu.dot_dimension_numbers<[1], [0], [0], [1], [0, 0, 1, 1], [], []>} : vector<56x256xbf16>, vector<256x512xbf16>, vector<56x512xf32> -> vector<56x512xf32>
    %83 = arith.addf %77, %82 : vector<56x512xf32>
    %c0_73 = arith.constant 0 : index
    %c16 = arith.constant 16 : index
    %c0_74 = arith.constant 0 : index
    %84 = vector.load %arg9[%c0_73, %c16, %c0_74] : memref<2x72x256xbf16, #tpu.memory_space<vmem>>, vector<1x56x256xbf16>
    %85 = vector.shape_cast %84 : vector<1x56x256xbf16> to vector<56x256xbf16>
    %c4 = arith.constant 4 : index
    %c0_75 = arith.constant 0 : index
    %c0_76 = arith.constant 0 : index
    %86 = vector.load %arg4[%c4, %c0_75, %c0_76] : memref<5x256x512xbf16, #tpu.memory_space<vmem>>, vector<1x256x512xbf16>
    %87 = vector.shape_cast %86 : vector<1x256x512xbf16> to vector<256x512xbf16>
    %cst_77 = arith.constant dense<0.000000e+00> : vector<56x512xf32>
    %88 = tpu.matmul %85, %87, %cst_77 {dimension_numbers = #tpu.dot_dimension_numbers<[1], [0], [0], [1], [0, 0, 1, 1], [], []>} : vector<56x256xbf16>, vector<256x512xbf16>, vector<56x512xf32> -> vector<56x512xf32>
    %89 = arith.addf %83, %88 : vector<56x512xf32>
    %90 = vector.extract_strided_slice %89 {offsets = [0, 0], sizes = [56, 256], strides = [1, 1]} : vector<56x512xf32> to vector<56x256xf32>
    %91 = vector.extract_strided_slice %89 {offsets = [0, 256], sizes = [56, 256], strides = [1, 1]} : vector<56x512xf32> to vector<56x256xf32>
    %92 = arith.maximumf %90, %91 : vector<56x256xf32>
    %c1_78 = arith.constant 1 : index
    %c0_79 = arith.constant 0 : index
    %c0_80 = arith.constant 0 : index
    %93 = vector.load %arg9[%c1_78, %c0_79, %c0_80] : memref<2x72x256xbf16, #tpu.memory_space<vmem>>, vector<1x56x256xbf16>
    %94 = vector.shape_cast %93 : vector<1x56x256xbf16> to vector<56x256xbf16>
    %c0_81 = arith.constant 0 : index
    %c0_82 = arith.constant 0 : index
    %c0_83 = arith.constant 0 : index
    %95 = vector.load %arg4[%c0_81, %c0_82, %c0_83] : memref<5x256x512xbf16, #tpu.memory_space<vmem>>, vector<1x256x512xbf16>
    %96 = vector.shape_cast %95 : vector<1x256x512xbf16> to vector<256x512xbf16>
    %cst_84 = arith.constant dense<0.000000e+00> : vector<56x512xf32>
    %97 = tpu.matmul %94, %96, %cst_84 {dimension_numbers = #tpu.dot_dimension_numbers<[1], [0], [0], [1], [0, 0, 1, 1], [], []>} : vector<56x256xbf16>, vector<256x512xbf16>, vector<56x512xf32> -> vector<56x512xf32>
    %c0_85 = arith.constant 0 : index
    %c8_86 = arith.constant 8 : index
    %c0_87 = arith.constant 0 : index
    %98 = vector.load %arg9[%c0_85, %c8_86, %c0_87] : memref<2x72x256xbf16, #tpu.memory_space<vmem>>, vector<1x56x256xbf16>
    %99 = vector.shape_cast %98 : vector<1x56x256xbf16> to vector<56x256xbf16>
    %c1_88 = arith.constant 1 : index
    %c0_89 = arith.constant 0 : index
    %c0_90 = arith.constant 0 : index
    %100 = vector.load %arg4[%c1_88, %c0_89, %c0_90] : memref<5x256x512xbf16, #tpu.memory_space<vmem>>, vector<1x256x512xbf16>
    %101 = vector.shape_cast %100 : vector<1x256x512xbf16> to vector<256x512xbf16>
    %cst_91 = arith.constant dense<0.000000e+00> : vector<56x512xf32>
    %102 = tpu.matmul %99, %101, %cst_91 {dimension_numbers = #tpu.dot_dimension_numbers<[1], [0], [0], [1], [0, 0, 1, 1], [], []>} : vector<56x256xbf16>, vector<256x512xbf16>, vector<56x512xf32> -> vector<56x512xf32>
    %103 = arith.addf %97, %102 : vector<56x512xf32>
    %c1_92 = arith.constant 1 : index
    %c8_93 = arith.constant 8 : index
    %c0_94 = arith.constant 0 : index
    %104 = vector.load %arg9[%c1_92, %c8_93, %c0_94] : memref<2x72x256xbf16, #tpu.memory_space<vmem>>, vector<1x56x256xbf16>
    %105 = vector.shape_cast %104 : vector<1x56x256xbf16> to vector<56x256xbf16>
    %c2_95 = arith.constant 2 : index
    %c0_96 = arith.constant 0 : index
    %c0_97 = arith.constant 0 : index
    %106 = vector.load %arg4[%c2_95, %c0_96, %c0_97] : memref<5x256x512xbf16, #tpu.memory_space<vmem>>, vector<1x256x512xbf16>
    %107 = vector.shape_cast %106 : vector<1x256x512xbf16> to vector<256x512xbf16>
    %cst_98 = arith.constant dense<0.000000e+00> : vector<56x512xf32>
    %108 = tpu.matmul %105, %107, %cst_98 {dimension_numbers = #tpu.dot_dimension_numbers<[1], [0], [0], [1], [0, 0, 1, 1], [], []>} : vector<56x256xbf16>, vector<256x512xbf16>, vector<56x512xf32> -> vector<56x512xf32>
    %109 = arith.addf %103, %108 : vector<56x512xf32>
    %c0_99 = arith.constant 0 : index
    %c16_100 = arith.constant 16 : index
    %c0_101 = arith.constant 0 : index
    %110 = vector.load %arg9[%c0_99, %c16_100, %c0_101] : memref<2x72x256xbf16, #tpu.memory_space<vmem>>, vector<1x56x256xbf16>
    %111 = vector.shape_cast %110 : vector<1x56x256xbf16> to vector<56x256xbf16>
    %c3_102 = arith.constant 3 : index
    %c0_103 = arith.constant 0 : index
    %c0_104 = arith.constant 0 : index
    %112 = vector.load %arg4[%c3_102, %c0_103, %c0_104] : memref<5x256x512xbf16, #tpu.memory_space<vmem>>, vector<1x256x512xbf16>
    %113 = vector.shape_cast %112 : vector<1x256x512xbf16> to vector<256x512xbf16>
    %cst_105 = arith.constant dense<0.000000e+00> : vector<56x512xf32>
    %114 = tpu.matmul %111, %113, %cst_105 {dimension_numbers = #tpu.dot_dimension_numbers<[1], [0], [0], [1], [0, 0, 1, 1], [], []>} : vector<56x256xbf16>, vector<256x512xbf16>, vector<56x512xf32> -> vector<56x512xf32>
    %115 = arith.addf %109, %114 : vector<56x512xf32>
    %c1_106 = arith.constant 1 : index
    %c16_107 = arith.constant 16 : index
    %c0_108 = arith.constant 0 : index
    %116 = vector.load %arg9[%c1_106, %c16_107, %c0_108] : memref<2x72x256xbf16, #tpu.memory_space<vmem>>, vector<1x56x256xbf16>
    %117 = vector.shape_cast %116 : vector<1x56x256xbf16> to vector<56x256xbf16>
    %c4_109 = arith.constant 4 : index
    %c0_110 = arith.constant 0 : index
    %c0_111 = arith.constant 0 : index
    %118 = vector.load %arg4[%c4_109, %c0_110, %c0_111] : memref<5x256x512xbf16, #tpu.memory_space<vmem>>, vector<1x256x512xbf16>
    %119 = vector.shape_cast %118 : vector<1x256x512xbf16> to vector<256x512xbf16>
    %cst_112 = arith.constant dense<0.000000e+00> : vector<56x512xf32>
    %120 = tpu.matmul %117, %119, %cst_112 {dimension_numbers = #tpu.dot_dimension_numbers<[1], [0], [0], [1], [0, 0, 1, 1], [], []>} : vector<56x256xbf16>, vector<256x512xbf16>, vector<56x512xf32> -> vector<56x512xf32>
    %121 = arith.addf %115, %120 : vector<56x512xf32>
    %122 = vector.extract_strided_slice %121 {offsets = [0, 0], sizes = [56, 256], strides = [1, 1]} : vector<56x512xf32> to vector<56x256xf32>
    %123 = vector.extract_strided_slice %121 {offsets = [0, 256], sizes = [56, 256], strides = [1, 1]} : vector<56x512xf32> to vector<56x256xf32>
    %124 = arith.maximumf %122, %123 : vector<56x256xf32>
    %125 = arith.maximumf %92, %124 : vector<56x256xf32>
    %c0_113 = arith.constant 0 : index
    %c0_114 = arith.constant 0 : index
    %126 = vector.load %arg5[%c0_113, %c0_114] : memref<1x256xf32, #tpu.memory_space<vmem>>, vector<1x256xf32>
    %127 = vector.broadcast %126 : vector<1x256xf32> to vector<56x256xf32>
    %128 = arith.addf %125, %127 : vector<56x256xf32>
    %cst_115 = arith.constant 0.000000e+00 : f32
    %129 = vector.broadcast %cst_115 : f32 to vector<56x256xf32>
    %130 = arith.maximumf %128, %129 : vector<56x256xf32>
    %131 = arith.truncf %130 : vector<56x256xf32> to vector<56x256xbf16>
    %132 = vector.extract_strided_slice %131 {offsets = [0, 0], sizes = [8, 256], strides = [1, 1]} : vector<56x256xbf16> to vector<8x256xbf16>
    %c0_116 = arith.constant 0 : index
    %c0_117 = arith.constant 0 : index
    %c0_118 = arith.constant 0 : index
    %133 = vector.load %arg6[%c0_116, %c0_117, %c0_118] : memref<7x256x128xbf16, #tpu.memory_space<vmem>>, vector<1x256x128xbf16>
    %134 = vector.shape_cast %133 : vector<1x256x128xbf16> to vector<256x128xbf16>
    %cst_119 = arith.constant dense<0.000000e+00> : vector<8x128xf32>
    %135 = tpu.matmul %132, %134, %cst_119 {dimension_numbers = #tpu.dot_dimension_numbers<[1], [0], [0], [1], [0, 0, 1, 1], [], []>} : vector<8x256xbf16>, vector<256x128xbf16>, vector<8x128xf32> -> vector<8x128xf32>
    %136 = vector.extract_strided_slice %131 {offsets = [8, 0], sizes = [8, 256], strides = [1, 1]} : vector<56x256xbf16> to vector<8x256xbf16>
    %c1_120 = arith.constant 1 : index
    %c0_121 = arith.constant 0 : index
    %c0_122 = arith.constant 0 : index
    %137 = vector.load %arg6[%c1_120, %c0_121, %c0_122] : memref<7x256x128xbf16, #tpu.memory_space<vmem>>, vector<1x256x128xbf16>
    %138 = vector.shape_cast %137 : vector<1x256x128xbf16> to vector<256x128xbf16>
    %cst_123 = arith.constant dense<0.000000e+00> : vector<8x128xf32>
    %139 = tpu.matmul %136, %138, %cst_123 {dimension_numbers = #tpu.dot_dimension_numbers<[1], [0], [0], [1], [0, 0, 1, 1], [], []>} : vector<8x256xbf16>, vector<256x128xbf16>, vector<8x128xf32> -> vector<8x128xf32>
    %140 = arith.addf %135, %139 : vector<8x128xf32>
    %141 = vector.extract_strided_slice %131 {offsets = [16, 0], sizes = [8, 256], strides = [1, 1]} : vector<56x256xbf16> to vector<8x256xbf16>
    %c2_124 = arith.constant 2 : index
    %c0_125 = arith.constant 0 : index
    %c0_126 = arith.constant 0 : index
    %142 = vector.load %arg6[%c2_124, %c0_125, %c0_126] : memref<7x256x128xbf16, #tpu.memory_space<vmem>>, vector<1x256x128xbf16>
    %143 = vector.shape_cast %142 : vector<1x256x128xbf16> to vector<256x128xbf16>
    %cst_127 = arith.constant dense<0.000000e+00> : vector<8x128xf32>
    %144 = tpu.matmul %141, %143, %cst_127 {dimension_numbers = #tpu.dot_dimension_numbers<[1], [0], [0], [1], [0, 0, 1, 1], [], []>} : vector<8x256xbf16>, vector<256x128xbf16>, vector<8x128xf32> -> vector<8x128xf32>
    %145 = arith.addf %140, %144 : vector<8x128xf32>
    %146 = vector.extract_strided_slice %131 {offsets = [24, 0], sizes = [8, 256], strides = [1, 1]} : vector<56x256xbf16> to vector<8x256xbf16>
    %c3_128 = arith.constant 3 : index
    %c0_129 = arith.constant 0 : index
    %c0_130 = arith.constant 0 : index
    %147 = vector.load %arg6[%c3_128, %c0_129, %c0_130] : memref<7x256x128xbf16, #tpu.memory_space<vmem>>, vector<1x256x128xbf16>
    %148 = vector.shape_cast %147 : vector<1x256x128xbf16> to vector<256x128xbf16>
    %cst_131 = arith.constant dense<0.000000e+00> : vector<8x128xf32>
    %149 = tpu.matmul %146, %148, %cst_131 {dimension_numbers = #tpu.dot_dimension_numbers<[1], [0], [0], [1], [0, 0, 1, 1], [], []>} : vector<8x256xbf16>, vector<256x128xbf16>, vector<8x128xf32> -> vector<8x128xf32>
    %150 = arith.addf %145, %149 : vector<8x128xf32>
    %151 = vector.extract_strided_slice %131 {offsets = [32, 0], sizes = [8, 256], strides = [1, 1]} : vector<56x256xbf16> to vector<8x256xbf16>
    %c4_132 = arith.constant 4 : index
    %c0_133 = arith.constant 0 : index
    %c0_134 = arith.constant 0 : index
    %152 = vector.load %arg6[%c4_132, %c0_133, %c0_134] : memref<7x256x128xbf16, #tpu.memory_space<vmem>>, vector<1x256x128xbf16>
    %153 = vector.shape_cast %152 : vector<1x256x128xbf16> to vector<256x128xbf16>
    %cst_135 = arith.constant dense<0.000000e+00> : vector<8x128xf32>
    %154 = tpu.matmul %151, %153, %cst_135 {dimension_numbers = #tpu.dot_dimension_numbers<[1], [0], [0], [1], [0, 0, 1, 1], [], []>} : vector<8x256xbf16>, vector<256x128xbf16>, vector<8x128xf32> -> vector<8x128xf32>
    %155 = arith.addf %150, %154 : vector<8x128xf32>
    %156 = vector.extract_strided_slice %131 {offsets = [40, 0], sizes = [8, 256], strides = [1, 1]} : vector<56x256xbf16> to vector<8x256xbf16>
    %c5 = arith.constant 5 : index
    %c0_136 = arith.constant 0 : index
    %c0_137 = arith.constant 0 : index
    %157 = vector.load %arg6[%c5, %c0_136, %c0_137] : memref<7x256x128xbf16, #tpu.memory_space<vmem>>, vector<1x256x128xbf16>
    %158 = vector.shape_cast %157 : vector<1x256x128xbf16> to vector<256x128xbf16>
    %cst_138 = arith.constant dense<0.000000e+00> : vector<8x128xf32>
    %159 = tpu.matmul %156, %158, %cst_138 {dimension_numbers = #tpu.dot_dimension_numbers<[1], [0], [0], [1], [0, 0, 1, 1], [], []>} : vector<8x256xbf16>, vector<256x128xbf16>, vector<8x128xf32> -> vector<8x128xf32>
    %160 = arith.addf %155, %159 : vector<8x128xf32>
    %161 = vector.extract_strided_slice %131 {offsets = [48, 0], sizes = [8, 256], strides = [1, 1]} : vector<56x256xbf16> to vector<8x256xbf16>
    %c6 = arith.constant 6 : index
    %c0_139 = arith.constant 0 : index
    %c0_140 = arith.constant 0 : index
    %162 = vector.load %arg6[%c6, %c0_139, %c0_140] : memref<7x256x128xbf16, #tpu.memory_space<vmem>>, vector<1x256x128xbf16>
    %163 = vector.shape_cast %162 : vector<1x256x128xbf16> to vector<256x128xbf16>
    %cst_141 = arith.constant dense<0.000000e+00> : vector<8x128xf32>
    %164 = tpu.matmul %161, %163, %cst_141 {dimension_numbers = #tpu.dot_dimension_numbers<[1], [0], [0], [1], [0, 0, 1, 1], [], []>} : vector<8x256xbf16>, vector<256x128xbf16>, vector<8x128xf32> -> vector<8x128xf32>
    %165 = arith.addf %160, %164 : vector<8x128xf32>
    %c0_142 = arith.constant 0 : index
    %c0_143 = arith.constant 0 : index
    %166 = vector.load %arg7[%c0_142, %c0_143] : memref<1x128xf32, #tpu.memory_space<vmem>>, vector<1x128xf32>
    %167 = vector.broadcast %166 : vector<1x128xf32> to vector<8x128xf32>
    %168 = arith.addf %165, %167 : vector<8x128xf32>
    %c0_144 = arith.constant 0 : index
    %c0_145 = arith.constant 0 : index
    %169 = vector.load %arg8[%c0_144, %c0_145] : memref<8x128xf32, #tpu.memory_space<vmem>>, vector<8x128xf32>
    tpu.vector_store %arg8[%c0_144, %c0_145], %168 {strides = array<i32>} : memref<8x128xf32, #tpu.memory_space<vmem>>, vector<8x128xf32>,
    return
  }
  func.func @transform_0(%arg0: i32) -> (i32, i32, i32, i32) {
    %c0_i32 = arith.constant 0 : i32
    %c0_i32_0 = arith.constant 0 : i32
    %c0_i32_1 = arith.constant 0 : i32
    %c0_i32_2 = arith.constant 0 : i32
    return %arg0, %c0_i32, %c0_i32_0, %c0_i32_1 : i32, i32, i32, i32
  }
  func.func @transform_1(%arg0: i32) -> (i32, i32) {
    %c0_i32 = arith.constant 0 : i32
    %c0_i32_0 = arith.constant 0 : i32
    %c0_i32_1 = arith.constant 0 : i32
    return %c0_i32, %c0_i32_0 : i32, i32
  }
  func.func @transform_2(%arg0: i32) -> (i32, i32) {
    %c0_i32 = arith.constant 0 : i32
    %c0_i32_0 = arith.constant 0 : i32
    %c0_i32_1 = arith.constant 0 : i32
    return %c0_i32, %c0_i32_0 : i32, i32
  }
  func.func @transform_3(%arg0: i32) -> (i32, i32, i32) {
    %c0_i32 = arith.constant 0 : i32
    %c0_i32_0 = arith.constant 0 : i32
    %c0_i32_1 = arith.constant 0 : i32
    %c0_i32_2 = arith.constant 0 : i32
    return %c0_i32, %c0_i32_0, %c0_i32_1 : i32, i32, i32
  }
  func.func @transform_4(%arg0: i32) -> (i32, i32) {
    %c0_i32 = arith.constant 0 : i32
    %c0_i32_0 = arith.constant 0 : i32
    %c0_i32_1 = arith.constant 0 : i32
    return %c0_i32, %c0_i32_0 : i32, i32
  }
  func.func @transform_5(%arg0: i32) -> (i32, i32, i32) {
    %c0_i32 = arith.constant 0 : i32
    %c0_i32_0 = arith.constant 0 : i32
    %c0_i32_1 = arith.constant 0 : i32
    %c0_i32_2 = arith.constant 0 : i32
    return %c0_i32, %c0_i32_0, %c0_i32_1 : i32, i32, i32
  }
  func.func @transform_6(%arg0: i32) -> (i32, i32) {
    %c0_i32 = arith.constant 0 : i32
    %c0_i32_0 = arith.constant 0 : i32
    %c0_i32_1 = arith.constant 0 : i32
    return %c0_i32, %c0_i32_0 : i32, i32
  }
  func.func @transform_7(%arg0: i32) -> (i32, i32) {
    %c0_i32 = arith.constant 0 : i32
    %c0_i32_0 = arith.constant 0 : i32
    return %arg0, %c0_i32 : i32, i32
  }
}

</mosaic_0001>

<bundles_post_ra>
// kernel: cnn_forward.1
= control target key start
LH: loop header
LB: loop body
LE: loop exit
PB: predicated region body
PF: predicated region fallthrough
CT: control target
= control target key end

     0   :  { %vm279_vm0 = vcmask 97280   ;;  %vm292_vm1 = vcmask 1045504   ;;  %s12649_s1 = inlined_call_operand.vmem [shape: bf16[140,512], index: 1, kind: input, shape index: {}]   ;;  %s12650_s0 = inlined_call_operand.vmem [shape: bf16[1,2,112,140], index: 0, kind: input, shape index: {}]   ;;  %s12651_s3 = inlined_call_operand.vmem [shape: bf16[5,256,512], index: 3, kind: input, shape index: {}]   ;;  %s12652_s2 = inlined_call_operand.vmem [shape: f32[1,256], index: 2, kind: input, shape index: {}]   ;;  %s12653_s5 = inlined_call_operand.vmem [shape: bf16[7,256,128], index: 5, kind: input, shape index: {}]   ;;  %s12654_s4 = inlined_call_operand.vmem [shape: f32[1,256], index: 4, kind: input, shape index: {}]   ;;  %s12655_s6 = inlined_call_operand.vmem [shape: f32[1,128], index: 6, kind: input, shape index: {}]   ;;  %s12656_s7 = inlined_call_operand.vmem [shape: f32[8,128], index: 7, kind: output, shape index: {}]  }
   0x1   :  { %v9223_v0 = vld [vmem:[%s12649_s1 + $0x4] ss:$16 sps:$4 sm:$0xff]   ;;  %v9228_v1 = vld [vmem:[%s12649_s1 + $0xc] ss:$16 sps:$4 sm:$0xff]   ;;  %v9234_v2 = vld [vmem:[%s12649_s1] ss:$16 sps:$4 sm:$0xff]  }
   0x2   :  { %305 = vmatprep.subr.bf16.mxu0 %v9223_v0  ;;  %v9239_v3 = vld [vmem:[%s12649_s1 + $0x8] ss:$16 sps:$4 sm:$0xff]   ;;  %376 = vmatprep.subr.bf16.mxu1 %v9228_v1  ;;  %v9245_v4 = vld [vmem:[%s12649_s1 + $0x24] ss:$16 sps:$4 sm:$0xff]   ;;  %v9252_v5 = vld [vmem:[%s12649_s1 + $0x2c] ss:$16 sps:$4 sm:$0xff]  }
   0x3   :  { %306 = vmatpush1.bf16.msra.mxu0 %v9234_v2  ;;  %377 = vmatpush1.bf16.msra.mxu1 %v9239_v3  ;;  %v9257_v6 = vld [vmem:[%s12649_s1 + $0x20] ss:$16 sps:$4 sm:$0xff]   ;;  %v9263_v7 = vld [vmem:[%s12649_s1 + $0x28] ss:$16 sps:$4 sm:$0xff]   ;;  %v9269_v8 = vld [vmem:[%s12649_s1 + $0x44] ss:$16 sps:$4 sm:$0xff]  }
   0x4   :  { %307 = vmatprep.subr.bf16.mxu0 %v9245_v4  ;;  %378 = vmatprep.subr.bf16.mxu1 %v9252_v5  ;;  %v9274_v9 = vld [vmem:[%s12649_s1 + $0x4c] ss:$16 sps:$4 sm:$0xff]   ;;  %v9279_v10 = vld [vmem:[%s12649_s1 + $0x40] ss:$16 sps:$4 sm:$0xff]   ;;  %v9284_v11 = vld [vmem:[%s12649_s1 + $0x48] ss:$16 sps:$4 sm:$0xff]  }
   0x5   :  { %v9291_v12 = vld [vmem:[%s12649_s1 + $0x64] ss:$16 sps:$4 sm:$0xff]   ;;  %v9298_v13 = vld [vmem:[%s12649_s1 + $0x6c] ss:$16 sps:$4 sm:$0xff]   ;;  %v9303_v14 = vld [vmem:[%s12649_s1 + $0x60] ss:$16 sps:$4 sm:$0xff]  }
   0x6   :  { %v9310_v15 = vld [vmem:[%s12649_s1 + $0x68] ss:$16 sps:$4 sm:$0xff]   ;;  %v9315_v16 = vld [vmem:[%s12649_s1 + $0x84] ss:$16 sps:$4 sm:$0xff]   ;;  %v9322_v17 = vld [vmem:[%s12649_s1 + $0x8c] ss:$16 sps:$4 sm:$0xff]  }
   0x7   :  { %308 = vmatpush1.bf16.msra.mxu0 %v9257_v6  ;;  %379 = vmatpush1.bf16.msra.mxu1 %v9263_v7  ;;  %v9327_v18 = vld [vmem:[%s12649_s1 + $0x80] ss:$16 sps:$4 sm:$0xff]   ;;  %v9332_v19 = vld [vmem:[%s12649_s1 + $0x88] ss:$16 sps:$4 sm:$0xff]   ;;  %v9339_v20 = vld [vmem:[%s12649_s1 + $0xa4] ss:$16 sps:$4 sm:$0xff]  }
   0x8   :  { %309 = vmatprep.subr.bf16.mxu0 %v9269_v8  ;;  %380 = vmatprep.subr.bf16.mxu1 %v9274_v9  ;;  %v9346_v21 = vld [vmem:[%s12649_s1 + $0xac] ss:$16 sps:$4 sm:$0xff]   ;;  %v9353_v22 = vld [vmem:[%s12649_s1 + $0xa0] ss:$16 sps:$4 sm:$0xff]   ;;  %v9358_v23 = vld [vmem:[%s12649_s1 + $0xa8] ss:$16 sps:$4 sm:$0xff]  }
   0x9   :  { %v9365_v24 = vld [vmem:[%s12649_s1 + $0xc4] ss:$16 sps:$4 sm:$0xff]   ;;  %v9370_v25 = vld [vmem:[%s12649_s1 + $0xcc] ss:$16 sps:$4 sm:$0xff]   ;;  %v9375_v26 = vld [vmem:[%s12649_s1 + $0xc0] ss:$16 sps:$4 sm:$0xff]  }
   0xa   :  { %v9380_v27 = vld [vmem:[%s12649_s1 + $0xc8] ss:$16 sps:$4 sm:$0xff]   ;;  %v9385_v28 = vld [vmem:[%s12649_s1 + $0xe4] ss:$16 sps:$4 sm:$0xff]   ;;  %v9390_v29 = vld [vmem:[%s12649_s1 + $0xec] ss:$16 sps:$4 sm:$0xff]  }
   0xb   :  { %310 = vmatpush1.bf16.msra.mxu0 %v9279_v10  ;;  %381 = vmatpush1.bf16.msra.mxu1 %v9284_v11  ;;  %v8221_v30 = vld [vmem:[%s12650_s0 + $0x4] ss:$8 sps:$4 sm:$0xff]   ;;  %v68_v32 = vld [vmem:[%s12649_s1 + $0x110] sm:$0x33]  ;;  %v69_v34 = vld [vmem:[%s12649_s1 + $0x118] sm:$0x33] }
   0xc   :  { %311 = vmatprep.subr.bf16.mxu0 %v9291_v12  ;;  %382 = vmatprep.subr.bf16.mxu1 %v9298_v13  ;;  %v9400_v31 = vld [vmem:[%s12649_s1 + $0x100] sm:$0xff]  ;;  %v9410_v33 = vld [vmem:[%s12649_s1 + $0x108] sm:$0xff]  ;;  %v9442_v41 = vld [vmem:[%s12649_s1 + $0x110] sm:$0x33] }
   0xd   :  { %6654 = vmatprep.mubr.msk.bf16.mxu0 %vm279_vm0, %v8221_v30  ;;  %6659 = vmatprep.mubr.msk.bf16.mxu1 %vm279_vm0, %v8221_v30  ;;  %v9420_v35 = vld [vmem:[%s12649_s1 + $0xe0] ss:$16 sps:$4 sm:$0xff]   ;;  %v9427_v36 = vld [vmem:[%s12649_s1 + $0xe8] ss:$16 sps:$4 sm:$0xff]   ;;  %v6649_v37 = vcombine.low %v9400_v31, %v68_v32  ;;  %v9433_v38 = vcombine.high %v9400_v31, %v68_v32  ;;  %v9436_v39 = vcombine.high %v9410_v33, %v69_v34  ;;  %v8222_v50 = vld [vmem:[%s12650_s0 + $0x14] ss:$8 sps:$4 sm:$0xff]  }
   0xe   :  { %v6651_v40 = vcombine.low %v9410_v33, %v69_v34  ;;  %v9447_v42 = vld [vmem:[%s12649_s1 + $0x118] sm:$0x33]  ;;  %v9456_v44 = vcombine.high %v9400_v31, %v9442_v41  ;;  %v6735_v47 = vcombine.low %v9400_v31, %v9442_v41  ;;  %v8219_v49 = vld [vmem:[%s12650_s0] ss:$8 sps:$4 sm:$0xff]   ;;  %v8225_v52 = vld [vmem:[%s12650_s0 + $0x24] ss:$8 sps:$4 sm:$0xff]  }
   0xf   :  { %312 = vmatpush1.bf16.msra.mxu0 %v9303_v14  ;;  %383 = vmatpush1.bf16.msra.mxu1 %v9310_v15  ;;  %v9452_v43 = vsel %vm292_vm1, %v6649_v37, 0  ;;  %v9467_v46 = vcombine.high %v9410_v33, %v9447_v42  ;;  %v6737_v48 = vcombine.low %v9410_v33, %v9447_v42  ;;  %v8224_v51 = vld [vmem:[%s12650_s0 + $0x10] ss:$8 sps:$4 sm:$0xff]   ;;  %v8227_v53 = vld [vmem:[%s12650_s0 + $0x20] ss:$8 sps:$4 sm:$0xff]  }
  0x10   :  { %313 = vmatprep.subr.bf16.mxu0 %v9315_v16  ;;  %384 = vmatprep.subr.bf16.mxu1 %v9322_v17  ;;  %v9463_v45 = vsel %vm292_vm1, %v6651_v40, 0  ;;  %v33_v54 = vld [vmem:[%s12650_s0 + $0x30] sm:$0xff]  ;;  %v8233_v59 = vld [vmem:[%s12650_s0 + $0x84] ss:$8 sps:$4 sm:$0xff]   ;;  %v8235_v60 = vld [vmem:[%s12650_s0 + $0x80] ss:$8 sps:$4 sm:$0xff]  }
  0x11   :  { %v6616_v55 = vcombine.high %v33_v54, %v33_v54  ;;  %v6615_v56 = vcombine.low %v33_v54, %v33_v54  ;;  %v8232_v57 = vld [vmem:[%s12650_s0 + $0x74] ss:$8 sps:$4 sm:$0xff]   ;;  %v8230_v58 = vld [vmem:[%s12650_s0 + $0x70] ss:$8 sps:$4 sm:$0xff]   ;;  %v6669_v63 = vld [vmem:[%s12650_s0 + $0xa0] sm:$0xff]  ;;  %v9611_v37 = vsel %vm292_vm1, %v6735_v47, 0 }
  0x12   :  { %v8236_v61 = vld [vmem:[%s12650_s0 + $0x94] ss:$8 sps:$4 sm:$0xff]   ;;  %v8238_v62 = vld [vmem:[%s12650_s0 + $0x90] ss:$8 sps:$4 sm:$0xff]   ;;  %v6677_v30 = vcombine.high %v6669_v63, %v6669_v63  ;;  %v6676_v32 = vcombine.low %v6669_v63, %v6669_v63 }
  0x13   :  { %314 = vmatpush1.bf16.msra.mxu0 %v9327_v18  ;;  %385 = vmatpush1.bf16.msra.mxu1 %v9332_v19  ;;  %v8247_v34 = vld [vmem:[%s12650_s0 + $0x3c] ss:$8 sps:$4 sm:$0xff]   ;;  %v8248_v31 = vld [vmem:[%s12650_s0 + $0x4c] ss:$8 sps:$4 sm:$0xff]   ;;  %v8288_v33 = vld [vmem:[%s12651_s3 + $0x268] ss:$16 sps:$4 sm:$0xff]  }
  0x14   :  { %315 = vmatprep.subr.bf16.mxu0 %v9339_v20  ;;  %386 = vmatprep.subr.bf16.mxu1 %v9346_v21  ;;  %v8291_v40 = vld [vmem:[%s12651_s3 + $0x280] ss:$16 sps:$4 sm:$0xff]   ;;  %v8294_v41 = vld [vmem:[%s12651_s3 + $0x288] ss:$16 sps:$4 sm:$0xff]   ;;  %v8308_v47 = vld [vmem:[%s12651_s3 + $0x2cc] ss:$16 sps:$4 sm:$0xff]  }
  0x15   :  { %v8297_v42 = vld [vmem:[%s12651_s3 + $0x2a0] ss:$16 sps:$4 sm:$0xff]   ;;  %v8317_v54 = vld [vmem:[%s12651_s3 + $0x304] ss:$16 sps:$4 sm:$0xff]   ;;  %v8332_v63 = vld [vmem:[%s12651_s3 + $0x34c] ss:$16 sps:$4 sm:$0xff]  }
  0x17   :  { %316 = vmatpush1.bf16.msra.mxu0 %v9353_v22  ;;  %387 = vmatpush1.bf16.msra.mxu1 %v9358_v23 }
  0x18   :  { %317 = vmatprep.subr.bf16.mxu0 %v9365_v24  ;;  %388 = vmatprep.subr.bf16.mxu1 %v9370_v25 }
  0x1b   :  { %318 = vmatpush1.bf16.msra.mxu0 %v9375_v26  ;;  %389 = vmatpush1.bf16.msra.mxu1 %v9380_v27 }
  0x1c   :  { %319 = vmatprep.subr.bf16.mxu0 %v9385_v28  ;;  %390 = vmatprep.subr.bf16.mxu1 %v9390_v29 }
  0x1f   :  { %320 = vmatpush1.bf16.msra.mxu0 %v9420_v35  ;;  %391 = vmatpush1.bf16.msra.mxu1 %v9427_v36 }
  0x20   :  { %6653 = vmatprep.subr.msk.bf16.mxu0 %vm292_vm1, %v9433_v38  ;;  %6658 = vmatprep.subr.msk.bf16.mxu1 %vm292_vm1, %v9436_v39 }
  0x23   :  { %322 = vmatpush1.bf16.msra.mxu0 %v9452_v43  ;;  %393 = vmatpush1.bf16.msra.mxu1 %v9463_v45 }
  0x24   :  { %514 = vmatprep.subr.bf16.mxu0 %v9223_v0  ;;  %585 = vmatprep.subr.bf16.mxu1 %v9228_v1 }
  0x26   :  { %338 = vmatmul.mubr.bf16.vlgmr.msra.gmra.mrb[0].mxu0 %v8219_v49  ;;  %409 = vmatmul.mubr.bf16.vlgmr.msra.gmra.mrb[0].mxu1 %v8219_v49  ;;  %v8306_v49 = vld [vmem:[%s12651_s3 + $0x2c8] ss:$16 sps:$4 sm:$0xff]  }
  0x27   :  { %515 = vmatpush1.bf16.msra.mxu0 %v9234_v2  ;;  %586 = vmatpush1.bf16.msra.mxu1 %v9239_v3 }
  0x28   :  { %516 = vmatprep.subr.bf16.mxu0 %v9245_v4  ;;  %587 = vmatprep.subr.bf16.mxu1 %v9252_v5 }
  0x29   :  { %6655 = vmatprep.mubr.msk.bf16.mxu0 %vm279_vm0, %v8222_v50  ;;  %6660 = vmatprep.mubr.msk.bf16.mxu1 %vm279_vm0, %v8222_v50  ;;  %v8309_v50 = vld [vmem:[%s12651_s3 + $0x2e0] ss:$16 sps:$4 sm:$0xff]  }
  0x2b   :  { %517 = vmatpush1.bf16.msra.mxu0 %v9257_v6  ;;  %588 = vmatpush1.bf16.msra.mxu1 %v9263_v7 }
  0x2c   :  { %518 = vmatprep.subr.bf16.mxu0 %v9269_v8  ;;  %589 = vmatprep.subr.bf16.mxu1 %v9274_v9 }
  0x2e   :  { %348 = vmatmul.mubr.bf16.gmra.mrb[4].mxu0 %v8224_v51  ;;  %419 = vmatmul.mubr.bf16.gmra.mrb[4].mxu1 %v8224_v51  ;;  %v8311_v51 = vld [vmem:[%s12651_s3 + $0x2e4] ss:$16 sps:$4 sm:$0xff]  }
  0x2f   :  { %519 = vmatpush1.bf16.msra.mxu0 %v9279_v10  ;;  %590 = vmatpush1.bf16.msra.mxu1 %v9284_v11 }
  0x30   :  { %520 = vmatprep.subr.bf16.mxu0 %v9291_v12  ;;  %591 = vmatprep.subr.bf16.mxu1 %v9298_v13 }
  0x31   :  { %6656 = vmatprep.mubr.msk.bf16.mxu0 %vm279_vm0, %v8225_v52  ;;  %6661 = vmatprep.mubr.msk.bf16.mxu1 %vm279_vm0, %v8225_v52  ;;  %v8312_v52 = vld [vmem:[%s12651_s3 + $0x2e8] ss:$16 sps:$4 sm:$0xff]  }
  0x33   :  { %521 = vmatpush1.bf16.msra.mxu0 %v9303_v14  ;;  %592 = vmatpush1.bf16.msra.mxu1 %v9310_v15 }
  0x34   :  { %522 = vmatprep.subr.bf16.mxu0 %v9315_v16  ;;  %593 = vmatprep.subr.bf16.mxu1 %v9322_v17 }
  0x36   :  { %358 = vmatmul.mubr.bf16.gmra.mrb[8].mxu0 %v8227_v53  ;;  %429 = vmatmul.mubr.bf16.gmra.mrb[8].mxu1 %v8227_v53  ;;  %v8314_v53 = vld [vmem:[%s12651_s3 + $0x2ec] ss:$16 sps:$4 sm:$0xff]  }
  0x37   :  { %523 = vmatpush1.bf16.msra.mxu0 %v9327_v18  ;;  %594 = vmatpush1.bf16.msra.mxu1 %v9332_v19 }
  0x38   :  { %524 = vmatprep.subr.bf16.mxu0 %v9339_v20  ;;  %595 = vmatprep.subr.bf16.mxu1 %v9346_v21 }
  0x39   :  { %6657 = vmatprep.mubr.msk.bf16.mxu0 %vm279_vm0, %v6616_v55  ;;  %6662 = vmatprep.mubr.msk.bf16.mxu1 %vm279_vm0, %v6616_v55  ;;  %v8320_v55 = vld [vmem:[%s12651_s3 + $0x30c] ss:$16 sps:$4 sm:$0xff]  }
  0x3b   :  { %525 = vmatpush1.bf16.msra.mxu0 %v9353_v22  ;;  %596 = vmatpush1.bf16.msra.mxu1 %v9358_v23 }
  0x3c   :  { %526 = vmatprep.subr.bf16.mxu0 %v9365_v24  ;;  %597 = vmatprep.subr.bf16.mxu1 %v9370_v25 }
  0x3e   :  { %368 = vmatmul.mubr.bf16.gmra.mrb[12].mxu0 %v6615_v56  ;;  %439 = vmatmul.mubr.bf16.gmra.mrb[12].mxu1 %v6615_v56  ;;  %v8315_v56 = vld [vmem:[%s12651_s3 + $0x300] ss:$16 sps:$4 sm:$0xff]  }
  0x3f   :  { %527 = vmatpush1.bf16.msra.mxu0 %v9375_v26  ;;  %598 = vmatpush1.bf16.msra.mxu1 %v9380_v27 }
  0x40   :  { %528 = vmatprep.subr.bf16.mxu0 %v9385_v28  ;;  %599 = vmatprep.subr.bf16.mxu1 %v9390_v29 }
  0x41   :  { %6679 = vmatprep.mubr.msk.bf16.mxu0 %vm279_vm0, %v8232_v57  ;;  %6684 = vmatprep.mubr.msk.bf16.mxu1 %vm279_vm0, %v8232_v57  ;;  %v8318_v57 = vld [vmem:[%s12651_s3 + $0x308] ss:$16 sps:$4 sm:$0xff]  }
  0x43   :  { %529 = vmatpush1.bf16.msra.mxu0 %v9420_v35  ;;  %600 = vmatpush1.bf16.msra.mxu1 %v9427_v36 }
  0x44   :  { %6678 = vmatprep.subr.msk.bf16.mxu0 %vm292_vm1, %v9433_v38  ;;  %6683 = vmatprep.subr.msk.bf16.mxu1 %vm292_vm1, %v9436_v39  ;;  %v9617_v38 = vsel %vm292_vm1, %v6737_v48, 0  ;;  %v8245_v39 = vld [vmem:[%s12650_s0 + $0x38] ss:$8 sps:$4 sm:$0xff]  }
  0x45   :  { %v8303_v48 = vld [vmem:[%s12651_s3 + $0x2c0] ss:$16 sps:$4 sm:$0xff]  }
  0x47   :  { %531 = vmatpush1.bf16.msra.mxu0 %v9452_v43  ;;  %602 = vmatpush1.bf16.msra.mxu1 %v9463_v45  ;;  %v8299_v43 = vld [vmem:[%s12651_s3 + $0x2a4] ss:$16 sps:$4 sm:$0xff]   ;;  %v8302_v45 = vld [vmem:[%s12651_s3 + $0x2ac] ss:$16 sps:$4 sm:$0xff]  }
  0x48   :  { %1053 = vmatprep.subr.bf16.mxu0 %v9223_v0  ;;  %1124 = vmatprep.subr.bf16.mxu1 %v9228_v1 }
  0x4a   :  { %547 = vmatmul.mubr.bf16.vlgmr.msra.gmra.mrb[16].mxu0 %v8230_v58  ;;  %618 = vmatmul.mubr.bf16.vlgmr.msra.gmra.mrb[16].mxu1 %v8230_v58  ;;  %v8321_v58 = vld [vmem:[%s12651_s3 + $0x320] ss:$16 sps:$4 sm:$0xff]  }
  0x4b   :  { %1054 = vmatpush1.bf16.msra.mxu0 %v9234_v2  ;;  %1125 = vmatpush1.bf16.msra.mxu1 %v9239_v3 }
  0x4c   :  { %1055 = vmatprep.subr.bf16.mxu0 %v9245_v4  ;;  %1126 = vmatprep.subr.bf16.mxu1 %v9252_v5 }
  0x4d   :  { %6680 = vmatprep.mubr.msk.bf16.mxu0 %vm279_vm0, %v8233_v59  ;;  %6685 = vmatprep.mubr.msk.bf16.mxu1 %vm279_vm0, %v8233_v59  ;;  %v8323_v59 = vld [vmem:[%s12651_s3 + $0x324] ss:$16 sps:$4 sm:$0xff]  }
  0x4f   :  { %1056 = vmatpush1.bf16.msra.mxu0 %v9257_v6  ;;  %1127 = vmatpush1.bf16.msra.mxu1 %v9263_v7 }
  0x50   :  { %1057 = vmatprep.subr.bf16.mxu0 %v9269_v8  ;;  %1128 = vmatprep.subr.bf16.mxu1 %v9274_v9 }
  0x52   :  { %557 = vmatmul.mubr.bf16.gmra.mrb[20].mxu0 %v8235_v60  ;;  %628 = vmatmul.mubr.bf16.gmra.mrb[20].mxu1 %v8235_v60  ;;  %v8324_v60 = vld [vmem:[%s12651_s3 + $0x328] ss:$16 sps:$4 sm:$0xff]  }
  0x53   :  { %1058 = vmatpush1.bf16.msra.mxu0 %v9279_v10  ;;  %1129 = vmatpush1.bf16.msra.mxu1 %v9284_v11 }
  0x54   :  { %1059 = vmatprep.subr.bf16.mxu0 %v9291_v12  ;;  %1130 = vmatprep.subr.bf16.mxu1 %v9298_v13 }
  0x55   :  { %6681 = vmatprep.mubr.msk.bf16.mxu0 %vm279_vm0, %v8236_v61  ;;  %6686 = vmatprep.mubr.msk.bf16.mxu1 %vm279_vm0, %v8236_v61  ;;  %v8326_v61 = vld [vmem:[%s12651_s3 + $0x32c] ss:$16 sps:$4 sm:$0xff]  }
  0x57   :  { %1060 = vmatpush1.bf16.msra.mxu0 %v9303_v14  ;;  %1131 = vmatpush1.bf16.msra.mxu1 %v9310_v15 }
  0x58   :  { %1061 = vmatprep.subr.bf16.mxu0 %v9315_v16  ;;  %1132 = vmatprep.subr.bf16.mxu1 %v9322_v17 }
  0x5a   :  { %567 = vmatmul.mubr.bf16.gmra.mrb[24].mxu0 %v8238_v62  ;;  %638 = vmatmul.mubr.bf16.gmra.mrb[24].mxu1 %v8238_v62  ;;  %v8329_v62 = vld [vmem:[%s12651_s3 + $0x344] ss:$16 sps:$4 sm:$0xff]  }
  0x5b   :  { %1062 = vmatpush1.bf16.msra.mxu0 %v9327_v18  ;;  %1133 = vmatpush1.bf16.msra.mxu1 %v9332_v19 }
  0x5c   :  { %1063 = vmatprep.subr.bf16.mxu0 %v9339_v20  ;;  %1134 = vmatprep.subr.bf16.mxu1 %v9346_v21 }
  0x5d   :  { %6682 = vmatprep.mubr.msk.bf16.mxu0 %vm279_vm0, %v6677_v30  ;;  %6687 = vmatprep.mubr.msk.bf16.mxu1 %vm279_vm0, %v6677_v30  ;;  %v8327_v30 = vld [vmem:[%s12651_s3 + $0x340] ss:$16 sps:$4 sm:$0xff]  }
  0x5f   :  { %1064 = vmatpush1.bf16.msra.mxu0 %v9353_v22  ;;  %1135 = vmatpush1.bf16.msra.mxu1 %v9358_v23 }
  0x60   :  { %1065 = vmatprep.subr.bf16.mxu0 %v9365_v24  ;;  %1136 = vmatprep.subr.bf16.mxu1 %v9370_v25 }
  0x62   :  { %577 = vmatmul.mubr.bf16.gmra.mrb[28].mxu0 %v6676_v32  ;;  %648 = vmatmul.mubr.bf16.gmra.mrb[28].mxu1 %v6676_v32  ;;  %v8330_v32 = vld [vmem:[%s12651_s3 + $0x348] ss:$16 sps:$4 sm:$0xff]  }
  0x63   :  { %1066 = vmatpush1.bf16.msra.mxu0 %v9375_v26  ;;  %1137 = vmatpush1.bf16.msra.mxu1 %v9380_v27 }
  0x64   :  { %1067 = vmatprep.subr.bf16.mxu0 %v9385_v28  ;;  %1138 = vmatprep.subr.bf16.mxu1 %v9390_v29 }
  0x65   :  { %6740 = vmatprep.mubr.msk.bf16.mxu0 %vm279_vm0, %v8247_v34  ;;  %6745 = vmatprep.mubr.msk.bf16.mxu1 %vm279_vm0, %v8247_v34  ;;  %v8333_v34 = vld [vmem:[%s12651_s3 + $0x360] ss:$16 sps:$4 sm:$0xff]  }
  0x67   :  { %1068 = vmatpush1.bf16.msra.mxu0 %v9420_v35  ;;  %1139 = vmatpush1.bf16.msra.mxu1 %v9427_v36 }
  0x68   :  { %6739 = vmatprep.subr.msk.bf16.mxu0 %vm292_vm1, %v9456_v44  ;;  %6744 = vmatprep.subr.msk.bf16.mxu1 %vm292_vm1, %v9467_v46 }
  0x6b   :  { %1070 = vmatpush1.bf16.msra.mxu0 %v9611_v37  ;;  %1141 = vmatpush1.bf16.msra.mxu1 %v9617_v38 }
  0x6c   :  { %1261 = vmatprep.subr.bf16.mxu0 %v9223_v0  ;;  %1332 = vmatprep.subr.bf16.mxu1 %v9228_v1  ;;  %v8250_v0 = vld [vmem:[%s12650_s0 + $0x48] ss:$8 sps:$4 sm:$0xff]   ;;  %v8251_v1 = vld [vmem:[%s12650_s0 + $0x5c] ss:$8 sps:$4 sm:$0xff]  }
  0x6e   :  { %1086 = vmatmul.mubr.bf16.vlgmr.msra.gmra.mrb[32].mxu0 %v8245_v39  ;;  %1157 = vmatmul.mubr.bf16.vlgmr.msra.gmra.mrb[32].mxu1 %v8245_v39  ;;  %v8338_v39 = vld [vmem:[%s12651_s3 + $0x36c] ss:$16 sps:$4 sm:$0xff]  }
  0x6f   :  { %1262 = vmatpush1.bf16.msra.mxu0 %v9234_v2  ;;  %1333 = vmatpush1.bf16.msra.mxu1 %v9239_v3  ;;  %v8253_v2 = vld [vmem:[%s12650_s0 + $0x58] ss:$8 sps:$4 sm:$0xff]   ;;  %v783_v3 = vld [vmem:[%s12650_s0 + $0x68] sm:$0xff] }
  0x70   :  { %1263 = vmatprep.subr.bf16.mxu0 %v9245_v4  ;;  %1334 = vmatprep.subr.bf16.mxu1 %v9252_v5  ;;  %v6702_v4 = vcombine.high %v783_v3, %v783_v3  ;;  %v6701_v5 = vcombine.low %v783_v3, %v783_v3  ;;  %v8347_v3 = vld [vmem:[%s12651_s3 + $0x3a4] ss:$16 sps:$4 sm:$0xff]  }
  0x71   :  { %6741 = vmatprep.mubr.msk.bf16.mxu0 %vm279_vm0, %v8248_v31  ;;  %6746 = vmatprep.mubr.msk.bf16.mxu1 %vm279_vm0, %v8248_v31  ;;  %v8341_v31 = vld [vmem:[%s12651_s3 + $0x384] ss:$16 sps:$4 sm:$0xff]  }
  0x73   :  { %1264 = vmatpush1.bf16.msra.mxu0 %v9257_v6  ;;  %1335 = vmatpush1.bf16.msra.mxu1 %v9263_v7  ;;  %v8258_v6 = vld [vmem:[%s12650_s0 + $0xac] ss:$8 sps:$4 sm:$0xff]   ;;  %v8256_v7 = vld [vmem:[%s12650_s0 + $0xa8] ss:$8 sps:$4 sm:$0xff]  }
  0x74   :  { %1265 = vmatprep.subr.bf16.mxu0 %v9269_v8  ;;  %1336 = vmatprep.subr.bf16.mxu1 %v9274_v9  ;;  %v8259_v8 = vld [vmem:[%s12650_s0 + $0xbc] ss:$8 sps:$4 sm:$0xff]   ;;  %v8261_v9 = vld [vmem:[%s12650_s0 + $0xb8] ss:$8 sps:$4 sm:$0xff]  }
  0x76   :  { %1096 = vmatmul.mubr.bf16.gmra.mrb[36].mxu0 %v8250_v0  ;;  %1167 = vmatmul.mubr.bf16.gmra.mrb[36].mxu1 %v8250_v0  ;;  %v8339_v0 = vld [vmem:[%s12651_s3 + $0x380] ss:$16 sps:$4 sm:$0xff]  }
  0x77   :  { %1266 = vmatpush1.bf16.msra.mxu0 %v9279_v10  ;;  %1337 = vmatpush1.bf16.msra.mxu1 %v9284_v11  ;;  %v8262_v10 = vld [vmem:[%s12650_s0 + $0xcc] ss:$8 sps:$4 sm:$0xff]   ;;  %v6755_v11 = vld [vmem:[%s12650_s0 + $0xd8] sm:$0xff] }
  0x78   :  { %1267 = vmatprep.subr.bf16.mxu0 %v9291_v12  ;;  %1338 = vmatprep.subr.bf16.mxu1 %v9298_v13  ;;  %v8264_v12 = vld [vmem:[%s12650_s0 + $0xc8] ss:$8 sps:$4 sm:$0xff]   ;;  %v6763_v13 = vcombine.high %v6755_v11, %v6755_v11 }
  0x79   :  { %6742 = vmatprep.mubr.msk.bf16.mxu0 %vm279_vm0, %v8251_v1  ;;  %6747 = vmatprep.mubr.msk.bf16.mxu1 %vm279_vm0, %v8251_v1  ;;  %v8344_v1 = vld [vmem:[%s12651_s3 + $0x38c] ss:$16 sps:$4 sm:$0xff]  }
  0x7b   :  { %1268 = vmatpush1.bf16.msra.mxu0 %v9303_v14  ;;  %1339 = vmatpush1.bf16.msra.mxu1 %v9310_v15  ;;  %v6762_v14 = vcombine.low %v6755_v11, %v6755_v11  ;;  %v8269_v15 = vld [vmem:[%s12651_s3 + $0x204] ss:$16 sps:$4 sm:$0xff]  }
  0x7c   :  { %1269 = vmatprep.subr.bf16.mxu0 %v9315_v16  ;;  %1340 = vmatprep.subr.bf16.mxu1 %v9322_v17  ;;  %v8267_v16 = vld [vmem:[%s12651_s3 + $0x200] ss:$16 sps:$4 sm:$0xff]   ;;  %v8270_v17 = vld [vmem:[%s12651_s3 + $0x208] ss:$16 sps:$4 sm:$0xff]   ;;  %v8359_v11 = vld [vmem:[%s12651_s3 + $0x3e4] ss:$16 sps:$4 sm:$0xff]  }
  0x7e   :  { %1106 = vmatmul.mubr.bf16.gmra.mrb[40].mxu0 %v8253_v2  ;;  %1177 = vmatmul.mubr.bf16.gmra.mrb[40].mxu1 %v8253_v2  ;;  %v8342_v2 = vld [vmem:[%s12651_s3 + $0x388] ss:$16 sps:$4 sm:$0xff]  }
  0x7f   :  { %1270 = vmatpush1.bf16.msra.mxu0 %v9327_v18  ;;  %1341 = vmatpush1.bf16.msra.mxu1 %v9332_v19  ;;  %v8272_v18 = vld [vmem:[%s12651_s3 + $0x20c] ss:$16 sps:$4 sm:$0xff]   ;;  %v8275_v19 = vld [vmem:[%s12651_s3 + $0x224] ss:$16 sps:$4 sm:$0xff]  }
  0x80   :  { %1271 = vmatprep.subr.bf16.mxu0 %v9339_v20  ;;  %1342 = vmatprep.subr.bf16.mxu1 %v9346_v21  ;;  %v8278_v20 = vld [vmem:[%s12651_s3 + $0x22c] ss:$16 sps:$4 sm:$0xff]   ;;  %v8273_v21 = vld [vmem:[%s12651_s3 + $0x220] ss:$16 sps:$4 sm:$0xff]  }
  0x81   :  { %6743 = vmatprep.mubr.msk.bf16.mxu0 %vm279_vm0, %v6702_v4  ;;  %6748 = vmatprep.mubr.msk.bf16.mxu1 %vm279_vm0, %v6702_v4  ;;  %v8350_v4 = vld [vmem:[%s12651_s3 + $0x3ac] ss:$16 sps:$4 sm:$0xff]  }
  0x83   :  { %1272 = vmatpush1.bf16.msra.mxu0 %v9353_v22  ;;  %1343 = vmatpush1.bf16.msra.mxu1 %v9358_v23  ;;  %v8276_v22 = vld [vmem:[%s12651_s3 + $0x228] ss:$16 sps:$4 sm:$0xff]   ;;  %v8281_v23 = vld [vmem:[%s12651_s3 + $0x244] ss:$16 sps:$4 sm:$0xff]  }
  0x84   :  { %1273 = vmatprep.subr.bf16.mxu0 %v9365_v24  ;;  %1344 = vmatprep.subr.bf16.mxu1 %v9370_v25  ;;  %v8284_v24 = vld [vmem:[%s12651_s3 + $0x24c] ss:$16 sps:$4 sm:$0xff]   ;;  %v8279_v25 = vld [vmem:[%s12651_s3 + $0x240] ss:$16 sps:$4 sm:$0xff]  }
  0x86   :  { %1116 = vmatmul.mubr.bf16.gmra.mrb[44].mxu0 %v6701_v5  ;;  %1187 = vmatmul.mubr.bf16.gmra.mrb[44].mxu1 %v6701_v5  ;;  %v8345_v5 = vld [vmem:[%s12651_s3 + $0x3a0] ss:$16 sps:$4 sm:$0xff]  }
  0x87   :  { %1274 = vmatpush1.bf16.msra.mxu0 %v9375_v26  ;;  %1345 = vmatpush1.bf16.msra.mxu1 %v9380_v27  ;;  %v8282_v26 = vld [vmem:[%s12651_s3 + $0x248] ss:$16 sps:$4 sm:$0xff]   ;;  %v8287_v27 = vld [vmem:[%s12651_s3 + $0x264] ss:$16 sps:$4 sm:$0xff]  }
  0x88   :  { %1275 = vmatprep.subr.bf16.mxu0 %v9385_v28  ;;  %1346 = vmatprep.subr.bf16.mxu1 %v9390_v29  ;;  %v8290_v28 = vld [vmem:[%s12651_s3 + $0x26c] ss:$16 sps:$4 sm:$0xff]   ;;  %v8285_v29 = vld [vmem:[%s12651_s3 + $0x260] ss:$16 sps:$4 sm:$0xff]  }
  0x89   :  { %6765 = vmatprep.mubr.msk.bf16.mxu0 %vm279_vm0, %v8258_v6  ;;  %6770 = vmatprep.mubr.msk.bf16.mxu1 %vm279_vm0, %v8258_v6  ;;  %v8348_v6 = vld [vmem:[%s12651_s3 + $0x3a8] ss:$16 sps:$4 sm:$0xff]  }
  0x8b   :  { %1276 = vmatpush1.bf16.msra.mxu0 %v9420_v35  ;;  %1347 = vmatpush1.bf16.msra.mxu1 %v9427_v36  ;;  %v8293_v35 = vld [vmem:[%s12651_s3 + $0x284] ss:$16 sps:$4 sm:$0xff]   ;;  %v8296_v36 = vld [vmem:[%s12651_s3 + $0x28c] ss:$16 sps:$4 sm:$0xff]  }
  0x8c   :  { %6764 = vmatprep.subr.msk.bf16.mxu0 %vm292_vm1, %v9456_v44  ;;  %6769 = vmatprep.subr.msk.bf16.mxu1 %vm292_vm1, %v9467_v46  ;;  %v8300_v44 = vld [vmem:[%s12651_s3 + $0x2a8] ss:$16 sps:$4 sm:$0xff]   ;;  %v8305_v46 = vld [vmem:[%s12651_s3 + $0x2c4] ss:$16 sps:$4 sm:$0xff]  }
  0x8f   :  { %1278 = vmatpush1.bf16.msra.mxu0 %v9611_v37  ;;  %1349 = vmatpush1.bf16.msra.mxu1 %v9617_v38  ;;  %v8335_v37 = vld [vmem:[%s12651_s3 + $0x364] ss:$16 sps:$4 sm:$0xff]   ;;  %v8336_v38 = vld [vmem:[%s12651_s3 + $0x368] ss:$16 sps:$4 sm:$0xff]  }
  0x90   :  { %2025 = vmatprep.subr.bf16.mxu0 %v8269_v15  ;;  %2096 = vmatprep.subr.bf16.mxu1 %v8272_v18  ;;  %v8365_v15 = vld [vmem:[%s12651_s3 + $0x4] ss:$16 sps:$4 sm:$0xff]  }
  0x92   :  { %1294 = vmatmul.mubr.bf16.vlgmr.msra.gmra.mrb[48].mxu0 %v8256_v7  ;;  %1365 = vmatmul.mubr.bf16.vlgmr.msra.gmra.mrb[48].mxu1 %v8256_v7  ;;  %v8353_v7 = vld [vmem:[%s12651_s3 + $0x3c4] ss:$16 sps:$4 sm:$0xff]  }
  0x93   :  { %6766 = vmatprep.mubr.msk.bf16.mxu0 %vm279_vm0, %v8259_v8  ;;  %6771 = vmatprep.mubr.msk.bf16.mxu1 %vm279_vm0, %v8259_v8  ;;  %v8356_v8 = vld [vmem:[%s12651_s3 + $0x3cc] ss:$16 sps:$4 sm:$0xff]  }
  0x94   :  { %2026 = vmatpush1.bf16.msra.mxu0 %v8267_v16  ;;  %2097 = vmatpush1.bf16.msra.mxu1 %v8270_v17  ;;  %v8368_v16 = vld [vmem:[%s12651_s3 + $0xc] ss:$16 sps:$4 sm:$0xff]  }
  0x95   :  { %2027 = vmatprep.subr.bf16.mxu0 %v8275_v19  ;;  %2098 = vmatprep.subr.bf16.mxu1 %v8278_v20 }
  0x98   :  { %2028 = vmatpush1.bf16.msra.mxu0 %v8273_v21  ;;  %2099 = vmatpush1.bf16.msra.mxu1 %v8276_v22 }
  0x99   :  { %2029 = vmatprep.subr.bf16.mxu0 %v8281_v23  ;;  %2100 = vmatprep.subr.bf16.mxu1 %v8284_v24 }
  0x9a   :  { %1304 = vmatmul.mubr.bf16.gmra.mrb[52].mxu0 %v8261_v9  ;;  %1375 = vmatmul.mubr.bf16.gmra.mrb[52].mxu1 %v8261_v9  ;;  %v8351_v9 = vld [vmem:[%s12651_s3 + $0x3c0] ss:$16 sps:$4 sm:$0xff]  }
  0x9b   :  { %6767 = vmatprep.mubr.msk.bf16.mxu0 %vm279_vm0, %v8262_v10  ;;  %6772 = vmatprep.mubr.msk.bf16.mxu1 %vm279_vm0, %v8262_v10  ;;  %v8354_v10 = vld [vmem:[%s12651_s3 + $0x3c8] ss:$16 sps:$4 sm:$0xff]  }
  0x9c   :  { %2030 = vmatpush1.bf16.msra.mxu0 %v8279_v25  ;;  %2101 = vmatpush1.bf16.msra.mxu1 %v8282_v26 }
  0x9d   :  { %2031 = vmatprep.subr.bf16.mxu0 %v8287_v27  ;;  %2102 = vmatprep.subr.bf16.mxu1 %v8290_v28 }
  0xa0   :  { %2032 = vmatpush1.bf16.msra.mxu0 %v8285_v29  ;;  %2103 = vmatpush1.bf16.msra.mxu1 %v8288_v33 }
  0xa1   :  { %2033 = vmatprep.subr.bf16.mxu0 %v8293_v35  ;;  %2104 = vmatprep.subr.bf16.mxu1 %v8296_v36 }
  0xa2   :  { %1314 = vmatmul.mubr.bf16.gmra.mrb[56].mxu0 %v8264_v12  ;;  %1385 = vmatmul.mubr.bf16.gmra.mrb[56].mxu1 %v8264_v12  ;;  %v8362_v12 = vld [vmem:[%s12651_s3 + $0x3ec] ss:$16 sps:$4 sm:$0xff]  }
  0xa3   :  { %6768 = vmatprep.mubr.msk.bf16.mxu0 %vm279_vm0, %v6763_v13  ;;  %6773 = vmatprep.mubr.msk.bf16.mxu1 %vm279_vm0, %v6763_v13  ;;  %v8357_v13 = vld [vmem:[%s12651_s3 + $0x3e0] ss:$16 sps:$4 sm:$0xff]  }
  0xa4   :  { %2034 = vmatpush1.bf16.msra.mxu0 %v8291_v40  ;;  %2105 = vmatpush1.bf16.msra.mxu1 %v8294_v41 }
  0xa5   :  { %2035 = vmatprep.subr.bf16.mxu0 %v8299_v43  ;;  %2106 = vmatprep.subr.bf16.mxu1 %v8302_v45 }
  0xa8   :  { %2036 = vmatpush1.bf16.msra.mxu0 %v8297_v42  ;;  %2107 = vmatpush1.bf16.msra.mxu1 %v8300_v44 }
  0xa9   :  { %2037 = vmatprep.subr.bf16.mxu0 %v8305_v46  ;;  %2108 = vmatprep.subr.bf16.mxu1 %v8308_v47 }
  0xaa   :  { %1324 = vmatmul.mubr.bf16.gmra.mrb[60].mxu0 %v6762_v14  ;;  %1395 = vmatmul.mubr.bf16.gmra.mrb[60].mxu1 %v6762_v14  ;;  %v8360_v14 = vld [vmem:[%s12651_s3 + $0x3e8] ss:$16 sps:$4 sm:$0xff]  }
  0xac   :  { %2038 = vmatpush1.bf16.msra.mxu0 %v8303_v48  ;;  %2109 = vmatpush1.bf16.msra.mxu1 %v8306_v49 }
  0xad   :  { %2039 = vmatprep.subr.bf16.mxu0 %v8311_v51  ;;  %2110 = vmatprep.subr.bf16.mxu1 %v8314_v53 }
  0xb0   :  { %2040 = vmatpush1.bf16.msra.mxu0 %v8309_v50  ;;  %2111 = vmatpush1.bf16.msra.mxu1 %v8312_v52 }
  0xb1   :  { %2041 = vmatprep.subr.bf16.mxu0 %v8317_v54  ;;  %2112 = vmatprep.subr.bf16.mxu1 %v8320_v55 }
  0xb4   :  { %2042 = vmatpush1.bf16.msra.mxu0 %v8315_v56  ;;  %2113 = vmatpush1.bf16.msra.mxu1 %v8318_v57 }
  0xb5   :  { %2043 = vmatprep.subr.bf16.mxu0 %v8323_v59  ;;  %2114 = vmatprep.subr.bf16.mxu1 %v8326_v61 }
  0xb8   :  { %2044 = vmatpush1.bf16.msra.mxu0 %v8321_v58  ;;  %2115 = vmatpush1.bf16.msra.mxu1 %v8324_v60 }
  0xb9   :  { %2045 = vmatprep.subr.bf16.mxu0 %v8329_v62  ;;  %2116 = vmatprep.subr.bf16.mxu1 %v8332_v63 }
  0xbc   :  { %2046 = vmatpush1.bf16.msra.mxu0 %v8327_v30  ;;  %2117 = vmatpush1.bf16.msra.mxu1 %v8330_v32  ;;  %v686_v32 = vlaneseq }
  0xbd   :  { %2047 = vmatprep.subr.bf16.mxu0 %v8335_v37  ;;  %2118 = vmatprep.subr.bf16.mxu1 %v8338_v39 }
  0xc0   :  { %2048 = vmatpush1.bf16.msra.mxu0 %v8333_v34  ;;  %2119 = vmatpush1.bf16.msra.mxu1 %v8336_v38 }
  0xc1   :  { %2049 = vmatprep.subr.bf16.mxu0 %v8341_v31  ;;  %2120 = vmatprep.subr.bf16.mxu1 %v8344_v1 }
  0xc4   :  { %2050 = vmatpush1.bf16.msra.mxu0 %v8339_v0  ;;  %2121 = vmatpush1.bf16.msra.mxu1 %v8342_v2  ;;  %v687_v0 = vshrl.u32 %v686_v32, 7  ;;  %v684_v2 = vld [vmem:[%s12652_s2] sm:$0x3] }
  0xc5   :  { %2051 = vmatprep.subr.bf16.mxu0 %v8347_v3  ;;  %2122 = vmatprep.subr.bf16.mxu1 %v8350_v4 }
  0xc6   :  { %v9988_v1 = vsub.s32 0, %v687_v0  ;;  %v9993_v3 = vsub.s32 1, %v687_v0 }
  0xc8   :  { %2052 = vmatpush1.bf16.msra.mxu0 %v8345_v5  ;;  %2123 = vmatpush1.bf16.msra.mxu1 %v8348_v6  ;;  %12658 = vst [vmem:[#allocation3_spill] sm:$0xff] %v9993_v3 }
  0xc9   :  { %2053 = vmatprep.subr.bf16.mxu0 %v8353_v7  ;;  %2124 = vmatprep.subr.bf16.mxu1 %v8356_v8  ;;  %v9996_v7 = vrot.slane %v684_v2, %v9988_v1 }
  0xcc   :  { %2054 = vmatpush1.bf16.msra.mxu0 %v8351_v9  ;;  %2125 = vmatpush1.bf16.msra.mxu1 %v8354_v10 }
  0xcd   :  { %2055 = vmatprep.subr.bf16.mxu0 %v8359_v11  ;;  %2126 = vmatprep.subr.bf16.mxu1 %v8362_v12  ;;  %v9999_v11 = vrot.slane %v684_v2, %v9993_v3 }
  0xd0   :  { %2056 = vmatpush1.bf16.msra.mxu0 %v8357_v13  ;;  %2127 = vmatpush1.bf16.msra.mxu1 %v8360_v14 }
  0xd1   :  { %2524 = vmatprep.subr.bf16.mxu0 %v8365_v15  ;;  %2595 = vmatprep.subr.bf16.mxu1 %v8368_v16 }
  0xf9   :  { %v9910_v17 = vpop.f32.mrb[0].mxu0  ;;  %v410_v18 = vpop.f32.mrb[0].mxu1 }
  0xfa   :  { %v447_v19 = vmax.f32 %v9910_v17, %v410_v18  ;;  %v9913_v20 = vpop.f32.mrb[1].mxu0  ;;  %v9915_v21 = vpop.f32.mrb[1].mxu1 }
  0xfb   :  { %v448_v22 = vmax.f32 %v9913_v20, %v9915_v21  ;;  %v9919_v23 = vpop.f32.mrb[2].mxu0  ;;  %v9921_v24 = vpop.f32.mrb[2].mxu1 }
  0xfc   :  { %v449_v25 = vmax.f32 %v9919_v23, %v9921_v24  ;;  %v9925_v26 = vpop.f32.mrb[3].mxu0  ;;  %v416_v27 = vpop.f32.mrb[3].mxu1 }
  0xfd   :  { %v450_v28 = vmax.f32 %v9925_v26, %v416_v27 }
 0x101   :  { %v9928_v29 = vpop.f32.mrb[4].mxu0  ;;  %v9930_v33 = vpop.f32.mrb[4].mxu1 }
 0x102   :  { %v451_v35 = vmax.f32 %v9928_v29, %v9930_v33  ;;  %v9934_v36 = vpop.f32.mrb[5].mxu0  ;;  %v9936_v40 = vpop.f32.mrb[5].mxu1 }
 0x103   :  { %v452_v41 = vmax.f32 %v9934_v36, %v9936_v40  ;;  %v9940_v42 = vpop.f32.mrb[6].mxu0  ;;  %v9942_v43 = vpop.f32.mrb[6].mxu1 }
 0x104   :  { %v453_v44 = vmax.f32 %v9940_v42, %v9942_v43  ;;  %v9946_v45 = vpop.f32.mrb[7].mxu0  ;;  %v9948_v46 = vpop.f32.mrb[7].mxu1 }
 0x105   :  { %v454_v47 = vmax.f32 %v9946_v45, %v9948_v46 }
 0x109   :  { %v9952_v48 = vpop.f32.mrb[8].mxu0  ;;  %v9954_v49 = vpop.f32.mrb[8].mxu1 }
 0x10a   :  { %v455_v50 = vmax.f32 %v9952_v48, %v9954_v49  ;;  %v9958_v51 = vpop.f32.mrb[9].mxu0  ;;  %v9960_v52 = vpop.f32.mrb[9].mxu1 }
 0x10b   :  { %v456_v53 = vmax.f32 %v9958_v51, %v9960_v52  ;;  %v9964_v54 = vpop.f32.mrb[10].mxu0  ;;  %v9966_v55 = vpop.f32.mrb[10].mxu1 }
 0x10c   :  { %v457_v56 = vmax.f32 %v9964_v54, %v9966_v55  ;;  %v9970_v57 = vpop.f32.mrb[11].mxu0  ;;  %v9972_v58 = vpop.f32.mrb[11].mxu1 }
 0x10d   :  { %v458_v59 = vmax.f32 %v9970_v57, %v9972_v58 }
 0x111   :  { %v9976_v60 = vpop.f32.mrb[12].mxu0  ;;  %v9978_v61 = vpop.f32.mrb[12].mxu1 }
 0x112   :  { %v459_v62 = vmax.f32 %v9976_v60, %v9978_v61  ;;  %v9982_v63 = vpop.f32.mrb[13].mxu0  ;;  %v9984_v30 = vpop.f32.mrb[13].mxu1 }
 0x113   :  { %v460_v34 = vmax.f32 %v9982_v63, %v9984_v30  ;;  %v373_v37 = vpop.f32.mrb[14].mxu0  ;;  %v444_v38 = vpop.f32.mrb[14].mxu1 }
 0x114   :  { %v374_v39 = vpop.f32.mrb[15].mxu0  ;;  %v445_v31 = vpop.f32.mrb[15].mxu1 }
 0x11d   :  { %v548_v4 = vpop.f32.mrb[16].mxu0  ;;  %v619_v5 = vpop.f32.mrb[16].mxu1 }
 0x11e   :  { %v656_v6 = vmax.f32 %v548_v4, %v619_v5  ;;  %v550_v8 = vpop.f32.mrb[17].mxu0  ;;  %v621_v9 = vpop.f32.mrb[17].mxu1 }
 0x11f   :  { %v657_v10 = vmax.f32 %v550_v8, %v621_v9  ;;  %v552_v12 = vpop.f32.mrb[18].mxu0  ;;  %v623_v13 = vpop.f32.mrb[18].mxu1 }
 0x120   :  { %v670_v14 = vmax.f32 %v447_v19, %v656_v6  ;;  %v658_v15 = vmax.f32 %v552_v12, %v623_v13  ;;  %v554_v16 = vpop.f32.mrb[19].mxu0  ;;  %v625_v17 = vpop.f32.mrb[19].mxu1 }
 0x121   :  { %v671_v18 = vmax.f32 %v448_v22, %v657_v10  ;;  %v659_v20 = vmax.f32 %v554_v16, %v625_v17 }
 0x122   :  { %v696_v21 = vadd.f32 %v9996_v7, %v670_v14  ;;  %v672_v23 = vmax.f32 %v449_v25, %v658_v15 }
 0x123   :  { %v697_v24 = vadd.f32 %v9999_v11, %v671_v18  ;;  %v673_v26 = vmax.f32 %v450_v28, %v659_v20 }
 0x124   :  { %v710_v27 = vmax.f32 %v696_v21, 0.0  ;;  %v698_v32 = vadd.f32 %v9996_v7, %v672_v23 }
 0x125   :  { %v711_v37 = vmax.f32 %v697_v24, 0.0  ;;  %v699_v38 = vadd.f32 %v9999_v11, %v673_v26  ;;  %v558_v39 = vpop.f32.mrb[20].mxu0  ;;  %v629_v31 = vpop.f32.mrb[20].mxu1 }
 0x126   :  { %v712_v19 = vmax.f32 %v698_v32, 0.0  ;;  %v660_v0 = vmax.f32 %v558_v39, %v629_v31  ;;  %v560_v2 = vpop.f32.mrb[21].mxu0  ;;  %v631_v4 = vpop.f32.mrb[21].mxu1 }
 0x127   :  { %v713_v22 = vmax.f32 %v699_v38, 0.0  ;;  %v661_v5 = vmax.f32 %v560_v2, %v631_v4  ;;  %v562_v6 = vpop.f32.mrb[22].mxu0  ;;  %v633_v8 = vpop.f32.mrb[22].mxu1  ;;  %v10005_v25 = vpack.c.bf16 %v711_v37, %v710_v27 }
 0x128   :  { %v10007_v9 = vpack.c.bf16 %v712_v19, %v710_v27  ;;  %v674_v28 = vmax.f32 %v451_v35, %v660_v0  ;;  %v662_v10 = vmax.f32 %v562_v6, %v633_v8  ;;  %v564_v12 = vpop.f32.mrb[23].mxu0  ;;  %v635_v13 = vpop.f32.mrb[23].mxu1 }
 0x129   :  { %v10012_v14 = vpack.c.bf16 %v713_v22, %v711_v37  ;;  %v675_v15 = vmax.f32 %v452_v41, %v661_v5  ;;  %v663_v16 = vmax.f32 %v564_v12, %v635_v13 }
 0x12a   :  { %v700_v17 = vadd.f32 %v9996_v7, %v674_v28  ;;  %v676_v18 = vmax.f32 %v453_v44, %v662_v10 }
 0x12b   :  { %v701_v20 = vadd.f32 %v9999_v11, %v675_v15  ;;  %v677_v29 = vmax.f32 %v454_v47, %v663_v16 }
 0x12c   :  { %v714_v33 = vmax.f32 %v700_v17, 0.0  ;;  %v702_v35 = vadd.f32 %v9996_v7, %v676_v18 }
 0x12d   :  { %v715_v21 = vmax.f32 %v701_v20, 0.0  ;;  %v703_v36 = vadd.f32 %v9999_v11, %v677_v29  ;;  %v568_v40 = vpop.f32.mrb[24].mxu0  ;;  %v639_v41 = vpop.f32.mrb[24].mxu1 }
 0x12e   :  { %v10027_v23 = vpack.c.bf16 %v714_v33, %v712_v19  ;;  %v716_v24 = vmax.f32 %v702_v35, 0.0  ;;  %v664_v26 = vmax.f32 %v568_v40, %v639_v41  ;;  %v570_v42 = vpop.f32.mrb[25].mxu0  ;;  %v641_v43 = vpop.f32.mrb[25].mxu1 }
 0x12f   :  { %v10029_v44 = vpack.c.bf16 %v715_v21, %v713_v22  ;;  %v717_v27 = vmax.f32 %v703_v36, 0.0  ;;  %v665_v32 = vmax.f32 %v570_v42, %v641_v43  ;;  %v572_v45 = vpop.f32.mrb[26].mxu0  ;;  %v643_v46 = vpop.f32.mrb[26].mxu1 }
 0x130   :  { %v10031_v47 = vpack.c.bf16 %v716_v24, %v714_v33  ;;  %v678_v37 = vmax.f32 %v455_v50, %v664_v26  ;;  %v666_v38 = vmax.f32 %v572_v45, %v643_v46  ;;  %v574_v39 = vpop.f32.mrb[27].mxu0  ;;  %v645_v31 = vpop.f32.mrb[27].mxu1 }
 0x131   :  { %v10036_v19 = vpack.c.bf16 %v717_v27, %v715_v21  ;;  %v679_v0 = vmax.f32 %v456_v53, %v665_v32  ;;  %v667_v2 = vmax.f32 %v574_v39, %v645_v31 }
 0x132   :  { %v704_v4 = vadd.f32 %v9996_v7, %v678_v37  ;;  %v680_v22 = vmax.f32 %v457_v56, %v666_v38 }
 0x133   :  { %v705_v5 = vadd.f32 %v9999_v11, %v679_v0  ;;  %v681_v48 = vmax.f32 %v458_v59, %v667_v2 }
 0x134   :  { %v718_v49 = vmax.f32 %v704_v4, 0.0  ;;  %v706_v50 = vadd.f32 %v9996_v7, %v680_v22 }
 0x135   :  { %v719_v6 = vmax.f32 %v705_v5, 0.0  ;;  %v707_v51 = vadd.f32 %v9999_v11, %v681_v48  ;;  %v578_v52 = vpop.f32.mrb[28].mxu0  ;;  %v649_v53 = vpop.f32.mrb[28].mxu1 }
 0x136   :  { %v10051_v8 = vpack.c.bf16 %v718_v49, %v716_v24  ;;  %v10053_v28 = vmax.f32 %v706_v50, 0.0  ;;  %v668_v54 = vmax.f32 %v578_v52, %v649_v53  ;;  %v580_v55 = vpop.f32.mrb[29].mxu0  ;;  %v651_v56 = vpop.f32.mrb[29].mxu1 }
 0x137   :  { %v10055_v10 = vpack.c.bf16 %v719_v6, %v717_v27  ;;  %v10057_v12 = vmax.f32 %v707_v51, 0.0  ;;  %v669_v57 = vmax.f32 %v580_v55, %v651_v56  ;;  %v582_v58 = vpop.f32.mrb[30].mxu0  ;;  %v653_v59 = vpop.f32.mrb[30].mxu1 }
 0x138   :  { %v682_v13 = vmax.f32 %v459_v62, %v668_v54  ;;  %v583_v15 = vpop.f32.mrb[31].mxu0  ;;  %v654_v16 = vpop.f32.mrb[31].mxu1  ;;  %v10063_v17 = vpack.c.bf16 %v10053_v28, %v718_v49 }
 0x139   :  { %v683_v18 = vmax.f32 %v460_v34, %v669_v57  ;;  %v10069_v20 = vpack.c.bf16 %v10057_v12, %v719_v6 }
 0x13a   :  { %v708_v29 = vadd.f32 %v9996_v7, %v682_v13 }
 0x13b   :  { %v709_v33 = vadd.f32 %v9999_v11, %v683_v18 }
 0x13c   :  { %v10073_v35 = vmax.f32 %v708_v29, 0.0 }
 0x13d   :  { %v10075_v60 = vmax.f32 %v709_v33, 0.0 }
 0x13e   :  { %v10079_v61 = vpack.c.bf16 %v10073_v35, %v10053_v28 }
 0x13f   :  { %v10083_v62 = vpack.c.bf16 %v10075_v60, %v10057_v12 }
 0x141   :  { %v1087_v63 = vpop.f32.mrb[32].mxu0  ;;  %v1158_v30 = vpop.f32.mrb[32].mxu1 }
 0x142   :  { %v1195_v34 = vmax.f32 %v1087_v63, %v1158_v30  ;;  %v1089_v21 = vpop.f32.mrb[33].mxu0  ;;  %v1160_v36 = vpop.f32.mrb[33].mxu1  ;;  %v1431_v30 = vld [vmem:[%s12652_s2] sm:$0x3] }
 0x143   :  { %v1196_v7 = vmax.f32 %v1089_v21, %v1160_v36  ;;  %v1091_v40 = vpop.f32.mrb[34].mxu0  ;;  %v1162_v11 = vpop.f32.mrb[34].mxu1  ;;  %v10152_v56 = vrot.slane %v1431_v30, %v9993_v3 }
 0x144   :  { %v1197_v41 = vmax.f32 %v1091_v40, %v1162_v11  ;;  %v1093_v24 = vpop.f32.mrb[35].mxu0  ;;  %v1164_v26 = vpop.f32.mrb[35].mxu1  ;;  %v10149_v11 = vrot.slane %v1431_v30, %v9988_v1 }
 0x145   :  { %v1198_v42 = vmax.f32 %v1093_v24, %v1164_v26 }
 0x149   :  { %v10085_v43 = vpop.f32.mrb[36].mxu0  ;;  %v10087_v27 = vpop.f32.mrb[36].mxu1 }
 0x14a   :  { %v10091_v45 = vpop.f32.mrb[37].mxu0  ;;  %v10093_v46 = vpop.f32.mrb[37].mxu1 }
 0x14b   :  { %v10097_v38 = vpop.f32.mrb[38].mxu0  ;;  %v10099_v39 = vpop.f32.mrb[38].mxu1 }
 0x14c   :  { %v10103_v0 = vpop.f32.mrb[39].mxu0  ;;  %v10105_v2 = vpop.f32.mrb[39].mxu1 }
 0x151   :  { %v10109_v22 = vpop.f32.mrb[40].mxu0  ;;  %v10111_v5 = vpop.f32.mrb[40].mxu1 }
 0x152   :  { %v10115_v49 = vpop.f32.mrb[41].mxu0  ;;  %v10117_v50 = vpop.f32.mrb[41].mxu1 }
 0x153   :  { %v10121_v51 = vpop.f32.mrb[42].mxu0  ;;  %v10123_v52 = vpop.f32.mrb[42].mxu1 }
 0x154   :  { %v10127_v54 = vpop.f32.mrb[43].mxu0  ;;  %v10129_v55 = vpop.f32.mrb[43].mxu1 }
 0x159   :  { %v10133_v57 = vpop.f32.mrb[44].mxu0  ;;  %v10135_v58 = vpop.f32.mrb[44].mxu1 }
 0x15a   :  { %v10139_v13 = vpop.f32.mrb[45].mxu0  ;;  %v10141_v15 = vpop.f32.mrb[45].mxu1 }
 0x15b   :  { %v1121_v18 = vpop.f32.mrb[46].mxu0  ;;  %v1192_v29 = vpop.f32.mrb[46].mxu1 }
 0x15c   :  { %v1122_v33 = vpop.f32.mrb[47].mxu0  ;;  %v1193_v63 = vpop.f32.mrb[47].mxu1 }
 0x165   :  { %v1295_v21 = vpop.f32.mrb[48].mxu0  ;;  %v1366_v36 = vpop.f32.mrb[48].mxu1 }
 0x166   :  { %v1403_v40 = vmax.f32 %v1295_v21, %v1366_v36  ;;  %v1297_v24 = vpop.f32.mrb[49].mxu0  ;;  %v1368_v26 = vpop.f32.mrb[49].mxu1 }
 0x167   :  { %v1404_v59 = vmax.f32 %v1297_v24, %v1368_v26  ;;  %v1299_v18 = vpop.f32.mrb[50].mxu0  ;;  %v1370_v29 = vpop.f32.mrb[50].mxu1 }
 0x168   :  { %v1417_v33 = vmax.f32 %v1195_v34, %v1403_v40  ;;  %v1405_v63 = vmax.f32 %v1299_v18, %v1370_v29  ;;  %v1301_v16 = vpop.f32.mrb[51].mxu0  ;;  %v1372_v53 = vpop.f32.mrb[51].mxu1 }
 0x169   :  { %v1418_v6 = vmax.f32 %v1196_v7, %v1404_v59  ;;  %v1406_v48 = vmax.f32 %v1301_v16, %v1372_v53 }
 0x16a   :  { %v1443_v4 = vadd.f32 %v10149_v11, %v1417_v33  ;;  %v1419_v21 = vmax.f32 %v1197_v41, %v1405_v63  ;;  %v9179_v63 = vmov 0  }
 0x16b   :  { %v1444_v36 = vadd.f32 %v10152_v56, %v1418_v6  ;;  %v1420_v31 = vmax.f32 %v1198_v42, %v1406_v48  ;;  %v12659_v42 = vmax.f32 %v10085_v43, %v10087_v27  ;;  %v12661_v43 = vmax.f32 %v10097_v38, %v10099_v39  ;;  %v8371_v38 = vld [vmem:[%s12651_s3 + $0x24] ss:$16 sps:$4 sm:$0xff]   ;;  %v8374_v39 = vld [vmem:[%s12651_s3 + $0x2c] ss:$16 sps:$4 sm:$0xff]  }
 0x16c   :  { %v1457_v37 = vmax.f32 %v1443_v4, 0.0  ;;  %v1445_v24 = vadd.f32 %v10149_v11, %v1419_v21 }
 0x16d   :  { %v1458_v26 = vmax.f32 %v1444_v36, 0.0  ;;  %v1446_v30 = vadd.f32 %v10152_v56, %v1420_v31  ;;  %v1305_v32 = vpop.f32.mrb[52].mxu0  ;;  %v1376_v3 = vpop.f32.mrb[52].mxu1 }
 0x16e   :  { %v1459_v34 = vmax.f32 %v1445_v24, 0.0  ;;  %v1407_v40 = vmax.f32 %v1305_v32, %v1376_v3  ;;  %v1307_v18 = vpop.f32.mrb[53].mxu0  ;;  %v1378_v29 = vpop.f32.mrb[53].mxu1  ;;  %v12660_v32 = vmax.f32 %v10091_v45, %v10093_v46  ;;  %v12662_v46 = vmax.f32 %v10103_v0, %v10105_v2  ;;  %v8369_v0 = vld [vmem:[%s12651_s3 + $0x20] ss:$16 sps:$4 sm:$0xff]  }
 0x16f   :  { %v7717_v7 = vpack.c.bf16 %v1458_v26, %v1457_v37  ;;  %v1460_v53 = vmax.f32 %v1446_v30, 0.0  ;;  %v1408_v59 = vmax.f32 %v1307_v18, %v1378_v29  ;;  %v1309_v16 = vpop.f32.mrb[54].mxu0  ;;  %v1380_v41 = vpop.f32.mrb[54].mxu1 }
 0x170   :  { %v10158_v33 = vpack.c.bf16 %v1459_v34, %v1457_v37  ;;  %v1421_v4 = vmax.f32 %v12659_v42, %v1407_v40  ;;  %v1409_v48 = vmax.f32 %v1309_v16, %v1380_v41  ;;  %v1311_v6 = vpop.f32.mrb[55].mxu0  ;;  %v1382_v31 = vpop.f32.mrb[55].mxu1  ;;  %v8363_v40 = vld [vmem:[%s12651_s3] ss:$16 sps:$4 sm:$0xff]   ;;  %v8372_v42 = vld [vmem:[%s12651_s3 + $0x28] ss:$16 sps:$4 sm:$0xff]  }
 0x171   :  { %v10164_v21 = vcombine.low %v9179_v63, %v7717_v7  ;;  %v10166_v3 = vpack.c.bf16 %v1460_v53, %v1458_v26  ;;  %v1422_v36 = vmax.f32 %v12660_v32, %v1408_v59  ;;  %v1410_v24 = vmax.f32 %v1311_v6, %v1382_v31  ;;  %v8366_v26 = vld [vmem:[%s12651_s3 + $0x8] ss:$16 sps:$4 sm:$0xff]  }
 0x172   :  { %v1447_v37 = vadd.f32 %v10149_v11, %v1421_v4  ;;  %v1423_v27 = vmax.f32 %v12661_v43, %v1409_v48  ;;  %v10176_v30 = vcombine.high %v9179_v63, %v7717_v7 }
 0x173   :  { %v1448_v45 = vadd.f32 %v10152_v56, %v1422_v36  ;;  %v1424_v18 = vmax.f32 %v12662_v46, %v1410_v24  ;;  %v8377_v36 = vld [vmem:[%s12651_s3 + $0x44] ss:$16 sps:$4 sm:$0xff]  }
 0x174   :  { %v1461_v29 = vmax.f32 %v1447_v37, 0.0  ;;  %v1449_v7 = vadd.f32 %v10149_v11, %v1423_v27  ;;  %2057 = vmatprep.mubr.bf16.mxu0 %v10176_v30  ;;  %2128 = vmatprep.mubr.bf16.mxu1 %v10176_v30 }
 0x175   :  { %v1462_v2 = vmax.f32 %v1448_v45, 0.0  ;;  %v1450_v59 = vadd.f32 %v10152_v56, %v1424_v18  ;;  %2058 = vmatmul.mubr.bf16.vlgmr.msra.gmra.mrb[64].mxu0 %v10164_v21  ;;  %2129 = vmatmul.mubr.bf16.vlgmr.msra.gmra.mrb[64].mxu1 %v10164_v21  ;;  %v1315_v16 = vpop.f32.mrb[56].mxu0  ;;  %v1386_v41 = vpop.f32.mrb[56].mxu1 }
 0x176   :  { %v10206_v4 = vpack.c.bf16 %v1461_v29, %v1459_v34  ;;  %v1463_v48 = vmax.f32 %v1449_v7, 0.0  ;;  %2525 = vmatpush1.bf16.msra.mxu0 %v8363_v40  ;;  %2596 = vmatpush1.bf16.msra.mxu1 %v8366_v26  ;;  %v1411_v6 = vmax.f32 %v1315_v16, %v1386_v41  ;;  %v1317_v31 = vpop.f32.mrb[57].mxu0  ;;  %v1388_v32 = vpop.f32.mrb[57].mxu1  ;;  %v8380_v34 = vld [vmem:[%s12651_s3 + $0x4c] ss:$16 sps:$4 sm:$0xff]   ;;  %v12663_v26 = vmax.f32 %v10109_v22, %v10111_v5 }
 0x177   :  { %v10211_v24 = vpack.c.bf16 %v1462_v2, %v1460_v53  ;;  %v1464_v37 = vmax.f32 %v1450_v59, 0.0  ;;  %v1412_v43 = vmax.f32 %v1317_v31, %v1388_v32  ;;  %v1319_v27 = vpop.f32.mrb[58].mxu0  ;;  %v1390_v45 = vpop.f32.mrb[58].mxu1  ;;  %2526 = vmatprep.subr.bf16.mxu0 %v8371_v38  ;;  %2597 = vmatprep.subr.bf16.mxu1 %v8374_v39  ;;  %v12664_v59 = vmax.f32 %v10115_v49, %v10117_v50  ;;  %v8378_v49 = vld [vmem:[%s12651_s3 + $0x48] ss:$16 sps:$4 sm:$0xff]  }
 0x178   :  { %v10216_v40 = vpack.c.bf16 %v1463_v48, %v1461_v29  ;;  %v1425_v46 = vmax.f32 %v12663_v26, %v1411_v6  ;;  %v1413_v18 = vmax.f32 %v1319_v27, %v1390_v45  ;;  %v1321_v7 = vpop.f32.mrb[59].mxu0  ;;  %v1392_v53 = vpop.f32.mrb[59].mxu1  ;;  %v12665_v22 = vmax.f32 %v10121_v51, %v10123_v52  ;;  %v8383_v51 = vld [vmem:[%s12651_s3 + $0x64] ss:$16 sps:$4 sm:$0xff]   ;;  %v8386_v52 = vld [vmem:[%s12651_s3 + $0x6c] ss:$16 sps:$4 sm:$0xff]  }
 0x179   :  { %v10221_v16 = vpack.c.bf16 %v1464_v37, %v1462_v2  ;;  %v1426_v38 = vmax.f32 %v12664_v59, %v1412_v43  ;;  %v1414_v39 = vmax.f32 %v1321_v7, %v1392_v53  ;;  %2067 = vmatprep.mubr.bf16.mxu0 %v10211_v24  ;;  %2138 = vmatprep.mubr.bf16.mxu1 %v10211_v24  ;;  %v8375_v2 = vld [vmem:[%s12651_s3 + $0x40] ss:$16 sps:$4 sm:$0xff]   ;;  %v8392_v59 = vld [vmem:[%s12651_s3 + $0x8c] ss:$16 sps:$4 sm:$0xff]  }
 0x17a   :  { %v1451_v29 = vadd.f32 %v10149_v11, %v1425_v46  ;;  %v1427_v5 = vmax.f32 %v12665_v22, %v1413_v18  ;;  %2527 = vmatpush1.bf16.msra.mxu0 %v8369_v0  ;;  %2598 = vmatpush1.bf16.msra.mxu1 %v8372_v42  ;;  %v12666_v41 = vmax.f32 %v10127_v54, %v10129_v55  ;;  %v8384_v46 = vld [vmem:[%s12651_s3 + $0x68] ss:$16 sps:$4 sm:$0xff]  }
 0x17b   :  { %v1452_v50 = vadd.f32 %v10152_v56, %v1426_v38  ;;  %2528 = vmatprep.subr.bf16.mxu0 %v8377_v36  ;;  %2599 = vmatprep.subr.bf16.mxu1 %v8380_v34  ;;  %v8381_v36 = vld [vmem:[%s12651_s3 + $0x60] ss:$16 sps:$4 sm:$0xff]  }
 0x17c   :  { %v1428_v6 = vmax.f32 %v12666_v41, %v1414_v39  ;;  %v1465_v0 = vmax.f32 %v1451_v29, 0.0  ;;  %v1453_v42 = vadd.f32 %v10149_v11, %v1427_v5  ;;  %v12667_v39 = vmax.f32 %v10133_v57, %v10135_v58  ;;  %v8387_v57 = vld [vmem:[%s12651_s3 + $0x80] ss:$16 sps:$4 sm:$0xff]   ;;  %v8390_v58 = vld [vmem:[%s12651_s3 + $0x88] ss:$16 sps:$4 sm:$0xff]  }
 0x17d   :  { %v1466_v31 = vmax.f32 %v1452_v50, 0.0  ;;  %2068 = vmatmul.mubr.bf16.gmra.mrb[68].mxu0 %v10206_v4  ;;  %2139 = vmatmul.mubr.bf16.gmra.mrb[68].mxu1 %v10206_v4  ;;  %v1325_v54 = vpop.f32.mrb[60].mxu0  ;;  %v1396_v55 = vpop.f32.mrb[60].mxu1 }
 0x17e   :  { %v1454_v32 = vadd.f32 %v10152_v56, %v1428_v6  ;;  %v10255_v43 = vpack.c.bf16 %v1465_v0, %v1463_v48  ;;  %v1467_v27 = vmax.f32 %v1453_v42, 0.0  ;;  %2529 = vmatpush1.bf16.msra.mxu0 %v8375_v2  ;;  %2600 = vmatpush1.bf16.msra.mxu1 %v8378_v49  ;;  %v1415_v45 = vmax.f32 %v1325_v54, %v1396_v55  ;;  %v1327_v34 = vpop.f32.mrb[61].mxu0  ;;  %v1398_v26 = vpop.f32.mrb[61].mxu1  ;;  %v8389_v48 = vld [vmem:[%s12651_s3 + $0x84] ss:$16 sps:$4 sm:$0xff]  }
 0x17f   :  { %v10260_v18 = vpack.c.bf16 %v1466_v31, %v1464_v37  ;;  %v1416_v53 = vmax.f32 %v1327_v34, %v1398_v26  ;;  %2530 = vmatprep.subr.bf16.mxu0 %v8383_v51  ;;  %2601 = vmatprep.subr.bf16.mxu1 %v8386_v52  ;;  %v1329_v38 = vpop.f32.mrb[62].mxu0  ;;  %v1400_v22 = vpop.f32.mrb[62].mxu1  ;;  %v12668_v2 = vmax.f32 %v10139_v13, %v10141_v15  ;;  %v8398_v51 = vld [vmem:[%s12651_s3 + $0xac] ss:$16 sps:$4 sm:$0xff]   ;;  %v8396_v42 = vld [vmem:[%s12651_s3 + $0xa8] ss:$16 sps:$4 sm:$0xff]  }
 0x180   :  { %v1468_v7 = vmax.f32 %v1454_v32, 0.0  ;;  %v1429_v29 = vmax.f32 %v12667_v39, %v1415_v45  ;;  %v1330_v37 = vpop.f32.mrb[63].mxu0  ;;  %v10271_v5 = vpack.c.bf16 %v1467_v27, %v1465_v0  ;;  %v1401_v41 = vpop.f32.mrb[63].mxu1  ;;  %v8401_v32 = vld [vmem:[%s12651_s3 + $0xc4] ss:$16 sps:$4 sm:$0xff]   ;;  %v10328_v34 = vpack.c.bf16 %v1467_v27, %v1467_v27 }
 0x181   :  { %v1430_v49 = vmax.f32 %v12668_v2, %v1416_v53  ;;  %2077 = vmatprep.mubr.bf16.mxu0 %v10260_v18  ;;  %2148 = vmatprep.mubr.bf16.mxu1 %v10260_v18  ;;  %v8404_v54 = vld [vmem:[%s12651_s3 + $0xcc] ss:$16 sps:$4 sm:$0xff]   ;;  %v8402_v45 = vld [vmem:[%s12651_s3 + $0xc8] ss:$16 sps:$4 sm:$0xff]   ;;  %v8407_v26 = vld [vmem:[%s12651_s3 + $0xe4] ss:$16 sps:$4 sm:$0xff]  }
 0x182   :  { %v10278_v50 = vpack.c.bf16 %v1468_v7, %v1466_v31  ;;  %v1455_v6 = vadd.f32 %v10149_v11, %v1429_v29  ;;  %2531 = vmatpush1.bf16.msra.mxu0 %v8381_v36  ;;  %2602 = vmatpush1.bf16.msra.mxu1 %v8384_v46  ;;  %v8395_v11 = vld [vmem:[%s12651_s3 + $0xa4] ss:$16 sps:$4 sm:$0xff]   ;;  %v10300_v0 = vpack.c.bf16 %v1468_v7, %v1468_v7  ;;  %v8399_v36 = vld [vmem:[%s12651_s3 + $0xc0] ss:$16 sps:$4 sm:$0xff]   ;;  %v8410_v46 = vld [vmem:[%s12651_s3 + $0xec] ss:$16 sps:$4 sm:$0xff]  }
 0x183   :  { %v1456_v13 = vadd.f32 %v10152_v56, %v1430_v49  ;;  %2532 = vmatprep.subr.bf16.mxu0 %v8389_v48  ;;  %2603 = vmatprep.subr.bf16.mxu1 %v8392_v59  ;;  %v8393_v56 = vld [vmem:[%s12651_s3 + $0xa0] ss:$16 sps:$4 sm:$0xff]   ;;  %v8408_v53 = vld [vmem:[%s12651_s3 + $0xe8] ss:$16 sps:$4 sm:$0xff]   ;;  %v8413_v48 = vld [vmem:[%s12651_s3 + $0x104] ss:$16 sps:$4 sm:$0xff]  }
 0x184   :  { %v10288_v15 = vmax.f32 %v1455_v6, 0.0  ;;  %v8416_v59 = vld [vmem:[%s12651_s3 + $0x10c] ss:$16 sps:$4 sm:$0xff]   ;;  %v8411_v38 = vld [vmem:[%s12651_s3 + $0x100] ss:$16 sps:$4 sm:$0xff]  }
 0x185   :  { %v10296_v52 = vmax.f32 %v1456_v13, 0.0  ;;  %2078 = vmatmul.mubr.bf16.gmra.mrb[72].mxu0 %v10255_v43  ;;  %2149 = vmatmul.mubr.bf16.gmra.mrb[72].mxu1 %v10255_v43  ;;  %v8414_v39 = vld [vmem:[%s12651_s3 + $0x108] ss:$16 sps:$4 sm:$0xff]   ;;  %v8419_v29 = vld [vmem:[%s12651_s3 + $0x124] ss:$16 sps:$4 sm:$0xff]  }
 0x186   :  { %2533 = vmatpush1.bf16.msra.mxu0 %v8387_v57  ;;  %2604 = vmatpush1.bf16.msra.mxu1 %v8390_v58  ;;  %v10309_v31 = vpack.c.bf16 %v10288_v15, %v1467_v27  ;;  %v8405_v27 = vld [vmem:[%s12651_s3 + $0xe0] ss:$16 sps:$4 sm:$0xff]   ;;  %v8422_v22 = vld [vmem:[%s12651_s3 + $0x12c] ss:$16 sps:$4 sm:$0xff]   ;;  %v8420_v2 = vld [vmem:[%s12651_s3 + $0x128] ss:$16 sps:$4 sm:$0xff]  }
 0x187   :  { %2087 = vmatprep.mubr.bf16.mxu0 %v10300_v0  ;;  %2158 = vmatprep.mubr.bf16.mxu1 %v10300_v0  ;;  %v10320_v55 = vpack.c.bf16 %v10296_v52, %v1468_v7  ;;  %v6918_v7 = vcombine.high %v9179_v63, %v10005_v25  ;;  %v8417_v37 = vld [vmem:[%s12651_s3 + $0x120] ss:$16 sps:$4 sm:$0xff]   ;;  %v8425_v49 = vld [vmem:[%s12651_s3 + $0x144] ss:$16 sps:$4 sm:$0xff]   ;;  %v8428_v41 = vld [vmem:[%s12651_s3 + $0x14c] ss:$16 sps:$4 sm:$0xff]  }
 0x188   :  { %2534 = vmatprep.subr.bf16.mxu0 %v8395_v11  ;;  %2605 = vmatprep.subr.bf16.mxu1 %v8398_v51  ;;  %v8423_v6 = vld [vmem:[%s12651_s3 + $0x140] ss:$16 sps:$4 sm:$0xff]   ;;  %v8426_v57 = vld [vmem:[%s12651_s3 + $0x148] ss:$16 sps:$4 sm:$0xff]   ;;  %v8431_v58 = vld [vmem:[%s12651_s3 + $0x164] ss:$16 sps:$4 sm:$0xff]  }
 0x189   :  { %v8434_v13 = vld [vmem:[%s12651_s3 + $0x16c] ss:$16 sps:$4 sm:$0xff]   ;;  %v8429_v11 = vld [vmem:[%s12651_s3 + $0x160] ss:$16 sps:$4 sm:$0xff]   ;;  %v8432_v51 = vld [vmem:[%s12651_s3 + $0x168] ss:$16 sps:$4 sm:$0xff]  }
 0x18a   :  { %2535 = vmatpush1.bf16.msra.mxu0 %v8393_v56  ;;  %2606 = vmatpush1.bf16.msra.mxu1 %v8396_v42  ;;  %v8437_v56 = vld [vmem:[%s12651_s3 + $0x184] ss:$16 sps:$4 sm:$0xff]   ;;  %v8440_v42 = vld [vmem:[%s12651_s3 + $0x18c] ss:$16 sps:$4 sm:$0xff]  }
 0x18b   :  { %2536 = vmatprep.subr.bf16.mxu0 %v8401_v32  ;;  %2607 = vmatprep.subr.bf16.mxu1 %v8404_v54  ;;  %v8435_v32 = vld [vmem:[%s12651_s3 + $0x180] ss:$16 sps:$4 sm:$0xff]   ;;  %v8438_v54 = vld [vmem:[%s12651_s3 + $0x188] ss:$16 sps:$4 sm:$0xff]  }
 0x18d   :  { %2088 = vmatmul.mubr.bf16.gmra.mrb[76].mxu0 %v10328_v34  ;;  %2159 = vmatmul.mubr.bf16.gmra.mrb[76].mxu1 %v10328_v34 }
 0x18e   :  { %2537 = vmatpush1.bf16.msra.mxu0 %v8399_v36  ;;  %2608 = vmatpush1.bf16.msra.mxu1 %v8402_v45  ;;  %v8443_v36 = vld [vmem:[%s12651_s3 + $0x1a4] ss:$16 sps:$4 sm:$0xff]   ;;  %v8446_v45 = vld [vmem:[%s12651_s3 + $0x1ac] ss:$16 sps:$4 sm:$0xff]  }
 0x18f   :  { %2556 = vmatprep.mubr.bf16.mxu0 %v6918_v7  ;;  %2627 = vmatprep.mubr.bf16.mxu1 %v6918_v7  ;;  %v8449_v7 = vld [vmem:[%s12651_s3 + $0x1c4] ss:$16 sps:$4 sm:$0xff]  }
 0x190   :  { %2538 = vmatprep.subr.bf16.mxu0 %v8407_v26  ;;  %2609 = vmatprep.subr.bf16.mxu1 %v8410_v46  ;;  %v8441_v26 = vld [vmem:[%s12651_s3 + $0x1a0] ss:$16 sps:$4 sm:$0xff]   ;;  %v8444_v46 = vld [vmem:[%s12651_s3 + $0x1a8] ss:$16 sps:$4 sm:$0xff]  }
 0x192   :  { %2539 = vmatpush1.bf16.msra.mxu0 %v8405_v27  ;;  %2610 = vmatpush1.bf16.msra.mxu1 %v8408_v53  ;;  %v8452_v27 = vld [vmem:[%s12651_s3 + $0x1cc] ss:$16 sps:$4 sm:$0xff]   ;;  %v8447_v53 = vld [vmem:[%s12651_s3 + $0x1c0] ss:$16 sps:$4 sm:$0xff]  }
 0x193   :  { %2540 = vmatprep.subr.bf16.mxu0 %v8413_v48  ;;  %2611 = vmatprep.subr.bf16.mxu1 %v8416_v59  ;;  %v8450_v48 = vld [vmem:[%s12651_s3 + $0x1c8] ss:$16 sps:$4 sm:$0xff]   ;;  %v8455_v59 = vld [vmem:[%s12651_s3 + $0x1e4] ss:$16 sps:$4 sm:$0xff]  }
 0x196   :  { %2541 = vmatpush1.bf16.msra.mxu0 %v8411_v38  ;;  %2612 = vmatpush1.bf16.msra.mxu1 %v8414_v39  ;;  %v8458_v38 = vld [vmem:[%s12651_s3 + $0x1ec] ss:$16 sps:$4 sm:$0xff]   ;;  %v8453_v39 = vld [vmem:[%s12651_s3 + $0x1e0] ss:$16 sps:$4 sm:$0xff]  }
 0x197   :  { %2542 = vmatprep.subr.bf16.mxu0 %v8419_v29  ;;  %2613 = vmatprep.subr.bf16.mxu1 %v8422_v22  ;;  %v8456_v29 = vld [vmem:[%s12651_s3 + $0x1e8] ss:$16 sps:$4 sm:$0xff]   ;;  %v8461_v22 = vld [vmem:[%s12651_s3 + $0x404] ss:$16 sps:$4 sm:$0xff]  }
 0x19a   :  { %2543 = vmatpush1.bf16.msra.mxu0 %v8417_v37  ;;  %2614 = vmatpush1.bf16.msra.mxu1 %v8420_v2  ;;  %v8464_v37 = vld [vmem:[%s12651_s3 + $0x40c] ss:$16 sps:$4 sm:$0xff]   ;;  %v6917_v2 = vcombine.low %v9179_v63, %v10005_v25  ;;  %v8465_v25 = vld [vmem:[%s12651_s3 + $0x420] ss:$16 sps:$4 sm:$0xff]  }
 0x19b   :  { %2544 = vmatprep.subr.bf16.mxu0 %v8425_v49  ;;  %2615 = vmatprep.subr.bf16.mxu1 %v8428_v41  ;;  %v8459_v49 = vld [vmem:[%s12651_s3 + $0x400] ss:$16 sps:$4 sm:$0xff]   ;;  %v8462_v41 = vld [vmem:[%s12651_s3 + $0x408] ss:$16 sps:$4 sm:$0xff]  }
 0x19e   :  { %2545 = vmatpush1.bf16.msra.mxu0 %v8423_v6  ;;  %2616 = vmatpush1.bf16.msra.mxu1 %v8426_v57  ;;  %v8467_v6 = vld [vmem:[%s12651_s3 + $0x424] ss:$16 sps:$4 sm:$0xff]   ;;  %v8470_v57 = vld [vmem:[%s12651_s3 + $0x42c] ss:$16 sps:$4 sm:$0xff]  }
 0x19f   :  { %2546 = vmatprep.subr.bf16.mxu0 %v8431_v58  ;;  %2617 = vmatprep.subr.bf16.mxu1 %v8434_v13  ;;  %v8468_v58 = vld [vmem:[%s12651_s3 + $0x428] ss:$16 sps:$4 sm:$0xff]   ;;  %v8473_v13 = vld [vmem:[%s12651_s3 + $0x444] ss:$16 sps:$4 sm:$0xff]  }
 0x1a2   :  { %2547 = vmatpush1.bf16.msra.mxu0 %v8429_v11  ;;  %2618 = vmatpush1.bf16.msra.mxu1 %v8432_v51  ;;  %v8476_v11 = vld [vmem:[%s12651_s3 + $0x44c] ss:$16 sps:$4 sm:$0xff]   ;;  %v8471_v51 = vld [vmem:[%s12651_s3 + $0x440] ss:$16 sps:$4 sm:$0xff]  }
 0x1a3   :  { %2548 = vmatprep.subr.bf16.mxu0 %v8437_v56  ;;  %2619 = vmatprep.subr.bf16.mxu1 %v8440_v42  ;;  %v8474_v56 = vld [vmem:[%s12651_s3 + $0x448] ss:$16 sps:$4 sm:$0xff]   ;;  %v8479_v42 = vld [vmem:[%s12651_s3 + $0x464] ss:$16 sps:$4 sm:$0xff]  }
 0x1a6   :  { %2549 = vmatpush1.bf16.msra.mxu0 %v8435_v32  ;;  %2620 = vmatpush1.bf16.msra.mxu1 %v8438_v54  ;;  %v8482_v32 = vld [vmem:[%s12651_s3 + $0x46c] ss:$16 sps:$4 sm:$0xff]   ;;  %v8477_v54 = vld [vmem:[%s12651_s3 + $0x460] ss:$16 sps:$4 sm:$0xff]  }
 0x1a7   :  { %2550 = vmatprep.subr.bf16.mxu0 %v8443_v36  ;;  %2621 = vmatprep.subr.bf16.mxu1 %v8446_v45  ;;  %v8480_v36 = vld [vmem:[%s12651_s3 + $0x468] ss:$16 sps:$4 sm:$0xff]   ;;  %v8485_v45 = vld [vmem:[%s12651_s3 + $0x484] ss:$16 sps:$4 sm:$0xff]  }
 0x1aa   :  { %2551 = vmatpush1.bf16.msra.mxu0 %v8441_v26  ;;  %2622 = vmatpush1.bf16.msra.mxu1 %v8444_v46  ;;  %v8488_v26 = vld [vmem:[%s12651_s3 + $0x48c] ss:$16 sps:$4 sm:$0xff]   ;;  %v8483_v46 = vld [vmem:[%s12651_s3 + $0x480] ss:$16 sps:$4 sm:$0xff]  }
 0x1ab   :  { %2552 = vmatprep.subr.bf16.mxu0 %v8449_v7  ;;  %2623 = vmatprep.subr.bf16.mxu1 %v8452_v27  ;;  %v8486_v7 = vld [vmem:[%s12651_s3 + $0x488] ss:$16 sps:$4 sm:$0xff]   ;;  %v7735_v27 = vpack.c.bf16 %v10057_v12, %v10057_v12  ;;  %v8489_v12 = vld [vmem:[%s12651_s3 + $0x4a0] ss:$16 sps:$4 sm:$0xff]  }
 0x1ae   :  { %2553 = vmatpush1.bf16.msra.mxu0 %v8447_v53  ;;  %2624 = vmatpush1.bf16.msra.mxu1 %v8450_v48  ;;  %v8491_v53 = vld [vmem:[%s12651_s3 + $0x4a4] ss:$16 sps:$4 sm:$0xff]   ;;  %v8494_v48 = vld [vmem:[%s12651_s3 + $0x4ac] ss:$16 sps:$4 sm:$0xff]  }
 0x1af   :  { %2554 = vmatprep.subr.bf16.mxu0 %v8455_v59  ;;  %2625 = vmatprep.subr.bf16.mxu1 %v8458_v38  ;;  %v8492_v59 = vld [vmem:[%s12651_s3 + $0x4a8] ss:$16 sps:$4 sm:$0xff]   ;;  %v8497_v38 = vld [vmem:[%s12651_s3 + $0x4c4] ss:$16 sps:$4 sm:$0xff]  }
 0x1b2   :  { %2555 = vmatpush1.bf16.msra.mxu0 %v8453_v39  ;;  %2626 = vmatpush1.bf16.msra.mxu1 %v8456_v29  ;;  %v8500_v39 = vld [vmem:[%s12651_s3 + $0x4cc] ss:$16 sps:$4 sm:$0xff]   ;;  %v7734_v29 = vpack.c.bf16 %v10053_v28, %v10053_v28  ;;  %v8501_v28 = vld [vmem:[%s12651_s3 + $0x4e0] ss:$16 sps:$4 sm:$0xff]  }
 0x1b3   :  { %3095 = vmatprep.subr.bf16.mxu0 %v8461_v22  ;;  %3166 = vmatprep.subr.bf16.mxu1 %v8464_v37  ;;  %v8495_v22 = vld [vmem:[%s12651_s3 + $0x4c0] ss:$16 sps:$4 sm:$0xff]   ;;  %v8498_v37 = vld [vmem:[%s12651_s3 + $0x4c8] ss:$16 sps:$4 sm:$0xff]  }
 0x1b5   :  { %2557 = vmatmul.mubr.bf16.vlgmr.msra.gmra.mrb[64].mxu0 %v6917_v2  ;;  %2628 = vmatmul.mubr.bf16.vlgmr.msra.gmra.mrb[64].mxu1 %v6917_v2  ;;  %v8503_v2 = vld [vmem:[%s12651_s3 + $0x4e4] ss:$16 sps:$4 sm:$0xff]  }
 0x1b6   :  { %2566 = vmatprep.mubr.bf16.mxu0 %v10029_v44  ;;  %2637 = vmatprep.mubr.bf16.mxu1 %v10029_v44 }
 0x1b7   :  { %3096 = vmatpush1.bf16.msra.mxu0 %v8459_v49  ;;  %3167 = vmatpush1.bf16.msra.mxu1 %v8462_v41  ;;  %v8506_v49 = vld [vmem:[%s12651_s3 + $0x4ec] ss:$16 sps:$4 sm:$0xff]   ;;  %v8504_v41 = vld [vmem:[%s12651_s3 + $0x4e8] ss:$16 sps:$4 sm:$0xff]  }
 0x1b8   :  { %3097 = vmatprep.subr.bf16.mxu0 %v8467_v6  ;;  %3168 = vmatprep.subr.bf16.mxu1 %v8470_v57  ;;  %v8509_v6 = vld [vmem:[%s12651_s3 + $0x504] ss:$16 sps:$4 sm:$0xff]   ;;  %v8512_v57 = vld [vmem:[%s12651_s3 + $0x50c] ss:$16 sps:$4 sm:$0xff]  }
 0x1bb   :  { %3098 = vmatpush1.bf16.msra.mxu0 %v8465_v25  ;;  %3169 = vmatpush1.bf16.msra.mxu1 %v8468_v58  ;;  %v8507_v25 = vld [vmem:[%s12651_s3 + $0x500] ss:$16 sps:$4 sm:$0xff]   ;;  %v8510_v58 = vld [vmem:[%s12651_s3 + $0x508] ss:$16 sps:$4 sm:$0xff]  }
 0x1bc   :  { %3099 = vmatprep.subr.bf16.mxu0 %v8473_v13  ;;  %3170 = vmatprep.subr.bf16.mxu1 %v8476_v11  ;;  %v8515_v13 = vld [vmem:[%s12651_s3 + $0x524] ss:$16 sps:$4 sm:$0xff]   ;;  %v8518_v11 = vld [vmem:[%s12651_s3 + $0x52c] ss:$16 sps:$4 sm:$0xff]  }
 0x1bd   :  { %2567 = vmatmul.mubr.bf16.gmra.mrb[68].mxu0 %v10027_v23  ;;  %2638 = vmatmul.mubr.bf16.gmra.mrb[68].mxu1 %v10027_v23 }
 0x1be   :  { %2576 = vmatprep.mubr.bf16.mxu0 %v10055_v10  ;;  %2647 = vmatprep.mubr.bf16.mxu1 %v10055_v10 }
 0x1bf   :  { %3100 = vmatpush1.bf16.msra.mxu0 %v8471_v51  ;;  %3171 = vmatpush1.bf16.msra.mxu1 %v8474_v56  ;;  %v8513_v51 = vld [vmem:[%s12651_s3 + $0x520] ss:$16 sps:$4 sm:$0xff]   ;;  %v8516_v56 = vld [vmem:[%s12651_s3 + $0x528] ss:$16 sps:$4 sm:$0xff]  }
 0x1c0   :  { %3101 = vmatprep.subr.bf16.mxu0 %v8479_v42  ;;  %3172 = vmatprep.subr.bf16.mxu1 %v8482_v32  ;;  %v8521_v42 = vld [vmem:[%s12651_s3 + $0x544] ss:$16 sps:$4 sm:$0xff]   ;;  %v8524_v32 = vld [vmem:[%s12651_s3 + $0x54c] ss:$16 sps:$4 sm:$0xff]  }
 0x1c3   :  { %3102 = vmatpush1.bf16.msra.mxu0 %v8477_v54  ;;  %3173 = vmatpush1.bf16.msra.mxu1 %v8480_v36  ;;  %v8519_v54 = vld [vmem:[%s12651_s3 + $0x540] ss:$16 sps:$4 sm:$0xff]   ;;  %v8522_v36 = vld [vmem:[%s12651_s3 + $0x548] ss:$16 sps:$4 sm:$0xff]  }
 0x1c4   :  { %3103 = vmatprep.subr.bf16.mxu0 %v8485_v45  ;;  %3174 = vmatprep.subr.bf16.mxu1 %v8488_v26  ;;  %v8527_v45 = vld [vmem:[%s12651_s3 + $0x564] ss:$16 sps:$4 sm:$0xff]   ;;  %v8530_v26 = vld [vmem:[%s12651_s3 + $0x56c] ss:$16 sps:$4 sm:$0xff]  }
 0x1c5   :  { %2577 = vmatmul.mubr.bf16.gmra.mrb[72].mxu0 %v10051_v8  ;;  %2648 = vmatmul.mubr.bf16.gmra.mrb[72].mxu1 %v10051_v8 }
 0x1c6   :  { %2586 = vmatprep.mubr.bf16.mxu0 %v7735_v27  ;;  %2657 = vmatprep.mubr.bf16.mxu1 %v7735_v27  ;;  %v8533_v27 = vld [vmem:[%s12651_s3 + $0x584] ss:$16 sps:$4 sm:$0xff]  }
 0x1c7   :  { %3104 = vmatpush1.bf16.msra.mxu0 %v8483_v46  ;;  %3175 = vmatpush1.bf16.msra.mxu1 %v8486_v7  ;;  %v8525_v46 = vld [vmem:[%s12651_s3 + $0x560] ss:$16 sps:$4 sm:$0xff]   ;;  %v8528_v7 = vld [vmem:[%s12651_s3 + $0x568] ss:$16 sps:$4 sm:$0xff]  }
 0x1c8   :  { %3105 = vmatprep.subr.bf16.mxu0 %v8491_v53  ;;  %3176 = vmatprep.subr.bf16.mxu1 %v8494_v48  ;;  %v8536_v53 = vld [vmem:[%s12651_s3 + $0x58c] ss:$16 sps:$4 sm:$0xff]   ;;  %v8531_v48 = vld [vmem:[%s12651_s3 + $0x580] ss:$16 sps:$4 sm:$0xff]  }
 0x1cb   :  { %3106 = vmatpush1.bf16.msra.mxu0 %v8489_v12  ;;  %3177 = vmatpush1.bf16.msra.mxu1 %v8492_v59  ;;  %v8534_v12 = vld [vmem:[%s12651_s3 + $0x588] ss:$16 sps:$4 sm:$0xff]   ;;  %v8539_v59 = vld [vmem:[%s12651_s3 + $0x5a4] ss:$16 sps:$4 sm:$0xff]  }
 0x1cc   :  { %3107 = vmatprep.subr.bf16.mxu0 %v8497_v38  ;;  %3178 = vmatprep.subr.bf16.mxu1 %v8500_v39  ;;  %v8542_v38 = vld [vmem:[%s12651_s3 + $0x5ac] ss:$16 sps:$4 sm:$0xff]   ;;  %v8537_v39 = vld [vmem:[%s12651_s3 + $0x5a0] ss:$16 sps:$4 sm:$0xff]  }
 0x1cd   :  { %2587 = vmatmul.mubr.bf16.gmra.mrb[76].mxu0 %v7734_v29  ;;  %2658 = vmatmul.mubr.bf16.gmra.mrb[76].mxu1 %v7734_v29  ;;  %v8540_v29 = vld [vmem:[%s12651_s3 + $0x5a8] ss:$16 sps:$4 sm:$0xff]  }
 0x1ce   :  { %3127 = vmatprep.mubr.bf16.mxu0 %v10012_v14  ;;  %3198 = vmatprep.mubr.bf16.mxu1 %v10012_v14 }
 0x1cf   :  { %3108 = vmatpush1.bf16.msra.mxu0 %v8495_v22  ;;  %3179 = vmatpush1.bf16.msra.mxu1 %v8498_v37  ;;  %v8545_v22 = vld [vmem:[%s12651_s3 + $0x5c4] ss:$16 sps:$4 sm:$0xff]   ;;  %v8548_v37 = vld [vmem:[%s12651_s3 + $0x5cc] ss:$16 sps:$4 sm:$0xff]  }
 0x1d0   :  { %3109 = vmatprep.subr.bf16.mxu0 %v8503_v2  ;;  %3180 = vmatprep.subr.bf16.mxu1 %v8506_v49  ;;  %v8543_v2 = vld [vmem:[%s12651_s3 + $0x5c0] ss:$16 sps:$4 sm:$0xff]   ;;  %v8546_v49 = vld [vmem:[%s12651_s3 + $0x5c8] ss:$16 sps:$4 sm:$0xff]  }
 0x1d3   :  { %3110 = vmatpush1.bf16.msra.mxu0 %v8501_v28  ;;  %3181 = vmatpush1.bf16.msra.mxu1 %v8504_v41  ;;  %v8551_v28 = vld [vmem:[%s12651_s3 + $0x5e4] ss:$16 sps:$4 sm:$0xff]   ;;  %v8554_v41 = vld [vmem:[%s12651_s3 + $0x5ec] ss:$16 sps:$4 sm:$0xff]  }
 0x1d4   :  { %3111 = vmatprep.subr.bf16.mxu0 %v8509_v6  ;;  %3182 = vmatprep.subr.bf16.mxu1 %v8512_v57  ;;  %v8549_v6 = vld [vmem:[%s12651_s3 + $0x5e0] ss:$16 sps:$4 sm:$0xff]   ;;  %v8552_v57 = vld [vmem:[%s12651_s3 + $0x5e8] ss:$16 sps:$4 sm:$0xff]  }
 0x1d7   :  { %3112 = vmatpush1.bf16.msra.mxu0 %v8507_v25  ;;  %3183 = vmatpush1.bf16.msra.mxu1 %v8510_v58  ;;  %v8557_v25 = vld [vmem:[%s12651_s3 + $0x604] ss:$16 sps:$4 sm:$0xff]   ;;  %v8560_v58 = vld [vmem:[%s12651_s3 + $0x60c] ss:$16 sps:$4 sm:$0xff]  }
 0x1d8   :  { %3113 = vmatprep.subr.bf16.mxu0 %v8515_v13  ;;  %3184 = vmatprep.subr.bf16.mxu1 %v8518_v11  ;;  %v8555_v13 = vld [vmem:[%s12651_s3 + $0x600] ss:$16 sps:$4 sm:$0xff]   ;;  %v8558_v11 = vld [vmem:[%s12651_s3 + $0x608] ss:$16 sps:$4 sm:$0xff]  }
 0x1db   :  { %3114 = vmatpush1.bf16.msra.mxu0 %v8513_v51  ;;  %3185 = vmatpush1.bf16.msra.mxu1 %v8516_v56  ;;  %v8563_v51 = vld [vmem:[%s12651_s3 + $0x624] ss:$16 sps:$4 sm:$0xff]   ;;  %v8566_v56 = vld [vmem:[%s12651_s3 + $0x62c] ss:$16 sps:$4 sm:$0xff]  }
 0x1dc   :  { %3115 = vmatprep.subr.bf16.mxu0 %v8521_v42  ;;  %3186 = vmatprep.subr.bf16.mxu1 %v8524_v32  ;;  %v8561_v42 = vld [vmem:[%s12651_s3 + $0x620] ss:$16 sps:$4 sm:$0xff]   ;;  %v8564_v32 = vld [vmem:[%s12651_s3 + $0x628] ss:$16 sps:$4 sm:$0xff]  }
 0x1df   :  { %3116 = vmatpush1.bf16.msra.mxu0 %v8519_v54  ;;  %3187 = vmatpush1.bf16.msra.mxu1 %v8522_v36  ;;  %v8569_v54 = vld [vmem:[%s12651_s3 + $0x644] ss:$16 sps:$4 sm:$0xff]   ;;  %v8572_v36 = vld [vmem:[%s12651_s3 + $0x64c] ss:$16 sps:$4 sm:$0xff]  }
 0x1e0   :  { %3117 = vmatprep.subr.bf16.mxu0 %v8527_v45  ;;  %3188 = vmatprep.subr.bf16.mxu1 %v8530_v26  ;;  %v8567_v45 = vld [vmem:[%s12651_s3 + $0x640] ss:$16 sps:$4 sm:$0xff]   ;;  %v8570_v26 = vld [vmem:[%s12651_s3 + $0x648] ss:$16 sps:$4 sm:$0xff]  }
 0x1e3   :  { %3118 = vmatpush1.bf16.msra.mxu0 %v8525_v46  ;;  %3189 = vmatpush1.bf16.msra.mxu1 %v8528_v7  ;;  %v8575_v46 = vld [vmem:[%s12651_s3 + $0x664] ss:$16 sps:$4 sm:$0xff]   ;;  %v8578_v7 = vld [vmem:[%s12651_s3 + $0x66c] ss:$16 sps:$4 sm:$0xff]  }
 0x1e4   :  { %3119 = vmatprep.subr.bf16.mxu0 %v8533_v27  ;;  %3190 = vmatprep.subr.bf16.mxu1 %v8536_v53  ;;  %v8573_v27 = vld [vmem:[%s12651_s3 + $0x660] ss:$16 sps:$4 sm:$0xff]   ;;  %v8576_v53 = vld [vmem:[%s12651_s3 + $0x668] ss:$16 sps:$4 sm:$0xff]  }
 0x1e7   :  { %3120 = vmatpush1.bf16.msra.mxu0 %v8531_v48  ;;  %3191 = vmatpush1.bf16.msra.mxu1 %v8534_v12  ;;  %v8581_v48 = vld [vmem:[%s12651_s3 + $0x684] ss:$16 sps:$4 sm:$0xff]   ;;  %v8584_v12 = vld [vmem:[%s12651_s3 + $0x68c] ss:$16 sps:$4 sm:$0xff]  }
 0x1e8   :  { %3121 = vmatprep.subr.bf16.mxu0 %v8539_v59  ;;  %3192 = vmatprep.subr.bf16.mxu1 %v8542_v38  ;;  %v8579_v59 = vld [vmem:[%s12651_s3 + $0x680] ss:$16 sps:$4 sm:$0xff]   ;;  %v8582_v38 = vld [vmem:[%s12651_s3 + $0x688] ss:$16 sps:$4 sm:$0xff]  }
 0x1eb   :  { %3122 = vmatpush1.bf16.msra.mxu0 %v8537_v39  ;;  %3193 = vmatpush1.bf16.msra.mxu1 %v8540_v29  ;;  %v10720_v39 = vpack.c.bf16 %v10075_v60, %v10075_v60  ;;  %v8587_v29 = vld [vmem:[%s12651_s3 + $0x6a4] ss:$16 sps:$4 sm:$0xff]   ;;  %v8585_v60 = vld [vmem:[%s12651_s3 + $0x6a0] ss:$16 sps:$4 sm:$0xff]  }
 0x1ec   :  { %3123 = vmatprep.subr.bf16.mxu0 %v8545_v22  ;;  %3194 = vmatprep.subr.bf16.mxu1 %v8548_v37  ;;  %v8590_v22 = vld [vmem:[%s12651_s3 + $0x6ac] ss:$16 sps:$4 sm:$0xff]   ;;  %v8588_v37 = vld [vmem:[%s12651_s3 + $0x6a8] ss:$16 sps:$4 sm:$0xff]  }
 0x1ef   :  { %3124 = vmatpush1.bf16.msra.mxu0 %v8543_v2  ;;  %3195 = vmatpush1.bf16.msra.mxu1 %v8546_v49  ;;  %v8593_v2 = vld [vmem:[%s12651_s3 + $0x6c4] ss:$16 sps:$4 sm:$0xff]   ;;  %v8596_v49 = vld [vmem:[%s12651_s3 + $0x6cc] ss:$16 sps:$4 sm:$0xff]  }
 0x1f0   :  { %3125 = vmatprep.subr.bf16.mxu0 %v8551_v28  ;;  %3196 = vmatprep.subr.bf16.mxu1 %v8554_v41  ;;  %v10746_v28 = vpack.c.bf16 %v10073_v35, %v10073_v35  ;;  %v8591_v41 = vld [vmem:[%s12651_s3 + $0x6c0] ss:$16 sps:$4 sm:$0xff]   ;;  %v8602_v35 = vld [vmem:[%s12651_s3 + $0x6ec] ss:$16 sps:$4 sm:$0xff]  }
 0x1f3   :  { %3126 = vmatpush1.bf16.msra.mxu0 %v8549_v6  ;;  %3197 = vmatpush1.bf16.msra.mxu1 %v8552_v57  ;;  %v8594_v6 = vld [vmem:[%s12651_s3 + $0x6c8] ss:$16 sps:$4 sm:$0xff]   ;;  %v8599_v57 = vld [vmem:[%s12651_s3 + $0x6e4] ss:$16 sps:$4 sm:$0xff]  }
 0x1f4   :  { %3694 = vmatprep.subr.bf16.mxu0 %v8557_v25  ;;  %3765 = vmatprep.subr.bf16.mxu1 %v8560_v58  ;;  %v8597_v25 = vld [vmem:[%s12651_s3 + $0x6e0] ss:$16 sps:$4 sm:$0xff]   ;;  %v8600_v58 = vld [vmem:[%s12651_s3 + $0x6e8] ss:$16 sps:$4 sm:$0xff]  }
 0x1f6   :  { %3128 = vmatmul.mubr.bf16.vlgmr.msra.gmra.mrb[64].mxu0 %v10007_v9  ;;  %3199 = vmatmul.mubr.bf16.vlgmr.msra.gmra.mrb[64].mxu1 %v10007_v9 }
 0x1f7   :  { %3137 = vmatprep.mubr.bf16.mxu0 %v10036_v19  ;;  %3208 = vmatprep.mubr.bf16.mxu1 %v10036_v19 }
 0x1f8   :  { %3695 = vmatpush1.bf16.msra.mxu0 %v8555_v13  ;;  %3766 = vmatpush1.bf16.msra.mxu1 %v8558_v11  ;;  %v8605_v13 = vld [vmem:[%s12651_s3 + $0x704] ss:$16 sps:$4 sm:$0xff]   ;;  %v8608_v11 = vld [vmem:[%s12651_s3 + $0x70c] ss:$16 sps:$4 sm:$0xff]  }
 0x1f9   :  { %3696 = vmatprep.subr.bf16.mxu0 %v8563_v51  ;;  %3767 = vmatprep.subr.bf16.mxu1 %v8566_v56  ;;  %v8603_v51 = vld [vmem:[%s12651_s3 + $0x700] ss:$16 sps:$4 sm:$0xff]   ;;  %v8606_v56 = vld [vmem:[%s12651_s3 + $0x708] ss:$16 sps:$4 sm:$0xff]  }
 0x1fc   :  { %3697 = vmatpush1.bf16.msra.mxu0 %v8561_v42  ;;  %3768 = vmatpush1.bf16.msra.mxu1 %v8564_v32  ;;  %v8611_v42 = vld [vmem:[%s12651_s3 + $0x724] ss:$16 sps:$4 sm:$0xff]   ;;  %v8614_v32 = vld [vmem:[%s12651_s3 + $0x72c] ss:$16 sps:$4 sm:$0xff]  }
 0x1fd   :  { %3698 = vmatprep.subr.bf16.mxu0 %v8569_v54  ;;  %3769 = vmatprep.subr.bf16.mxu1 %v8572_v36  ;;  %v8609_v54 = vld [vmem:[%s12651_s3 + $0x720] ss:$16 sps:$4 sm:$0xff]   ;;  %v8612_v36 = vld [vmem:[%s12651_s3 + $0x728] ss:$16 sps:$4 sm:$0xff]  }
 0x1fe   :  { %3138 = vmatmul.mubr.bf16.gmra.mrb[68].mxu0 %v10031_v47  ;;  %3209 = vmatmul.mubr.bf16.gmra.mrb[68].mxu1 %v10031_v47 }
 0x1ff   :  { %3147 = vmatprep.mubr.bf16.mxu0 %v10069_v20  ;;  %3218 = vmatprep.mubr.bf16.mxu1 %v10069_v20 }
 0x200   :  { %3699 = vmatpush1.bf16.msra.mxu0 %v8567_v45  ;;  %3770 = vmatpush1.bf16.msra.mxu1 %v8570_v26  ;;  %v8617_v45 = vld [vmem:[%s12651_s3 + $0x744] ss:$16 sps:$4 sm:$0xff]   ;;  %v8620_v26 = vld [vmem:[%s12651_s3 + $0x74c] ss:$16 sps:$4 sm:$0xff]  }
 0x201   :  { %3700 = vmatprep.subr.bf16.mxu0 %v8575_v46  ;;  %3771 = vmatprep.subr.bf16.mxu1 %v8578_v7  ;;  %v8615_v46 = vld [vmem:[%s12651_s3 + $0x740] ss:$16 sps:$4 sm:$0xff]   ;;  %v8618_v7 = vld [vmem:[%s12651_s3 + $0x748] ss:$16 sps:$4 sm:$0xff]  }
 0x204   :  { %3701 = vmatpush1.bf16.msra.mxu0 %v8573_v27  ;;  %3772 = vmatpush1.bf16.msra.mxu1 %v8576_v53  ;;  %v8623_v27 = vld [vmem:[%s12651_s3 + $0x764] ss:$16 sps:$4 sm:$0xff]   ;;  %v8626_v53 = vld [vmem:[%s12651_s3 + $0x76c] ss:$16 sps:$4 sm:$0xff]  }
 0x205   :  { %3702 = vmatprep.subr.bf16.mxu0 %v8581_v48  ;;  %3773 = vmatprep.subr.bf16.mxu1 %v8584_v12  ;;  %v8621_v48 = vld [vmem:[%s12651_s3 + $0x760] ss:$16 sps:$4 sm:$0xff]   ;;  %v8624_v12 = vld [vmem:[%s12651_s3 + $0x768] ss:$16 sps:$4 sm:$0xff]  }
 0x206   :  { %3148 = vmatmul.mubr.bf16.gmra.mrb[72].mxu0 %v10063_v17  ;;  %3219 = vmatmul.mubr.bf16.gmra.mrb[72].mxu1 %v10063_v17 }
 0x207   :  { %3157 = vmatprep.mubr.bf16.mxu0 %v10720_v39  ;;  %3228 = vmatprep.mubr.bf16.mxu1 %v10720_v39 }
 0x208   :  { %3703 = vmatpush1.bf16.msra.mxu0 %v8579_v59  ;;  %3774 = vmatpush1.bf16.msra.mxu1 %v8582_v38  ;;  %v8629_v59 = vld [vmem:[%s12651_s3 + $0x784] ss:$16 sps:$4 sm:$0xff]   ;;  %v8632_v38 = vld [vmem:[%s12651_s3 + $0x78c] ss:$16 sps:$4 sm:$0xff]  }
 0x209   :  { %3704 = vmatprep.subr.bf16.mxu0 %v8587_v29  ;;  %3775 = vmatprep.subr.bf16.mxu1 %v8590_v22  ;;  %v8627_v29 = vld [vmem:[%s12651_s3 + $0x780] ss:$16 sps:$4 sm:$0xff]   ;;  %v8630_v22 = vld [vmem:[%s12651_s3 + $0x788] ss:$16 sps:$4 sm:$0xff]  }
 0x20c   :  { %3705 = vmatpush1.bf16.msra.mxu0 %v8585_v60  ;;  %3776 = vmatpush1.bf16.msra.mxu1 %v8588_v37  ;;  %v8635_v60 = vld [vmem:[%s12651_s3 + $0x7a4] ss:$16 sps:$4 sm:$0xff]   ;;  %v8638_v37 = vld [vmem:[%s12651_s3 + $0x7ac] ss:$16 sps:$4 sm:$0xff]  }
 0x20d   :  { %3706 = vmatprep.subr.bf16.mxu0 %v8593_v2  ;;  %3777 = vmatprep.subr.bf16.mxu1 %v8596_v49  ;;  %v8633_v2 = vld [vmem:[%s12651_s3 + $0x7a0] ss:$16 sps:$4 sm:$0xff]   ;;  %v8636_v49 = vld [vmem:[%s12651_s3 + $0x7a8] ss:$16 sps:$4 sm:$0xff]  }
 0x20e   :  { %3158 = vmatmul.mubr.bf16.gmra.mrb[76].mxu0 %v10746_v28  ;;  %3229 = vmatmul.mubr.bf16.gmra.mrb[76].mxu1 %v10746_v28 }
 0x20f   :  { %3726 = vmatprep.mubr.bf16.mxu0 %v10166_v3  ;;  %3797 = vmatprep.mubr.bf16.mxu1 %v10166_v3 }
 0x210   :  { %3707 = vmatpush1.bf16.msra.mxu0 %v8591_v41  ;;  %3778 = vmatpush1.bf16.msra.mxu1 %v8594_v6  ;;  %v8641_v41 = vld [vmem:[%s12651_s3 + $0x7c4] ss:$16 sps:$4 sm:$0xff]   ;;  %v8644_v6 = vld [vmem:[%s12651_s3 + $0x7cc] ss:$16 sps:$4 sm:$0xff]  }
 0x211   :  { %3708 = vmatprep.subr.bf16.mxu0 %v8599_v57  ;;  %3779 = vmatprep.subr.bf16.mxu1 %v8602_v35  ;;  %v8639_v57 = vld [vmem:[%s12651_s3 + $0x7c0] ss:$16 sps:$4 sm:$0xff]   ;;  %v8642_v35 = vld [vmem:[%s12651_s3 + $0x7c8] ss:$16 sps:$4 sm:$0xff]  }
 0x214   :  { %3709 = vmatpush1.bf16.msra.mxu0 %v8597_v25  ;;  %3780 = vmatpush1.bf16.msra.mxu1 %v8600_v58  ;;  %v8647_v25 = vld [vmem:[%s12651_s3 + $0x7e4] ss:$16 sps:$4 sm:$0xff]   ;;  %v8650_v58 = vld [vmem:[%s12651_s3 + $0x7ec] ss:$16 sps:$4 sm:$0xff]  }
 0x215   :  { %3710 = vmatprep.subr.bf16.mxu0 %v8605_v13  ;;  %3781 = vmatprep.subr.bf16.mxu1 %v8608_v11  ;;  %v8645_v13 = vld [vmem:[%s12651_s3 + $0x7e0] ss:$16 sps:$4 sm:$0xff]   ;;  %v8648_v11 = vld [vmem:[%s12651_s3 + $0x7e8] ss:$16 sps:$4 sm:$0xff]  }
 0x218   :  { %3711 = vmatpush1.bf16.msra.mxu0 %v8603_v51  ;;  %3782 = vmatpush1.bf16.msra.mxu1 %v8606_v56  ;;  %v8653_v51 = vld [vmem:[%s12651_s3 + $0x804] ss:$16 sps:$4 sm:$0xff]   ;;  %v8656_v56 = vld [vmem:[%s12651_s3 + $0x80c] ss:$16 sps:$4 sm:$0xff]  }
 0x219   :  { %3712 = vmatprep.subr.bf16.mxu0 %v8611_v42  ;;  %3783 = vmatprep.subr.bf16.mxu1 %v8614_v32  ;;  %v8651_v42 = vld [vmem:[%s12651_s3 + $0x800] ss:$16 sps:$4 sm:$0xff]   ;;  %v8654_v32 = vld [vmem:[%s12651_s3 + $0x808] ss:$16 sps:$4 sm:$0xff]  }
 0x21c   :  { %3713 = vmatpush1.bf16.msra.mxu0 %v8609_v54  ;;  %3784 = vmatpush1.bf16.msra.mxu1 %v8612_v36  ;;  %v8659_v54 = vld [vmem:[%s12651_s3 + $0x824] ss:$16 sps:$4 sm:$0xff]   ;;  %v8662_v36 = vld [vmem:[%s12651_s3 + $0x82c] ss:$16 sps:$4 sm:$0xff]  }
 0x21d   :  { %3714 = vmatprep.subr.bf16.mxu0 %v8617_v45  ;;  %3785 = vmatprep.subr.bf16.mxu1 %v8620_v26  ;;  %v8657_v45 = vld [vmem:[%s12651_s3 + $0x820] ss:$16 sps:$4 sm:$0xff]   ;;  %v8660_v26 = vld [vmem:[%s12651_s3 + $0x828] ss:$16 sps:$4 sm:$0xff]  }
 0x220   :  { %3715 = vmatpush1.bf16.msra.mxu0 %v8615_v46  ;;  %3786 = vmatpush1.bf16.msra.mxu1 %v8618_v7  ;;  %v8665_v46 = vld [vmem:[%s12651_s3 + $0x844] ss:$16 sps:$4 sm:$0xff]   ;;  %v8668_v7 = vld [vmem:[%s12651_s3 + $0x84c] ss:$16 sps:$4 sm:$0xff]  }
 0x221   :  { %3716 = vmatprep.subr.bf16.mxu0 %v8623_v27  ;;  %3787 = vmatprep.subr.bf16.mxu1 %v8626_v53  ;;  %v8663_v27 = vld [vmem:[%s12651_s3 + $0x840] ss:$16 sps:$4 sm:$0xff]   ;;  %v8666_v53 = vld [vmem:[%s12651_s3 + $0x848] ss:$16 sps:$4 sm:$0xff]  }
 0x224   :  { %3717 = vmatpush1.bf16.msra.mxu0 %v8621_v48  ;;  %3788 = vmatpush1.bf16.msra.mxu1 %v8624_v12  ;;  %v8671_v48 = vld [vmem:[%s12651_s3 + $0x864] ss:$16 sps:$4 sm:$0xff]   ;;  %v8674_v12 = vld [vmem:[%s12651_s3 + $0x86c] ss:$16 sps:$4 sm:$0xff]  }
 0x225   :  { %3718 = vmatprep.subr.bf16.mxu0 %v8629_v59  ;;  %3789 = vmatprep.subr.bf16.mxu1 %v8632_v38  ;;  %v8669_v59 = vld [vmem:[%s12651_s3 + $0x860] ss:$16 sps:$4 sm:$0xff]   ;;  %v8672_v38 = vld [vmem:[%s12651_s3 + $0x868] ss:$16 sps:$4 sm:$0xff]  }
 0x228   :  { %3719 = vmatpush1.bf16.msra.mxu0 %v8627_v29  ;;  %3790 = vmatpush1.bf16.msra.mxu1 %v8630_v22  ;;  %v8677_v29 = vld [vmem:[%s12651_s3 + $0x884] ss:$16 sps:$4 sm:$0xff]   ;;  %v8680_v22 = vld [vmem:[%s12651_s3 + $0x88c] ss:$16 sps:$4 sm:$0xff]  }
 0x229   :  { %3720 = vmatprep.subr.bf16.mxu0 %v8635_v60  ;;  %3791 = vmatprep.subr.bf16.mxu1 %v8638_v37  ;;  %v8675_v60 = vld [vmem:[%s12651_s3 + $0x880] ss:$16 sps:$4 sm:$0xff]   ;;  %v8678_v37 = vld [vmem:[%s12651_s3 + $0x888] ss:$16 sps:$4 sm:$0xff]  }
 0x22c   :  { %3721 = vmatpush1.bf16.msra.mxu0 %v8633_v2  ;;  %3792 = vmatpush1.bf16.msra.mxu1 %v8636_v49  ;;  %v10936_v2 = vpack.c.bf16 %v10296_v52, %v10296_v52  ;;  %v8683_v49 = vld [vmem:[%s12651_s3 + $0x8a4] ss:$16 sps:$4 sm:$0xff]   ;;  %v8681_v52 = vld [vmem:[%s12651_s3 + $0x8a0] ss:$16 sps:$4 sm:$0xff]  }
 0x22d   :  { %3722 = vmatprep.subr.bf16.mxu0 %v8641_v41  ;;  %3793 = vmatprep.subr.bf16.mxu1 %v8644_v6  ;;  %v8686_v41 = vld [vmem:[%s12651_s3 + $0x8ac] ss:$16 sps:$4 sm:$0xff]   ;;  %v8684_v6 = vld [vmem:[%s12651_s3 + $0x8a8] ss:$16 sps:$4 sm:$0xff]  }
 0x230   :  { %3723 = vmatpush1.bf16.msra.mxu0 %v8639_v57  ;;  %3794 = vmatpush1.bf16.msra.mxu1 %v8642_v35  ;;  %v8689_v57 = vld [vmem:[%s12651_s3 + $0x8c4] ss:$16 sps:$4 sm:$0xff]   ;;  %v8692_v35 = vld [vmem:[%s12651_s3 + $0x8cc] ss:$16 sps:$4 sm:$0xff]  }
 0x231   :  { %3724 = vmatprep.subr.bf16.mxu0 %v8647_v25  ;;  %3795 = vmatprep.subr.bf16.mxu1 %v8650_v58  ;;  %v10962_v25 = vpack.c.bf16 %v10288_v15, %v10288_v15  ;;  %v8687_v58 = vld [vmem:[%s12651_s3 + $0x8c0] ss:$16 sps:$4 sm:$0xff]   ;;  %v8698_v15 = vld [vmem:[%s12651_s3 + $0x8ec] ss:$16 sps:$4 sm:$0xff]  }
 0x234   :  { %3725 = vmatpush1.bf16.msra.mxu0 %v8645_v13  ;;  %3796 = vmatpush1.bf16.msra.mxu1 %v8648_v11  ;;  %v8690_v13 = vld [vmem:[%s12651_s3 + $0x8c8] ss:$16 sps:$4 sm:$0xff]   ;;  %v8695_v11 = vld [vmem:[%s12651_s3 + $0x8e4] ss:$16 sps:$4 sm:$0xff]  }
 0x235   :  { %4293 = vmatprep.subr.bf16.mxu0 %v8653_v51  ;;  %4364 = vmatprep.subr.bf16.mxu1 %v8656_v56  ;;  %v8693_v51 = vld [vmem:[%s12651_s3 + $0x8e0] ss:$16 sps:$4 sm:$0xff]   ;;  %v8696_v56 = vld [vmem:[%s12651_s3 + $0x8e8] ss:$16 sps:$4 sm:$0xff]  }
 0x237   :  { %3727 = vmatmul.mubr.bf16.vlgmr.msra.gmra.mrb[64].mxu0 %v10158_v33  ;;  %3798 = vmatmul.mubr.bf16.vlgmr.msra.gmra.mrb[64].mxu1 %v10158_v33 }
 0x238   :  { %3736 = vmatprep.mubr.bf16.mxu0 %v10221_v16  ;;  %3807 = vmatprep.mubr.bf16.mxu1 %v10221_v16 }
 0x239   :  { %4294 = vmatpush1.bf16.msra.mxu0 %v8651_v42  ;;  %4365 = vmatpush1.bf16.msra.mxu1 %v8654_v32  ;;  %v8701_v42 = vld [vmem:[%s12651_s3 + $0x904] ss:$16 sps:$4 sm:$0xff]   ;;  %v8704_v32 = vld [vmem:[%s12651_s3 + $0x90c] ss:$16 sps:$4 sm:$0xff]  }
 0x23a   :  { %4295 = vmatprep.subr.bf16.mxu0 %v8659_v54  ;;  %4366 = vmatprep.subr.bf16.mxu1 %v8662_v36  ;;  %v8699_v54 = vld [vmem:[%s12651_s3 + $0x900] ss:$16 sps:$4 sm:$0xff]   ;;  %v8702_v36 = vld [vmem:[%s12651_s3 + $0x908] ss:$16 sps:$4 sm:$0xff]  }
 0x23d   :  { %4296 = vmatpush1.bf16.msra.mxu0 %v8657_v45  ;;  %4367 = vmatpush1.bf16.msra.mxu1 %v8660_v26  ;;  %v8707_v45 = vld [vmem:[%s12651_s3 + $0x924] ss:$16 sps:$4 sm:$0xff]   ;;  %v8710_v26 = vld [vmem:[%s12651_s3 + $0x92c] ss:$16 sps:$4 sm:$0xff]  }
 0x23e   :  { %4297 = vmatprep.subr.bf16.mxu0 %v8665_v46  ;;  %4368 = vmatprep.subr.bf16.mxu1 %v8668_v7  ;;  %v8705_v46 = vld [vmem:[%s12651_s3 + $0x920] ss:$16 sps:$4 sm:$0xff]   ;;  %v8708_v7 = vld [vmem:[%s12651_s3 + $0x928] ss:$16 sps:$4 sm:$0xff]  }
 0x23f   :  { %3737 = vmatmul.mubr.bf16.gmra.mrb[68].mxu0 %v10216_v40  ;;  %3808 = vmatmul.mubr.bf16.gmra.mrb[68].mxu1 %v10216_v40 }
 0x240   :  { %3746 = vmatprep.mubr.bf16.mxu0 %v10278_v50  ;;  %3817 = vmatprep.mubr.bf16.mxu1 %v10278_v50 }
 0x241   :  { %4298 = vmatpush1.bf16.msra.mxu0 %v8663_v27  ;;  %4369 = vmatpush1.bf16.msra.mxu1 %v8666_v53  ;;  %v8713_v27 = vld [vmem:[%s12651_s3 + $0x944] ss:$16 sps:$4 sm:$0xff]   ;;  %v8716_v53 = vld [vmem:[%s12651_s3 + $0x94c] ss:$16 sps:$4 sm:$0xff]  }
 0x242   :  { %4299 = vmatprep.subr.bf16.mxu0 %v8671_v48  ;;  %4370 = vmatprep.subr.bf16.mxu1 %v8674_v12  ;;  %v8711_v48 = vld [vmem:[%s12651_s3 + $0x940] ss:$16 sps:$4 sm:$0xff]   ;;  %v8714_v12 = vld [vmem:[%s12651_s3 + $0x948] ss:$16 sps:$4 sm:$0xff]  }
 0x245   :  { %4300 = vmatpush1.bf16.msra.mxu0 %v8669_v59  ;;  %4371 = vmatpush1.bf16.msra.mxu1 %v8672_v38  ;;  %v8719_v59 = vld [vmem:[%s12651_s3 + $0x964] ss:$16 sps:$4 sm:$0xff]   ;;  %v8722_v38 = vld [vmem:[%s12651_s3 + $0x96c] ss:$16 sps:$4 sm:$0xff]  }
 0x246   :  { %4301 = vmatprep.subr.bf16.mxu0 %v8677_v29  ;;  %4372 = vmatprep.subr.bf16.mxu1 %v8680_v22  ;;  %v8717_v29 = vld [vmem:[%s12651_s3 + $0x960] ss:$16 sps:$4 sm:$0xff]   ;;  %v8720_v22 = vld [vmem:[%s12651_s3 + $0x968] ss:$16 sps:$4 sm:$0xff]  }
 0x247   :  { %3747 = vmatmul.mubr.bf16.gmra.mrb[72].mxu0 %v10271_v5  ;;  %3818 = vmatmul.mubr.bf16.gmra.mrb[72].mxu1 %v10271_v5 }
 0x248   :  { %3756 = vmatprep.mubr.bf16.mxu0 %v10936_v2  ;;  %3827 = vmatprep.mubr.bf16.mxu1 %v10936_v2 }
 0x249   :  { %4302 = vmatpush1.bf16.msra.mxu0 %v8675_v60  ;;  %4373 = vmatpush1.bf16.msra.mxu1 %v8678_v37  ;;  %v8725_v60 = vld [vmem:[%s12651_s3 + $0x984] ss:$16 sps:$4 sm:$0xff]   ;;  %v8728_v37 = vld [vmem:[%s12651_s3 + $0x98c] ss:$16 sps:$4 sm:$0xff]  }
 0x24a   :  { %4303 = vmatprep.subr.bf16.mxu0 %v8683_v49  ;;  %4374 = vmatprep.subr.bf16.mxu1 %v8686_v41  ;;  %v8723_v49 = vld [vmem:[%s12651_s3 + $0x980] ss:$16 sps:$4 sm:$0xff]   ;;  %v8726_v41 = vld [vmem:[%s12651_s3 + $0x988] ss:$16 sps:$4 sm:$0xff]  }
 0x24d   :  { %4304 = vmatpush1.bf16.msra.mxu0 %v8681_v52  ;;  %4375 = vmatpush1.bf16.msra.mxu1 %v8684_v6  ;;  %v8731_v52 = vld [vmem:[%s12651_s3 + $0x9a4] ss:$16 sps:$4 sm:$0xff]   ;;  %v8734_v6 = vld [vmem:[%s12651_s3 + $0x9ac] ss:$16 sps:$4 sm:$0xff]  }
 0x24e   :  { %4305 = vmatprep.subr.bf16.mxu0 %v8689_v57  ;;  %4376 = vmatprep.subr.bf16.mxu1 %v8692_v35  ;;  %v8729_v57 = vld [vmem:[%s12651_s3 + $0x9a0] ss:$16 sps:$4 sm:$0xff]   ;;  %v8732_v35 = vld [vmem:[%s12651_s3 + $0x9a8] ss:$16 sps:$4 sm:$0xff]  }
 0x24f   :  { %3757 = vmatmul.mubr.bf16.gmra.mrb[76].mxu0 %v10962_v25  ;;  %3828 = vmatmul.mubr.bf16.gmra.mrb[76].mxu1 %v10962_v25 }
 0x250   :  { %4325 = vmatprep.mubr.bf16.mxu0 %v10029_v44  ;;  %4396 = vmatprep.mubr.bf16.mxu1 %v10029_v44 }
 0x251   :  { %4306 = vmatpush1.bf16.msra.mxu0 %v8687_v58  ;;  %4377 = vmatpush1.bf16.msra.mxu1 %v8690_v13  ;;  %v8737_v58 = vld [vmem:[%s12651_s3 + $0x9c4] ss:$16 sps:$4 sm:$0xff]   ;;  %v8740_v13 = vld [vmem:[%s12651_s3 + $0x9cc] ss:$16 sps:$4 sm:$0xff]  }
 0x252   :  { %4307 = vmatprep.subr.bf16.mxu0 %v8695_v11  ;;  %4378 = vmatprep.subr.bf16.mxu1 %v8698_v15  ;;  %v8735_v11 = vld [vmem:[%s12651_s3 + $0x9c0] ss:$16 sps:$4 sm:$0xff]   ;;  %v8738_v15 = vld [vmem:[%s12651_s3 + $0x9c8] ss:$16 sps:$4 sm:$0xff]  }
 0x255   :  { %4308 = vmatpush1.bf16.msra.mxu0 %v8693_v51  ;;  %4379 = vmatpush1.bf16.msra.mxu1 %v8696_v56  ;;  %v8743_v51 = vld [vmem:[%s12651_s3 + $0x9e4] ss:$16 sps:$4 sm:$0xff]   ;;  %v8746_v56 = vld [vmem:[%s12651_s3 + $0x9ec] ss:$16 sps:$4 sm:$0xff]  }
 0x256   :  { %4309 = vmatprep.subr.bf16.mxu0 %v8701_v42  ;;  %4380 = vmatprep.subr.bf16.mxu1 %v8704_v32  ;;  %v8741_v42 = vld [vmem:[%s12651_s3 + $0x9e0] ss:$16 sps:$4 sm:$0xff]   ;;  %v8744_v32 = vld [vmem:[%s12651_s3 + $0x9e8] ss:$16 sps:$4 sm:$0xff]  }
 0x259   :  { %4310 = vmatpush1.bf16.msra.mxu0 %v8699_v54  ;;  %4381 = vmatpush1.bf16.msra.mxu1 %v8702_v36  ;;  %v8859_v54 = vld [vmem:[%s12651_s3 + $0x204] ss:$16 sps:$4 sm:$0xff]   ;;  %v8860_v36 = vld [vmem:[%s12651_s3 + $0x20c] ss:$16 sps:$4 sm:$0xff]  }
 0x25a   :  { %4311 = vmatprep.subr.bf16.mxu0 %v8707_v45  ;;  %4382 = vmatprep.subr.bf16.mxu1 %v8710_v26  ;;  %v8861_v45 = vld [vmem:[%s12651_s3 + $0x200] ss:$16 sps:$4 sm:$0xff]   ;;  %v8862_v26 = vld [vmem:[%s12651_s3 + $0x208] ss:$16 sps:$4 sm:$0xff]  }
 0x25d   :  { %4312 = vmatpush1.bf16.msra.mxu0 %v8705_v46  ;;  %4383 = vmatpush1.bf16.msra.mxu1 %v8708_v7  ;;  %v8863_v46 = vld [vmem:[%s12651_s3 + $0x224] ss:$16 sps:$4 sm:$0xff]   ;;  %v8864_v7 = vld [vmem:[%s12651_s3 + $0x22c] ss:$16 sps:$4 sm:$0xff]  }
 0x25e   :  { %4313 = vmatprep.subr.bf16.mxu0 %v8713_v27  ;;  %4384 = vmatprep.subr.bf16.mxu1 %v8716_v53  ;;  %v8865_v27 = vld [vmem:[%s12651_s3 + $0x220] ss:$16 sps:$4 sm:$0xff]   ;;  %v8866_v53 = vld [vmem:[%s12651_s3 + $0x228] ss:$16 sps:$4 sm:$0xff]  }
 0x261   :  { %4314 = vmatpush1.bf16.msra.mxu0 %v8711_v48  ;;  %4385 = vmatpush1.bf16.msra.mxu1 %v8714_v12  ;;  %v8867_v48 = vld [vmem:[%s12651_s3 + $0x244] ss:$16 sps:$4 sm:$0xff]   ;;  %v8868_v12 = vld [vmem:[%s12651_s3 + $0x24c] ss:$16 sps:$4 sm:$0xff]  }
 0x262   :  { %4315 = vmatprep.subr.bf16.mxu0 %v8719_v59  ;;  %4386 = vmatprep.subr.bf16.mxu1 %v8722_v38  ;;  %v8869_v59 = vld [vmem:[%s12651_s3 + $0x240] ss:$16 sps:$4 sm:$0xff]   ;;  %v8870_v38 = vld [vmem:[%s12651_s3 + $0x248] ss:$16 sps:$4 sm:$0xff]  }
 0x265   :  { %4316 = vmatpush1.bf16.msra.mxu0 %v8717_v29  ;;  %4387 = vmatpush1.bf16.msra.mxu1 %v8720_v22  ;;  %v8871_v29 = vld [vmem:[%s12651_s3 + $0x264] ss:$16 sps:$4 sm:$0xff]   ;;  %v8872_v22 = vld [vmem:[%s12651_s3 + $0x26c] ss:$16 sps:$4 sm:$0xff]  }
 0x266   :  { %4317 = vmatprep.subr.bf16.mxu0 %v8725_v60  ;;  %4388 = vmatprep.subr.bf16.mxu1 %v8728_v37  ;;  %v11134_v60 = vcombine.high %v9179_v63, %v9179_v63  ;;  %v8873_v37 = vld [vmem:[%s12651_s3 + $0x260] ss:$16 sps:$4 sm:$0xff]  }
 0x269   :  { %4318 = vmatpush1.bf16.msra.mxu0 %v8723_v49  ;;  %4389 = vmatpush1.bf16.msra.mxu1 %v8726_v41  ;;  %v8874_v49 = vld [vmem:[%s12651_s3 + $0x268] ss:$16 sps:$4 sm:$0xff]   ;;  %v8875_v41 = vld [vmem:[%s12651_s3 + $0x284] ss:$16 sps:$4 sm:$0xff]  }
 0x26a   :  { %4319 = vmatprep.subr.bf16.mxu0 %v8731_v52  ;;  %4390 = vmatprep.subr.bf16.mxu1 %v8734_v6  ;;  %v8876_v52 = vld [vmem:[%s12651_s3 + $0x28c] ss:$16 sps:$4 sm:$0xff]   ;;  %v8877_v6 = vld [vmem:[%s12651_s3 + $0x280] ss:$16 sps:$4 sm:$0xff]  }
 0x26d   :  { %4320 = vmatpush1.bf16.msra.mxu0 %v8729_v57  ;;  %4391 = vmatpush1.bf16.msra.mxu1 %v8732_v35  ;;  %v8878_v57 = vld [vmem:[%s12651_s3 + $0x288] ss:$16 sps:$4 sm:$0xff]   ;;  %v8879_v35 = vld [vmem:[%s12651_s3 + $0x2a4] ss:$16 sps:$4 sm:$0xff]  }
 0x26e   :  { %4321 = vmatprep.subr.bf16.mxu0 %v8737_v58  ;;  %4392 = vmatprep.subr.bf16.mxu1 %v8740_v13  ;;  %v8880_v58 = vld [vmem:[%s12651_s3 + $0x2ac] ss:$16 sps:$4 sm:$0xff]   ;;  %v11166_v13 = vcombine.low %v9179_v63, %v9179_v63 }
 0x26f   :  { %v8884_v63 = vld [vmem:[%s12651_s3 + $0x2cc] ss:$16 sps:$4 sm:$0xff]  }
 0x271   :  { %4322 = vmatpush1.bf16.msra.mxu0 %v8735_v11  ;;  %4393 = vmatpush1.bf16.msra.mxu1 %v8738_v15  ;;  %v8881_v11 = vld [vmem:[%s12651_s3 + $0x2a0] ss:$16 sps:$4 sm:$0xff]   ;;  %v8882_v15 = vld [vmem:[%s12651_s3 + $0x2a8] ss:$16 sps:$4 sm:$0xff]  }
 0x272   :  { %4323 = vmatprep.subr.bf16.mxu0 %v8743_v51  ;;  %4394 = vmatprep.subr.bf16.mxu1 %v8746_v56  ;;  %v8883_v51 = vld [vmem:[%s12651_s3 + $0x2c4] ss:$16 sps:$4 sm:$0xff]   ;;  %v8885_v56 = vld [vmem:[%s12651_s3 + $0x2c0] ss:$16 sps:$4 sm:$0xff]  }
 0x275   :  { %4324 = vmatpush1.bf16.msra.mxu0 %v8741_v42  ;;  %4395 = vmatpush1.bf16.msra.mxu1 %v8744_v32  ;;  %v8886_v42 = vld [vmem:[%s12651_s3 + $0x2c8] ss:$16 sps:$4 sm:$0xff]   ;;  %v8887_v32 = vld [vmem:[%s12651_s3 + $0x2e4] ss:$16 sps:$4 sm:$0xff]  }
 0x276   :  { %4477 = vmatprep.subr.bf16.mxu0 %v8859_v54  ;;  %4548 = vmatprep.subr.bf16.mxu1 %v8860_v36  ;;  %v8888_v54 = vld [vmem:[%s12651_s3 + $0x2ec] ss:$16 sps:$4 sm:$0xff]   ;;  %v8890_v36 = vld [vmem:[%s12651_s3 + $0x2e8] ss:$16 sps:$4 sm:$0xff]  }
 0x278   :  { %4326 = vmatmul.mubr.bf16.vlgmr.msra.gmra.mrb[64].mxu0 %v10027_v23  ;;  %4397 = vmatmul.mubr.bf16.vlgmr.msra.gmra.mrb[64].mxu1 %v10027_v23 }
 0x279   :  { %4335 = vmatprep.mubr.bf16.mxu0 %v10055_v10  ;;  %4406 = vmatprep.mubr.bf16.mxu1 %v10055_v10 }
 0x27a   :  { %4478 = vmatpush1.bf16.msra.mxu0 %v8861_v45  ;;  %4549 = vmatpush1.bf16.msra.mxu1 %v8862_v26  ;;  %v8891_v45 = vld [vmem:[%s12651_s3 + $0x304] ss:$16 sps:$4 sm:$0xff]   ;;  %v8892_v26 = vld [vmem:[%s12651_s3 + $0x30c] ss:$16 sps:$4 sm:$0xff]  }
 0x27b   :  { %4479 = vmatprep.subr.bf16.mxu0 %v8863_v46  ;;  %4550 = vmatprep.subr.bf16.mxu1 %v8864_v7  ;;  %v8893_v46 = vld [vmem:[%s12651_s3 + $0x300] ss:$16 sps:$4 sm:$0xff]   ;;  %v8894_v7 = vld [vmem:[%s12651_s3 + $0x308] ss:$16 sps:$4 sm:$0xff]  }
 0x27e   :  { %4480 = vmatpush1.bf16.msra.mxu0 %v8865_v27  ;;  %4551 = vmatpush1.bf16.msra.mxu1 %v8866_v53  ;;  %v8895_v27 = vld [vmem:[%s12651_s3 + $0x324] ss:$16 sps:$4 sm:$0xff]   ;;  %v8896_v53 = vld [vmem:[%s12651_s3 + $0x32c] ss:$16 sps:$4 sm:$0xff]  }
 0x27f   :  { %4481 = vmatprep.subr.bf16.mxu0 %v8867_v48  ;;  %4552 = vmatprep.subr.bf16.mxu1 %v8868_v12  ;;  %v8897_v48 = vld [vmem:[%s12651_s3 + $0x320] ss:$16 sps:$4 sm:$0xff]   ;;  %v8898_v12 = vld [vmem:[%s12651_s3 + $0x328] ss:$16 sps:$4 sm:$0xff]  }
 0x280   :  { %4336 = vmatmul.mubr.bf16.gmra.mrb[68].mxu0 %v10051_v8  ;;  %4407 = vmatmul.mubr.bf16.gmra.mrb[68].mxu1 %v10051_v8 }
 0x281   :  { %4345 = vmatprep.mubr.bf16.mxu0 %v10083_v62  ;;  %4416 = vmatprep.mubr.bf16.mxu1 %v10083_v62 }
 0x282   :  { %4482 = vmatpush1.bf16.msra.mxu0 %v8869_v59  ;;  %4553 = vmatpush1.bf16.msra.mxu1 %v8870_v38  ;;  %v8899_v59 = vld [vmem:[%s12651_s3 + $0x344] ss:$16 sps:$4 sm:$0xff]   ;;  %v8900_v38 = vld [vmem:[%s12651_s3 + $0x34c] ss:$16 sps:$4 sm:$0xff]  }
 0x283   :  { %4483 = vmatprep.subr.bf16.mxu0 %v8871_v29  ;;  %4554 = vmatprep.subr.bf16.mxu1 %v8872_v22  ;;  %v8901_v29 = vld [vmem:[%s12651_s3 + $0x340] ss:$16 sps:$4 sm:$0xff]   ;;  %v8902_v22 = vld [vmem:[%s12651_s3 + $0x348] ss:$16 sps:$4 sm:$0xff]  }
 0x286   :  { %4484 = vmatpush1.bf16.msra.mxu0 %v8873_v37  ;;  %4555 = vmatpush1.bf16.msra.mxu1 %v8874_v49  ;;  %v8903_v37 = vld [vmem:[%s12651_s3 + $0x364] ss:$16 sps:$4 sm:$0xff]   ;;  %v8904_v49 = vld [vmem:[%s12651_s3 + $0x36c] ss:$16 sps:$4 sm:$0xff]  }
 0x287   :  { %4485 = vmatprep.subr.bf16.mxu0 %v8875_v41  ;;  %4556 = vmatprep.subr.bf16.mxu1 %v8876_v52  ;;  %v8905_v41 = vld [vmem:[%s12651_s3 + $0x360] ss:$16 sps:$4 sm:$0xff]   ;;  %v8906_v52 = vld [vmem:[%s12651_s3 + $0x368] ss:$16 sps:$4 sm:$0xff]  }
 0x288   :  { %4346 = vmatmul.mubr.bf16.gmra.mrb[72].mxu0 %v10079_v61  ;;  %4417 = vmatmul.mubr.bf16.gmra.mrb[72].mxu1 %v10079_v61 }
 0x289   :  { %4355 = vmatprep.mubr.bf16.mxu0 %v11134_v60  ;;  %4426 = vmatprep.mubr.bf16.mxu1 %v11134_v60 }
 0x28a   :  { %4486 = vmatpush1.bf16.msra.mxu0 %v8877_v6  ;;  %4557 = vmatpush1.bf16.msra.mxu1 %v8878_v57  ;;  %v8907_v6 = vld [vmem:[%s12651_s3 + $0x384] ss:$16 sps:$4 sm:$0xff]   ;;  %v8908_v57 = vld [vmem:[%s12651_s3 + $0x38c] ss:$16 sps:$4 sm:$0xff]  }
 0x28b   :  { %4487 = vmatprep.subr.bf16.mxu0 %v8879_v35  ;;  %4558 = vmatprep.subr.bf16.mxu1 %v8880_v58  ;;  %v8909_v35 = vld [vmem:[%s12651_s3 + $0x380] ss:$16 sps:$4 sm:$0xff]   ;;  %v8910_v58 = vld [vmem:[%s12651_s3 + $0x388] ss:$16 sps:$4 sm:$0xff]  }
 0x28e   :  { %4488 = vmatpush1.bf16.msra.mxu0 %v8881_v11  ;;  %4559 = vmatpush1.bf16.msra.mxu1 %v8882_v15  ;;  %v8911_v11 = vld [vmem:[%s12651_s3 + $0x3a4] ss:$16 sps:$4 sm:$0xff]   ;;  %v8912_v15 = vld [vmem:[%s12651_s3 + $0x3ac] ss:$16 sps:$4 sm:$0xff]  }
 0x28f   :  { %4489 = vmatprep.subr.bf16.mxu0 %v8883_v51  ;;  %4560 = vmatprep.subr.bf16.mxu1 %v8884_v63  ;;  %v8913_v51 = vld [vmem:[%s12651_s3 + $0x3a0] ss:$16 sps:$4 sm:$0xff]   ;;  %v8914_v63 = vld [vmem:[%s12651_s3 + $0x3a8] ss:$16 sps:$4 sm:$0xff]  }
 0x290   :  { %4356 = vmatmul.mubr.bf16.gmra.mrb[76].mxu0 %v11166_v13  ;;  %4427 = vmatmul.mubr.bf16.gmra.mrb[76].mxu1 %v11166_v13 }
 0x291   :  { %4509 = vmatprep.mubr.bf16.mxu0 %v10012_v14  ;;  %4580 = vmatprep.mubr.bf16.mxu1 %v10012_v14  ;;  %v8889_v14 = vld [vmem:[%s12651_s3 + $0x2e0] ss:$16 sps:$4 sm:$0xff]  }
 0x292   :  { %4490 = vmatpush1.bf16.msra.mxu0 %v8885_v56  ;;  %4561 = vmatpush1.bf16.msra.mxu1 %v8886_v42  ;;  %v8915_v56 = vld [vmem:[%s12651_s3 + $0x3c4] ss:$16 sps:$4 sm:$0xff]   ;;  %v8916_v42 = vld [vmem:[%s12651_s3 + $0x3cc] ss:$16 sps:$4 sm:$0xff]  }
 0x293   :  { %4491 = vmatprep.subr.bf16.mxu0 %v8887_v32  ;;  %4562 = vmatprep.subr.bf16.mxu1 %v8888_v54  ;;  %v8917_v32 = vld [vmem:[%s12651_s3 + $0x3c0] ss:$16 sps:$4 sm:$0xff]   ;;  %v8918_v54 = vld [vmem:[%s12651_s3 + $0x3c8] ss:$16 sps:$4 sm:$0xff]  }
 0x296   :  { %4492 = vmatpush1.bf16.msra.mxu0 %v8889_v14  ;;  %4563 = vmatpush1.bf16.msra.mxu1 %v8890_v36  ;;  %v8919_v14 = vld [vmem:[%s12651_s3 + $0x3e4] ss:$16 sps:$4 sm:$0xff]   ;;  %v8920_v36 = vld [vmem:[%s12651_s3 + $0x3ec] ss:$16 sps:$4 sm:$0xff]  }
 0x297   :  { %4493 = vmatprep.subr.bf16.mxu0 %v8891_v45  ;;  %4564 = vmatprep.subr.bf16.mxu1 %v8892_v26  ;;  %v8921_v45 = vld [vmem:[%s12651_s3 + $0x3e0] ss:$16 sps:$4 sm:$0xff]   ;;  %v8922_v26 = vld [vmem:[%s12651_s3 + $0x3e8] ss:$16 sps:$4 sm:$0xff]  }
 0x29a   :  { %4494 = vmatpush1.bf16.msra.mxu0 %v8893_v46  ;;  %4565 = vmatpush1.bf16.msra.mxu1 %v8894_v7  ;;  %v8923_v46 = vld [vmem:[%s12651_s3 + $0x4] ss:$16 sps:$4 sm:$0xff]   ;;  %v8924_v7 = vld [vmem:[%s12651_s3 + $0xc] ss:$16 sps:$4 sm:$0xff]  }
 0x29b   :  { %4495 = vmatprep.subr.bf16.mxu0 %v8895_v27  ;;  %4566 = vmatprep.subr.bf16.mxu1 %v8896_v53  ;;  %v8925_v27 = vld [vmem:[%s12651_s3] ss:$16 sps:$4 sm:$0xff]   ;;  %v8926_v53 = vld [vmem:[%s12651_s3 + $0x8] ss:$16 sps:$4 sm:$0xff]  }
 0x29e   :  { %4496 = vmatpush1.bf16.msra.mxu0 %v8897_v48  ;;  %4567 = vmatpush1.bf16.msra.mxu1 %v8898_v12  ;;  %v8927_v48 = vld [vmem:[%s12651_s3 + $0x24] ss:$16 sps:$4 sm:$0xff]   ;;  %v8930_v12 = vld [vmem:[%s12651_s3 + $0x28] ss:$16 sps:$4 sm:$0xff]  }
 0x29f   :  { %4497 = vmatprep.subr.bf16.mxu0 %v8899_v59  ;;  %4568 = vmatprep.subr.bf16.mxu1 %v8900_v38  ;;  %v8931_v59 = vld [vmem:[%s12651_s3 + $0x44] ss:$16 sps:$4 sm:$0xff]   ;;  %v8932_v38 = vld [vmem:[%s12651_s3 + $0x4c] ss:$16 sps:$4 sm:$0xff]  }
 0x2a2   :  { %4498 = vmatpush1.bf16.msra.mxu0 %v8901_v29  ;;  %4569 = vmatpush1.bf16.msra.mxu1 %v8902_v22  ;;  %v8933_v29 = vld [vmem:[%s12651_s3 + $0x40] ss:$16 sps:$4 sm:$0xff]   ;;  %v8934_v22 = vld [vmem:[%s12651_s3 + $0x48] ss:$16 sps:$4 sm:$0xff]  }
 0x2a3   :  { %4499 = vmatprep.subr.bf16.mxu0 %v8903_v37  ;;  %4570 = vmatprep.subr.bf16.mxu1 %v8904_v49  ;;  %v8935_v37 = vld [vmem:[%s12651_s3 + $0x64] ss:$16 sps:$4 sm:$0xff]   ;;  %v8938_v49 = vld [vmem:[%s12651_s3 + $0x68] ss:$16 sps:$4 sm:$0xff]  }
 0x2a6   :  { %4500 = vmatpush1.bf16.msra.mxu0 %v8905_v41  ;;  %4571 = vmatpush1.bf16.msra.mxu1 %v8906_v52  ;;  %v8939_v41 = vld [vmem:[%s12651_s3 + $0x84] ss:$16 sps:$4 sm:$0xff]   ;;  %v8940_v52 = vld [vmem:[%s12651_s3 + $0x8c] ss:$16 sps:$4 sm:$0xff]  }
 0x2a7   :  { %4501 = vmatprep.subr.bf16.mxu0 %v8907_v6  ;;  %4572 = vmatprep.subr.bf16.mxu1 %v8908_v57  ;;  %v8941_v6 = vld [vmem:[%s12651_s3 + $0x80] ss:$16 sps:$4 sm:$0xff]   ;;  %v8942_v57 = vld [vmem:[%s12651_s3 + $0x88] ss:$16 sps:$4 sm:$0xff]  }
 0x2aa   :  { %4502 = vmatpush1.bf16.msra.mxu0 %v8909_v35  ;;  %4573 = vmatpush1.bf16.msra.mxu1 %v8910_v58  ;;  %v8943_v35 = vld [vmem:[%s12651_s3 + $0xa4] ss:$16 sps:$4 sm:$0xff]   ;;  %v8946_v58 = vld [vmem:[%s12651_s3 + $0xa8] ss:$16 sps:$4 sm:$0xff]  }
 0x2ab   :  { %4503 = vmatprep.subr.bf16.mxu0 %v8911_v11  ;;  %4574 = vmatprep.subr.bf16.mxu1 %v8912_v15  ;;  %v8947_v11 = vld [vmem:[%s12651_s3 + $0xc4] ss:$16 sps:$4 sm:$0xff]   ;;  %v8948_v15 = vld [vmem:[%s12651_s3 + $0xcc] ss:$16 sps:$4 sm:$0xff]  }
 0x2ae   :  { %4504 = vmatpush1.bf16.msra.mxu0 %v8913_v51  ;;  %4575 = vmatpush1.bf16.msra.mxu1 %v8914_v63  ;;  %v8949_v51 = vld [vmem:[%s12651_s3 + $0xc0] ss:$16 sps:$4 sm:$0xff]   ;;  %v8950_v63 = vld [vmem:[%s12651_s3 + $0xc8] ss:$16 sps:$4 sm:$0xff]  }
 0x2af   :  { %4505 = vmatprep.subr.bf16.mxu0 %v8915_v56  ;;  %4576 = vmatprep.subr.bf16.mxu1 %v8916_v42  ;;  %v8951_v56 = vld [vmem:[%s12651_s3 + $0xe4] ss:$16 sps:$4 sm:$0xff]   ;;  %v8954_v42 = vld [vmem:[%s12651_s3 + $0xe8] ss:$16 sps:$4 sm:$0xff]  }
 0x2b2   :  { %4506 = vmatpush1.bf16.msra.mxu0 %v8917_v32  ;;  %4577 = vmatpush1.bf16.msra.mxu1 %v8918_v54  ;;  %v8955_v32 = vld [vmem:[%s12651_s3 + $0x104] ss:$16 sps:$4 sm:$0xff]   ;;  %v8956_v54 = vld [vmem:[%s12651_s3 + $0x10c] ss:$16 sps:$4 sm:$0xff]  }
 0x2b3   :  { %4507 = vmatprep.subr.bf16.mxu0 %v8919_v14  ;;  %4578 = vmatprep.subr.bf16.mxu1 %v8920_v36  ;;  %v8957_v14 = vld [vmem:[%s12651_s3 + $0x100] ss:$16 sps:$4 sm:$0xff]   ;;  %v8958_v36 = vld [vmem:[%s12651_s3 + $0x108] ss:$16 sps:$4 sm:$0xff]  }
 0x2b6   :  { %4508 = vmatpush1.bf16.msra.mxu0 %v8921_v45  ;;  %4579 = vmatpush1.bf16.msra.mxu1 %v8922_v26  ;;  %v8959_v45 = vld [vmem:[%s12651_s3 + $0x124] ss:$16 sps:$4 sm:$0xff]   ;;  %v8960_v26 = vld [vmem:[%s12651_s3 + $0x12c] ss:$16 sps:$4 sm:$0xff]  }
 0x2b7   :  { %4619 = vmatprep.subr.bf16.mxu0 %v8923_v46  ;;  %4690 = vmatprep.subr.bf16.mxu1 %v8924_v7  ;;  %v8961_v46 = vld [vmem:[%s12651_s3 + $0x120] ss:$16 sps:$4 sm:$0xff]   ;;  %v8962_v7 = vld [vmem:[%s12651_s3 + $0x128] ss:$16 sps:$4 sm:$0xff]  }
 0x2b9   :  { %4510 = vmatmul.mubr.bf16.vlgmr.msra.gmra.mrb[80].mxu0 %v10007_v9  ;;  %4581 = vmatmul.mubr.bf16.vlgmr.msra.gmra.mrb[80].mxu1 %v10007_v9  ;;  %v8928_v9 = vld [vmem:[%s12651_s3 + $0x2c] ss:$16 sps:$4 sm:$0xff]  }
 0x2ba   :  { %4519 = vmatprep.mubr.bf16.mxu0 %v10036_v19  ;;  %4590 = vmatprep.mubr.bf16.mxu1 %v10036_v19  ;;  %v8929_v19 = vld [vmem:[%s12651_s3 + $0x20] ss:$16 sps:$4 sm:$0xff]  }
 0x2bb   :  { %4620 = vmatpush1.bf16.msra.mxu0 %v8925_v27  ;;  %4691 = vmatpush1.bf16.msra.mxu1 %v8926_v53  ;;  %v8963_v27 = vld [vmem:[%s12651_s3 + $0x144] ss:$16 sps:$4 sm:$0xff]   ;;  %v8964_v53 = vld [vmem:[%s12651_s3 + $0x14c] ss:$16 sps:$4 sm:$0xff]  }
 0x2bc   :  { %4621 = vmatprep.subr.bf16.mxu0 %v8927_v48  ;;  %4692 = vmatprep.subr.bf16.mxu1 %v8928_v9  ;;  %v8965_v48 = vld [vmem:[%s12651_s3 + $0x140] ss:$16 sps:$4 sm:$0xff]   ;;  %v8966_v9 = vld [vmem:[%s12651_s3 + $0x148] ss:$16 sps:$4 sm:$0xff]  }
 0x2bf   :  { %4622 = vmatpush1.bf16.msra.mxu0 %v8929_v19  ;;  %4693 = vmatpush1.bf16.msra.mxu1 %v8930_v12  ;;  %v8967_v19 = vld [vmem:[%s12651_s3 + $0x164] ss:$16 sps:$4 sm:$0xff]   ;;  %v8968_v12 = vld [vmem:[%s12651_s3 + $0x16c] ss:$16 sps:$4 sm:$0xff]  }
 0x2c0   :  { %4623 = vmatprep.subr.bf16.mxu0 %v8931_v59  ;;  %4694 = vmatprep.subr.bf16.mxu1 %v8932_v38  ;;  %v8969_v59 = vld [vmem:[%s12651_s3 + $0x160] ss:$16 sps:$4 sm:$0xff]   ;;  %v8970_v38 = vld [vmem:[%s12651_s3 + $0x168] ss:$16 sps:$4 sm:$0xff]  }
 0x2c1   :  { %4520 = vmatmul.mubr.bf16.gmra.mrb[84].mxu0 %v10031_v47  ;;  %4591 = vmatmul.mubr.bf16.gmra.mrb[84].mxu1 %v10031_v47  ;;  %v8936_v47 = vld [vmem:[%s12651_s3 + $0x6c] ss:$16 sps:$4 sm:$0xff]  }
 0x2c2   :  { %4529 = vmatprep.mubr.bf16.mxu0 %v10069_v20  ;;  %4600 = vmatprep.mubr.bf16.mxu1 %v10069_v20  ;;  %v8937_v20 = vld [vmem:[%s12651_s3 + $0x60] ss:$16 sps:$4 sm:$0xff]  }
 0x2c3   :  { %4624 = vmatpush1.bf16.msra.mxu0 %v8933_v29  ;;  %4695 = vmatpush1.bf16.msra.mxu1 %v8934_v22  ;;  %v8971_v29 = vld [vmem:[%s12651_s3 + $0x184] ss:$16 sps:$4 sm:$0xff]   ;;  %v8972_v22 = vld [vmem:[%s12651_s3 + $0x18c] ss:$16 sps:$4 sm:$0xff]  }
 0x2c4   :  { %4625 = vmatprep.subr.bf16.mxu0 %v8935_v37  ;;  %4696 = vmatprep.subr.bf16.mxu1 %v8936_v47  ;;  %v8973_v37 = vld [vmem:[%s12651_s3 + $0x180] ss:$16 sps:$4 sm:$0xff]   ;;  %v8974_v47 = vld [vmem:[%s12651_s3 + $0x188] ss:$16 sps:$4 sm:$0xff]  }
 0x2c7   :  { %4626 = vmatpush1.bf16.msra.mxu0 %v8937_v20  ;;  %4697 = vmatpush1.bf16.msra.mxu1 %v8938_v49  ;;  %v8975_v20 = vld [vmem:[%s12651_s3 + $0x1a4] ss:$16 sps:$4 sm:$0xff]   ;;  %v8976_v49 = vld [vmem:[%s12651_s3 + $0x1ac] ss:$16 sps:$4 sm:$0xff]  }
 0x2c8   :  { %4627 = vmatprep.subr.bf16.mxu0 %v8939_v41  ;;  %4698 = vmatprep.subr.bf16.mxu1 %v8940_v52  ;;  %v8977_v41 = vld [vmem:[%s12651_s3 + $0x1a0] ss:$16 sps:$4 sm:$0xff]   ;;  %v8978_v52 = vld [vmem:[%s12651_s3 + $0x1a8] ss:$16 sps:$4 sm:$0xff]  }
 0x2c9   :  { %4530 = vmatmul.mubr.bf16.gmra.mrb[88].mxu0 %v10063_v17  ;;  %4601 = vmatmul.mubr.bf16.gmra.mrb[88].mxu1 %v10063_v17  ;;  %v8944_v17 = vld [vmem:[%s12651_s3 + $0xac] ss:$16 sps:$4 sm:$0xff]  }
 0x2ca   :  { %4539 = vmatprep.mubr.bf16.mxu0 %v10720_v39  ;;  %4610 = vmatprep.mubr.bf16.mxu1 %v10720_v39  ;;  %v8945_v39 = vld [vmem:[%s12651_s3 + $0xa0] ss:$16 sps:$4 sm:$0xff]  }
 0x2cb   :  { %4628 = vmatpush1.bf16.msra.mxu0 %v8941_v6  ;;  %4699 = vmatpush1.bf16.msra.mxu1 %v8942_v57  ;;  %v8979_v6 = vld [vmem:[%s12651_s3 + $0x1c4] ss:$16 sps:$4 sm:$0xff]   ;;  %v8980_v57 = vld [vmem:[%s12651_s3 + $0x1cc] ss:$16 sps:$4 sm:$0xff]  }
 0x2cc   :  { %4629 = vmatprep.subr.bf16.mxu0 %v8943_v35  ;;  %4700 = vmatprep.subr.bf16.mxu1 %v8944_v17  ;;  %v8981_v35 = vld [vmem:[%s12651_s3 + $0x1c0] ss:$16 sps:$4 sm:$0xff]   ;;  %v8982_v17 = vld [vmem:[%s12651_s3 + $0x1c8] ss:$16 sps:$4 sm:$0xff]  }
 0x2cf   :  { %4630 = vmatpush1.bf16.msra.mxu0 %v8945_v39  ;;  %4701 = vmatpush1.bf16.msra.mxu1 %v8946_v58  ;;  %v8983_v39 = vld [vmem:[%s12651_s3 + $0x1e4] ss:$16 sps:$4 sm:$0xff]   ;;  %v8984_v58 = vld [vmem:[%s12651_s3 + $0x1ec] ss:$16 sps:$4 sm:$0xff]  }
 0x2d0   :  { %4631 = vmatprep.subr.bf16.mxu0 %v8947_v11  ;;  %4702 = vmatprep.subr.bf16.mxu1 %v8948_v15  ;;  %v8985_v11 = vld [vmem:[%s12651_s3 + $0x1e0] ss:$16 sps:$4 sm:$0xff]   ;;  %v8986_v15 = vld [vmem:[%s12651_s3 + $0x1e8] ss:$16 sps:$4 sm:$0xff]  }
 0x2d1   :  { %4540 = vmatmul.mubr.bf16.gmra.mrb[92].mxu0 %v10746_v28  ;;  %4611 = vmatmul.mubr.bf16.gmra.mrb[92].mxu1 %v10746_v28  ;;  %v8952_v28 = vld [vmem:[%s12651_s3 + $0xec] ss:$16 sps:$4 sm:$0xff]  }
 0x2d2   :  { %4651 = vmatprep.mubr.bf16.mxu0 %v10176_v30  ;;  %4722 = vmatprep.mubr.bf16.mxu1 %v10176_v30  ;;  %v8953_v30 = vld [vmem:[%s12651_s3 + $0xe0] ss:$16 sps:$4 sm:$0xff]  }
 0x2d3   :  { %4632 = vmatpush1.bf16.msra.mxu0 %v8949_v51  ;;  %4703 = vmatpush1.bf16.msra.mxu1 %v8950_v63  ;;  %v8987_v51 = vld [vmem:[%s12651_s3 + $0x404] ss:$16 sps:$4 sm:$0xff]   ;;  %v8988_v63 = vld [vmem:[%s12651_s3 + $0x40c] ss:$16 sps:$4 sm:$0xff]  }
 0x2d4   :  { %4633 = vmatprep.subr.bf16.mxu0 %v8951_v56  ;;  %4704 = vmatprep.subr.bf16.mxu1 %v8952_v28  ;;  %v8989_v56 = vld [vmem:[%s12651_s3 + $0x400] ss:$16 sps:$4 sm:$0xff]   ;;  %v8990_v28 = vld [vmem:[%s12651_s3 + $0x408] ss:$16 sps:$4 sm:$0xff]  }
 0x2d7   :  { %4634 = vmatpush1.bf16.msra.mxu0 %v8953_v30  ;;  %4705 = vmatpush1.bf16.msra.mxu1 %v8954_v42  ;;  %v8991_v30 = vld [vmem:[%s12651_s3 + $0x424] ss:$16 sps:$4 sm:$0xff]   ;;  %v8993_v42 = vld [vmem:[%s12651_s3 + $0x420] ss:$16 sps:$4 sm:$0xff]  }
 0x2d8   :  { %4635 = vmatprep.subr.bf16.mxu0 %v8955_v32  ;;  %4706 = vmatprep.subr.bf16.mxu1 %v8956_v54  ;;  %v8994_v32 = vld [vmem:[%s12651_s3 + $0x428] ss:$16 sps:$4 sm:$0xff]   ;;  %v8995_v54 = vld [vmem:[%s12651_s3 + $0x444] ss:$16 sps:$4 sm:$0xff]  }
 0x2db   :  { %4636 = vmatpush1.bf16.msra.mxu0 %v8957_v14  ;;  %4707 = vmatpush1.bf16.msra.mxu1 %v8958_v36  ;;  %v8996_v14 = vld [vmem:[%s12651_s3 + $0x44c] ss:$16 sps:$4 sm:$0xff]   ;;  %v8997_v36 = vld [vmem:[%s12651_s3 + $0x440] ss:$16 sps:$4 sm:$0xff]  }
 0x2dc   :  { %4637 = vmatprep.subr.bf16.mxu0 %v8959_v45  ;;  %4708 = vmatprep.subr.bf16.mxu1 %v8960_v26  ;;  %v8998_v45 = vld [vmem:[%s12651_s3 + $0x448] ss:$16 sps:$4 sm:$0xff]   ;;  %v8999_v26 = vld [vmem:[%s12651_s3 + $0x464] ss:$16 sps:$4 sm:$0xff]  }
 0x2df   :  { %4638 = vmatpush1.bf16.msra.mxu0 %v8961_v46  ;;  %4709 = vmatpush1.bf16.msra.mxu1 %v8962_v7  ;;  %v9000_v46 = vld [vmem:[%s12651_s3 + $0x46c] ss:$16 sps:$4 sm:$0xff]   ;;  %v9001_v7 = vld [vmem:[%s12651_s3 + $0x460] ss:$16 sps:$4 sm:$0xff]  }
 0x2e0   :  { %4639 = vmatprep.subr.bf16.mxu0 %v8963_v27  ;;  %4710 = vmatprep.subr.bf16.mxu1 %v8964_v53  ;;  %v9002_v27 = vld [vmem:[%s12651_s3 + $0x468] ss:$16 sps:$4 sm:$0xff]   ;;  %v9003_v53 = vld [vmem:[%s12651_s3 + $0x484] ss:$16 sps:$4 sm:$0xff]  }
 0x2e3   :  { %4640 = vmatpush1.bf16.msra.mxu0 %v8965_v48  ;;  %4711 = vmatpush1.bf16.msra.mxu1 %v8966_v9  ;;  %v9004_v48 = vld [vmem:[%s12651_s3 + $0x48c] ss:$16 sps:$4 sm:$0xff]   ;;  %v9005_v9 = vld [vmem:[%s12651_s3 + $0x480] ss:$16 sps:$4 sm:$0xff]  }
 0x2e4   :  { %4641 = vmatprep.subr.bf16.mxu0 %v8967_v19  ;;  %4712 = vmatprep.subr.bf16.mxu1 %v8968_v12  ;;  %v9006_v19 = vld [vmem:[%s12651_s3 + $0x488] ss:$16 sps:$4 sm:$0xff]   ;;  %v9007_v12 = vld [vmem:[%s12651_s3 + $0x4a4] ss:$16 sps:$4 sm:$0xff]  }
 0x2e7   :  { %4642 = vmatpush1.bf16.msra.mxu0 %v8969_v59  ;;  %4713 = vmatpush1.bf16.msra.mxu1 %v8970_v38  ;;  %v9008_v59 = vld [vmem:[%s12651_s3 + $0x4ac] ss:$16 sps:$4 sm:$0xff]   ;;  %v9010_v38 = vld [vmem:[%s12651_s3 + $0x4a8] ss:$16 sps:$4 sm:$0xff]  }
 0x2e8   :  { %4643 = vmatprep.subr.bf16.mxu0 %v8971_v29  ;;  %4714 = vmatprep.subr.bf16.mxu1 %v8972_v22  ;;  %v9011_v29 = vld [vmem:[%s12651_s3 + $0x4c4] ss:$16 sps:$4 sm:$0xff]   ;;  %v9012_v22 = vld [vmem:[%s12651_s3 + $0x4cc] ss:$16 sps:$4 sm:$0xff]  }
 0x2eb   :  { %4644 = vmatpush1.bf16.msra.mxu0 %v8973_v37  ;;  %4715 = vmatpush1.bf16.msra.mxu1 %v8974_v47  ;;  %v9013_v37 = vld [vmem:[%s12651_s3 + $0x4c0] ss:$16 sps:$4 sm:$0xff]   ;;  %v9014_v47 = vld [vmem:[%s12651_s3 + $0x4c8] ss:$16 sps:$4 sm:$0xff]  }
 0x2ec   :  { %4645 = vmatprep.subr.bf16.mxu0 %v8975_v20  ;;  %4716 = vmatprep.subr.bf16.mxu1 %v8976_v49  ;;  %v9015_v20 = vld [vmem:[%s12651_s3 + $0x4e4] ss:$16 sps:$4 sm:$0xff]   ;;  %v9018_v49 = vld [vmem:[%s12651_s3 + $0x4e8] ss:$16 sps:$4 sm:$0xff]  }
 0x2ef   :  { %4646 = vmatpush1.bf16.msra.mxu0 %v8977_v41  ;;  %4717 = vmatpush1.bf16.msra.mxu1 %v8978_v52  ;;  %v9019_v41 = vld [vmem:[%s12651_s3 + $0x504] ss:$16 sps:$4 sm:$0xff]   ;;  %v9020_v52 = vld [vmem:[%s12651_s3 + $0x50c] ss:$16 sps:$4 sm:$0xff]  }
 0x2f0   :  { %4647 = vmatprep.subr.bf16.mxu0 %v8979_v6  ;;  %4718 = vmatprep.subr.bf16.mxu1 %v8980_v57  ;;  %v9021_v6 = vld [vmem:[%s12651_s3 + $0x500] ss:$16 sps:$4 sm:$0xff]   ;;  %v9022_v57 = vld [vmem:[%s12651_s3 + $0x508] ss:$16 sps:$4 sm:$0xff]  }
 0x2f3   :  { %4648 = vmatpush1.bf16.msra.mxu0 %v8981_v35  ;;  %4719 = vmatpush1.bf16.msra.mxu1 %v8982_v17  ;;  %v9023_v35 = vld [vmem:[%s12651_s3 + $0x524] ss:$16 sps:$4 sm:$0xff]   ;;  %v9024_v17 = vld [vmem:[%s12651_s3 + $0x52c] ss:$16 sps:$4 sm:$0xff]  }
 0x2f4   :  { %4649 = vmatprep.subr.bf16.mxu0 %v8983_v39  ;;  %4720 = vmatprep.subr.bf16.mxu1 %v8984_v58  ;;  %v9025_v39 = vld [vmem:[%s12651_s3 + $0x520] ss:$16 sps:$4 sm:$0xff]   ;;  %v9026_v58 = vld [vmem:[%s12651_s3 + $0x528] ss:$16 sps:$4 sm:$0xff]  }
 0x2f7   :  { %4650 = vmatpush1.bf16.msra.mxu0 %v8985_v11  ;;  %4721 = vmatpush1.bf16.msra.mxu1 %v8986_v15  ;;  %v9027_v11 = vld [vmem:[%s12651_s3 + $0x544] ss:$16 sps:$4 sm:$0xff]   ;;  %v9028_v15 = vld [vmem:[%s12651_s3 + $0x54c] ss:$16 sps:$4 sm:$0xff]  }
 0x2f8   :  { %4761 = vmatprep.subr.bf16.mxu0 %v8987_v51  ;;  %4832 = vmatprep.subr.bf16.mxu1 %v8988_v63  ;;  %v9029_v51 = vld [vmem:[%s12651_s3 + $0x540] ss:$16 sps:$4 sm:$0xff]   ;;  %v9030_v63 = vld [vmem:[%s12651_s3 + $0x548] ss:$16 sps:$4 sm:$0xff]  }
 0x2fa   :  { %4652 = vmatmul.mubr.bf16.vlgmr.msra.gmra.mrb[80].mxu0 %v10164_v21  ;;  %4723 = vmatmul.mubr.bf16.vlgmr.msra.gmra.mrb[80].mxu1 %v10164_v21  ;;  %v8992_v21 = vld [vmem:[%s12651_s3 + $0x42c] ss:$16 sps:$4 sm:$0xff]  }
 0x2fb   :  { %4661 = vmatprep.mubr.bf16.mxu0 %v10211_v24  ;;  %4732 = vmatprep.mubr.bf16.mxu1 %v10211_v24 }
 0x2fc   :  { %4762 = vmatpush1.bf16.msra.mxu0 %v8989_v56  ;;  %4833 = vmatpush1.bf16.msra.mxu1 %v8990_v28  ;;  %v9031_v56 = vld [vmem:[%s12651_s3 + $0x564] ss:$16 sps:$4 sm:$0xff]   ;;  %v9032_v28 = vld [vmem:[%s12651_s3 + $0x56c] ss:$16 sps:$4 sm:$0xff]  }
 0x2fd   :  { %4763 = vmatprep.subr.bf16.mxu0 %v8991_v30  ;;  %4834 = vmatprep.subr.bf16.mxu1 %v8992_v21  ;;  %v9033_v30 = vld [vmem:[%s12651_s3 + $0x560] ss:$16 sps:$4 sm:$0xff]   ;;  %v9034_v21 = vld [vmem:[%s12651_s3 + $0x568] ss:$16 sps:$4 sm:$0xff]  }
 0x300   :  { %4764 = vmatpush1.bf16.msra.mxu0 %v8993_v42  ;;  %4835 = vmatpush1.bf16.msra.mxu1 %v8994_v32  ;;  %v9035_v42 = vld [vmem:[%s12651_s3 + $0x584] ss:$16 sps:$4 sm:$0xff]   ;;  %v9036_v32 = vld [vmem:[%s12651_s3 + $0x58c] ss:$16 sps:$4 sm:$0xff]  }
 0x301   :  { %4765 = vmatprep.subr.bf16.mxu0 %v8995_v54  ;;  %4836 = vmatprep.subr.bf16.mxu1 %v8996_v14  ;;  %v9037_v54 = vld [vmem:[%s12651_s3 + $0x580] ss:$16 sps:$4 sm:$0xff]   ;;  %v9038_v14 = vld [vmem:[%s12651_s3 + $0x588] ss:$16 sps:$4 sm:$0xff]  }
 0x302   :  { %4662 = vmatmul.mubr.bf16.gmra.mrb[84].mxu0 %v10206_v4  ;;  %4733 = vmatmul.mubr.bf16.gmra.mrb[84].mxu1 %v10206_v4 }
 0x303   :  { %4671 = vmatprep.mubr.bf16.mxu0 %v10260_v18  ;;  %4742 = vmatprep.mubr.bf16.mxu1 %v10260_v18 }
 0x304   :  { %4766 = vmatpush1.bf16.msra.mxu0 %v8997_v36  ;;  %4837 = vmatpush1.bf16.msra.mxu1 %v8998_v45  ;;  %v9039_v36 = vld [vmem:[%s12651_s3 + $0x5a4] ss:$16 sps:$4 sm:$0xff]   ;;  %v9040_v45 = vld [vmem:[%s12651_s3 + $0x5ac] ss:$16 sps:$4 sm:$0xff]  }
 0x305   :  { %4767 = vmatprep.subr.bf16.mxu0 %v8999_v26  ;;  %4838 = vmatprep.subr.bf16.mxu1 %v9000_v46  ;;  %v9041_v26 = vld [vmem:[%s12651_s3 + $0x5a0] ss:$16 sps:$4 sm:$0xff]   ;;  %v9042_v46 = vld [vmem:[%s12651_s3 + $0x5a8] ss:$16 sps:$4 sm:$0xff]  }
 0x308   :  { %4768 = vmatpush1.bf16.msra.mxu0 %v9001_v7  ;;  %4839 = vmatpush1.bf16.msra.mxu1 %v9002_v27  ;;  %v9043_v7 = vld [vmem:[%s12651_s3 + $0x5c4] ss:$16 sps:$4 sm:$0xff]   ;;  %v9044_v27 = vld [vmem:[%s12651_s3 + $0x5cc] ss:$16 sps:$4 sm:$0xff]  }
 0x309   :  { %4769 = vmatprep.subr.bf16.mxu0 %v9003_v53  ;;  %4840 = vmatprep.subr.bf16.mxu1 %v9004_v48  ;;  %v9045_v53 = vld [vmem:[%s12651_s3 + $0x5c0] ss:$16 sps:$4 sm:$0xff]   ;;  %v9046_v48 = vld [vmem:[%s12651_s3 + $0x5c8] ss:$16 sps:$4 sm:$0xff]  }
 0x30a   :  { %4672 = vmatmul.mubr.bf16.gmra.mrb[88].mxu0 %v10255_v43  ;;  %4743 = vmatmul.mubr.bf16.gmra.mrb[88].mxu1 %v10255_v43 }
 0x30b   :  { %4681 = vmatprep.mubr.bf16.mxu0 %v10300_v0  ;;  %4752 = vmatprep.mubr.bf16.mxu1 %v10300_v0  ;;  %v9009_v0 = vld [vmem:[%s12651_s3 + $0x4a0] ss:$16 sps:$4 sm:$0xff]  }
 0x30c   :  { %4770 = vmatpush1.bf16.msra.mxu0 %v9005_v9  ;;  %4841 = vmatpush1.bf16.msra.mxu1 %v9006_v19  ;;  %v9047_v9 = vld [vmem:[%s12651_s3 + $0x5e4] ss:$16 sps:$4 sm:$0xff]   ;;  %v9048_v19 = vld [vmem:[%s12651_s3 + $0x5ec] ss:$16 sps:$4 sm:$0xff]  }
 0x30d   :  { %4771 = vmatprep.subr.bf16.mxu0 %v9007_v12  ;;  %4842 = vmatprep.subr.bf16.mxu1 %v9008_v59  ;;  %v9049_v12 = vld [vmem:[%s12651_s3 + $0x5e0] ss:$16 sps:$4 sm:$0xff]   ;;  %v9050_v59 = vld [vmem:[%s12651_s3 + $0x5e8] ss:$16 sps:$4 sm:$0xff]  }
 0x310   :  { %4772 = vmatpush1.bf16.msra.mxu0 %v9009_v0  ;;  %4843 = vmatpush1.bf16.msra.mxu1 %v9010_v38  ;;  %v9051_v0 = vld [vmem:[%s12651_s3 + $0x604] ss:$16 sps:$4 sm:$0xff]   ;;  %v9052_v38 = vld [vmem:[%s12651_s3 + $0x60c] ss:$16 sps:$4 sm:$0xff]  }
 0x311   :  { %4773 = vmatprep.subr.bf16.mxu0 %v9011_v29  ;;  %4844 = vmatprep.subr.bf16.mxu1 %v9012_v22  ;;  %v9053_v29 = vld [vmem:[%s12651_s3 + $0x600] ss:$16 sps:$4 sm:$0xff]   ;;  %v9054_v22 = vld [vmem:[%s12651_s3 + $0x608] ss:$16 sps:$4 sm:$0xff]  }
 0x312   :  { %4682 = vmatmul.mubr.bf16.gmra.mrb[92].mxu0 %v10328_v34  ;;  %4753 = vmatmul.mubr.bf16.gmra.mrb[92].mxu1 %v10328_v34  ;;  %v9016_v34 = vld [vmem:[%s12651_s3 + $0x4ec] ss:$16 sps:$4 sm:$0xff]  }
 0x313   :  { %4793 = vmatprep.mubr.bf16.mxu0 %v10166_v3  ;;  %4864 = vmatprep.mubr.bf16.mxu1 %v10166_v3  ;;  %v9017_v3 = vld [vmem:[%s12651_s3 + $0x4e0] ss:$16 sps:$4 sm:$0xff]  }
 0x314   :  { %4774 = vmatpush1.bf16.msra.mxu0 %v9013_v37  ;;  %4845 = vmatpush1.bf16.msra.mxu1 %v9014_v47  ;;  %v9055_v37 = vld [vmem:[%s12651_s3 + $0x624] ss:$16 sps:$4 sm:$0xff]   ;;  %v9058_v47 = vld [vmem:[%s12651_s3 + $0x628] ss:$16 sps:$4 sm:$0xff]  }
 0x315   :  { %4775 = vmatprep.subr.bf16.mxu0 %v9015_v20  ;;  %4846 = vmatprep.subr.bf16.mxu1 %v9016_v34  ;;  %v9059_v20 = vld [vmem:[%s12651_s3 + $0x644] ss:$16 sps:$4 sm:$0xff]   ;;  %v9060_v34 = vld [vmem:[%s12651_s3 + $0x64c] ss:$16 sps:$4 sm:$0xff]  }
 0x318   :  { %4776 = vmatpush1.bf16.msra.mxu0 %v9017_v3  ;;  %4847 = vmatpush1.bf16.msra.mxu1 %v9018_v49  ;;  %v9061_v3 = vld [vmem:[%s12651_s3 + $0x640] ss:$16 sps:$4 sm:$0xff]   ;;  %v9062_v49 = vld [vmem:[%s12651_s3 + $0x648] ss:$16 sps:$4 sm:$0xff]  }
 0x319   :  { %4777 = vmatprep.subr.bf16.mxu0 %v9019_v41  ;;  %4848 = vmatprep.subr.bf16.mxu1 %v9020_v52  ;;  %v9063_v41 = vld [vmem:[%s12651_s3 + $0x664] ss:$16 sps:$4 sm:$0xff]   ;;  %v9066_v52 = vld [vmem:[%s12651_s3 + $0x668] ss:$16 sps:$4 sm:$0xff]  }
 0x31c   :  { %4778 = vmatpush1.bf16.msra.mxu0 %v9021_v6  ;;  %4849 = vmatpush1.bf16.msra.mxu1 %v9022_v57  ;;  %v9067_v6 = vld [vmem:[%s12651_s3 + $0x684] ss:$16 sps:$4 sm:$0xff]   ;;  %v9068_v57 = vld [vmem:[%s12651_s3 + $0x68c] ss:$16 sps:$4 sm:$0xff]  }
 0x31d   :  { %4779 = vmatprep.subr.bf16.mxu0 %v9023_v35  ;;  %4850 = vmatprep.subr.bf16.mxu1 %v9024_v17 }
 0x320   :  { %4780 = vmatpush1.bf16.msra.mxu0 %v9025_v39  ;;  %4851 = vmatpush1.bf16.msra.mxu1 %v9026_v58 }
 0x321   :  { %4781 = vmatprep.subr.bf16.mxu0 %v9027_v11  ;;  %4852 = vmatprep.subr.bf16.mxu1 %v9028_v15  ;;  %v9069_v15 = vld [vmem:[%s12651_s3 + $0x680] ss:$16 sps:$4 sm:$0xff]  }
 0x324   :  { %4782 = vmatpush1.bf16.msra.mxu0 %v9029_v51  ;;  %4853 = vmatpush1.bf16.msra.mxu1 %v9030_v63 }
 0x325   :  { %4783 = vmatprep.subr.bf16.mxu0 %v9031_v56  ;;  %4854 = vmatprep.subr.bf16.mxu1 %v9032_v28  ;;  %v9071_v56 = vld [vmem:[%s12651_s3 + $0x6a4] ss:$16 sps:$4 sm:$0xff]   ;;  %v9072_v28 = vld [vmem:[%s12651_s3 + $0x6ac] ss:$16 sps:$4 sm:$0xff]  }
 0x328   :  { %4784 = vmatpush1.bf16.msra.mxu0 %v9033_v30  ;;  %4855 = vmatpush1.bf16.msra.mxu1 %v9034_v21 }
 0x329   :  { %4785 = vmatprep.subr.bf16.mxu0 %v9035_v42  ;;  %4856 = vmatprep.subr.bf16.mxu1 %v9036_v32 }
 0x32c   :  { %4786 = vmatpush1.bf16.msra.mxu0 %v9037_v54  ;;  %4857 = vmatpush1.bf16.msra.mxu1 %v9038_v14  ;;  %v9073_v54 = vld [vmem:[%s12651_s3 + $0x6a0] ss:$16 sps:$4 sm:$0xff]   ;;  %v9074_v14 = vld [vmem:[%s12651_s3 + $0x6a8] ss:$16 sps:$4 sm:$0xff]  }
 0x32d   :  { %4787 = vmatprep.subr.bf16.mxu0 %v9039_v36  ;;  %4858 = vmatprep.subr.bf16.mxu1 %v9040_v45  ;;  %v9075_v36 = vld [vmem:[%s12651_s3 + $0x6c4] ss:$16 sps:$4 sm:$0xff]   ;;  %v9076_v45 = vld [vmem:[%s12651_s3 + $0x6cc] ss:$16 sps:$4 sm:$0xff]  }
 0x330   :  { %4788 = vmatpush1.bf16.msra.mxu0 %v9041_v26  ;;  %4859 = vmatpush1.bf16.msra.mxu1 %v9042_v46 }
 0x331   :  { %4789 = vmatprep.subr.bf16.mxu0 %v9043_v7  ;;  %4860 = vmatprep.subr.bf16.mxu1 %v9044_v27 }
 0x334   :  { %4790 = vmatpush1.bf16.msra.mxu0 %v9045_v53  ;;  %4861 = vmatpush1.bf16.msra.mxu1 %v9046_v48  ;;  %v9077_v48 = vld [vmem:[%s12651_s3 + $0x6c0] ss:$16 sps:$4 sm:$0xff]  }
 0x335   :  { %4791 = vmatprep.subr.bf16.mxu0 %v9047_v9  ;;  %4862 = vmatprep.subr.bf16.mxu1 %v9048_v19 }
 0x338   :  { %4792 = vmatpush1.bf16.msra.mxu0 %v9049_v12  ;;  %4863 = vmatpush1.bf16.msra.mxu1 %v9050_v59  ;;  %v9079_v12 = vld [vmem:[%s12651_s3 + $0x6e4] ss:$16 sps:$4 sm:$0xff]   ;;  %v9080_v59 = vld [vmem:[%s12651_s3 + $0x6ec] ss:$16 sps:$4 sm:$0xff]  }
 0x339   :  { %4931 = vmatprep.subr.bf16.mxu0 %v9051_v0  ;;  %5002 = vmatprep.subr.bf16.mxu1 %v9052_v38 }
 0x33b   :  { %4794 = vmatmul.mubr.bf16.vlgmr.msra.gmra.mrb[80].mxu0 %v10158_v33  ;;  %4865 = vmatmul.mubr.bf16.vlgmr.msra.gmra.mrb[80].mxu1 %v10158_v33  ;;  %v9056_v33 = vld [vmem:[%s12651_s3 + $0x62c] ss:$16 sps:$4 sm:$0xff]  }
 0x33c   :  { %4803 = vmatprep.mubr.bf16.mxu0 %v10221_v16  ;;  %4874 = vmatprep.mubr.bf16.mxu1 %v10221_v16  ;;  %v9057_v16 = vld [vmem:[%s12651_s3 + $0x620] ss:$16 sps:$4 sm:$0xff]  }
 0x33d   :  { %4932 = vmatpush1.bf16.msra.mxu0 %v9053_v29  ;;  %5003 = vmatpush1.bf16.msra.mxu1 %v9054_v22 }
 0x33e   :  { %4933 = vmatprep.subr.bf16.mxu0 %v9055_v37  ;;  %5004 = vmatprep.subr.bf16.mxu1 %v9056_v33  ;;  %v9081_v37 = vld [vmem:[%s12651_s3 + $0x6e0] ss:$16 sps:$4 sm:$0xff]   ;;  %v9082_v33 = vld [vmem:[%s12651_s3 + $0x6e8] ss:$16 sps:$4 sm:$0xff]  }
 0x341   :  { %4934 = vmatpush1.bf16.msra.mxu0 %v9057_v16  ;;  %5005 = vmatpush1.bf16.msra.mxu1 %v9058_v47  ;;  %v9083_v16 = vld [vmem:[%s12651_s3 + $0x704] ss:$16 sps:$4 sm:$0xff]   ;;  %v9084_v47 = vld [vmem:[%s12651_s3 + $0x70c] ss:$16 sps:$4 sm:$0xff]  }
 0x342   :  { %4935 = vmatprep.subr.bf16.mxu0 %v9059_v20  ;;  %5006 = vmatprep.subr.bf16.mxu1 %v9060_v34 }
 0x343   :  { %4804 = vmatmul.mubr.bf16.gmra.mrb[84].mxu0 %v10216_v40  ;;  %4875 = vmatmul.mubr.bf16.gmra.mrb[84].mxu1 %v10216_v40  ;;  %v9064_v40 = vld [vmem:[%s12651_s3 + $0x66c] ss:$16 sps:$4 sm:$0xff]  }
 0x344   :  { %4813 = vmatprep.mubr.bf16.mxu0 %v10278_v50  ;;  %4884 = vmatprep.mubr.bf16.mxu1 %v10278_v50  ;;  %v9065_v50 = vld [vmem:[%s12651_s3 + $0x660] ss:$16 sps:$4 sm:$0xff]  }
 0x345   :  { %4936 = vmatpush1.bf16.msra.mxu0 %v9061_v3  ;;  %5007 = vmatpush1.bf16.msra.mxu1 %v9062_v49 }
 0x346   :  { %4937 = vmatprep.subr.bf16.mxu0 %v9063_v41  ;;  %5008 = vmatprep.subr.bf16.mxu1 %v9064_v40  ;;  %v9085_v40 = vld [vmem:[%s12651_s3 + $0x700] ss:$16 sps:$4 sm:$0xff]  }
 0x349   :  { %4938 = vmatpush1.bf16.msra.mxu0 %v9065_v50  ;;  %5009 = vmatpush1.bf16.msra.mxu1 %v9066_v52  ;;  %v9086_v50 = vld [vmem:[%s12651_s3 + $0x708] ss:$16 sps:$4 sm:$0xff]  }
 0x34a   :  { %4939 = vmatprep.subr.bf16.mxu0 %v9067_v6  ;;  %5010 = vmatprep.subr.bf16.mxu1 %v9068_v57 }
 0x34b   :  { %4814 = vmatmul.mubr.bf16.gmra.mrb[88].mxu0 %v10271_v5  ;;  %4885 = vmatmul.mubr.bf16.gmra.mrb[88].mxu1 %v10271_v5  ;;  %v11778_v35 = vpop.f32.mrb[64].mxu0  ;;  %v11780_v17 = vpop.f32.mrb[64].mxu1  ;;  %v9070_v5 = vld [vmem:[%s12651_s3 + $0x688] ss:$16 sps:$4 sm:$0xff]  }
 0x34c   :  { %4823 = vmatprep.mubr.bf16.mxu0 %v10936_v2  ;;  %4894 = vmatprep.mubr.bf16.mxu1 %v10936_v2  ;;  %v4463_v39 = vmax.f32 %v11778_v35, %v11780_v17  ;;  %v11786_v58 = vpop.f32.mrb[65].mxu0  ;;  %v11788_v11 = vpop.f32.mrb[65].mxu1 }
 0x34d   :  { %4940 = vmatpush1.bf16.msra.mxu0 %v9069_v15  ;;  %5011 = vmatpush1.bf16.msra.mxu1 %v9070_v5  ;;  %v4464_v2 = vmax.f32 %v11786_v58, %v11788_v11  ;;  %v11798_v51 = vpop.f32.mrb[66].mxu0  ;;  %v11800_v63 = vpop.f32.mrb[66].mxu1  ;;  %v9087_v15 = vld [vmem:[%s12651_s3 + $0x724] ss:$16 sps:$4 sm:$0xff]   ;;  %v9088_v5 = vld [vmem:[%s12651_s3 + $0x72c] ss:$16 sps:$4 sm:$0xff]  }
 0x34e   :  { %4941 = vmatprep.subr.bf16.mxu0 %v9071_v56  ;;  %5012 = vmatprep.subr.bf16.mxu1 %v9072_v28  ;;  %v4465_v30 = vmax.f32 %v11798_v51, %v11800_v63  ;;  %v11810_v21 = vpop.f32.mrb[67].mxu0  ;;  %v11812_v42 = vpop.f32.mrb[67].mxu1 }
 0x34f   :  { %v4466_v32 = vmax.f32 %v11810_v21, %v11812_v42 }
 0x351   :  { %4942 = vmatpush1.bf16.msra.mxu0 %v9073_v54  ;;  %5013 = vmatpush1.bf16.msra.mxu1 %v9074_v14 }
 0x352   :  { %4943 = vmatprep.subr.bf16.mxu0 %v9075_v36  ;;  %5014 = vmatprep.subr.bf16.mxu1 %v9076_v45  ;;  %v9089_v36 = vld [vmem:[%s12651_s3 + $0x720] ss:$16 sps:$4 sm:$0xff]   ;;  %v9090_v45 = vld [vmem:[%s12651_s3 + $0x728] ss:$16 sps:$4 sm:$0xff]  }
 0x353   :  { %4824 = vmatmul.mubr.bf16.gmra.mrb[92].mxu0 %v10962_v25  ;;  %4895 = vmatmul.mubr.bf16.gmra.mrb[92].mxu1 %v10962_v25  ;;  %v11830_v26 = vpop.f32.mrb[68].mxu0  ;;  %v11832_v46 = vpop.f32.mrb[68].mxu1  ;;  %v9078_v25 = vld [vmem:[%s12651_s3 + $0x6c8] ss:$16 sps:$4 sm:$0xff]  }
 0x354   :  { %4963 = vmatprep.mubr.bf16.mxu0 %v10029_v44  ;;  %5034 = vmatprep.mubr.bf16.mxu1 %v10029_v44  ;;  %v4467_v7 = vmax.f32 %v11830_v26, %v11832_v46  ;;  %v11838_v27 = vpop.f32.mrb[69].mxu0  ;;  %v11840_v53 = vpop.f32.mrb[69].mxu1  ;;  %v8783_v46 = vld [vmem:[%s12653_s5 + $0x1c8] sm:$0xff]  }
 0x355   :  { %4944 = vmatpush1.bf16.msra.mxu0 %v9077_v48  ;;  %5015 = vmatpush1.bf16.msra.mxu1 %v9078_v25  ;;  %v4468_v44 = vmax.f32 %v11838_v27, %v11840_v53  ;;  %v11850_v9 = vpop.f32.mrb[70].mxu0  ;;  %v11852_v19 = vpop.f32.mrb[70].mxu1  ;;  %v9091_v48 = vld [vmem:[%s12651_s3 + $0x744] ss:$16 sps:$4 sm:$0xff]   ;;  %v9092_v25 = vld [vmem:[%s12651_s3 + $0x74c] ss:$16 sps:$4 sm:$0xff]  }
 0x356   :  { %4945 = vmatprep.subr.bf16.mxu0 %v9079_v12  ;;  %5016 = vmatprep.subr.bf16.mxu1 %v9080_v59  ;;  %v4469_v0 = vmax.f32 %v11850_v9, %v11852_v19  ;;  %v11862_v38 = vpop.f32.mrb[71].mxu0  ;;  %v11864_v29 = vpop.f32.mrb[71].mxu1  ;;  %v8785_v19 = vld [vmem:[%s12653_s5 + $0x148] sm:$0xff]  }
 0x357   :  { %v4470_v22 = vmax.f32 %v11862_v38, %v11864_v29  ;;  %v8784_v29 = vld [vmem:[%s12653_s5 + $0x188] sm:$0xff]  }
 0x359   :  { %4946 = vmatpush1.bf16.msra.mxu0 %v9081_v37  ;;  %5017 = vmatpush1.bf16.msra.mxu1 %v9082_v33 }
 0x35a   :  { %4947 = vmatprep.subr.bf16.mxu0 %v9083_v16  ;;  %5018 = vmatprep.subr.bf16.mxu1 %v9084_v47  ;;  %v9093_v47 = vld [vmem:[%s12651_s3 + $0x740] ss:$16 sps:$4 sm:$0xff]  }
 0x35b   :  { %v11880_v20 = vpop.f32.mrb[72].mxu0  ;;  %v11882_v34 = vpop.f32.mrb[72].mxu1 }
 0x35c   :  { %v4471_v3 = vmax.f32 %v11880_v20, %v11882_v34  ;;  %v11886_v49 = vpop.f32.mrb[73].mxu0  ;;  %v11888_v41 = vpop.f32.mrb[73].mxu1  ;;  %v8788_v20 = vld [vmem:[%s12653_s5 + $0x190] sm:$0xff]  }
 0x35d   :  { %4948 = vmatpush1.bf16.msra.mxu0 %v9085_v40  ;;  %5019 = vmatpush1.bf16.msra.mxu1 %v9086_v50  ;;  %v4472_v52 = vmax.f32 %v11886_v49, %v11888_v41  ;;  %v11898_v6 = vpop.f32.mrb[74].mxu0  ;;  %v11900_v57 = vpop.f32.mrb[74].mxu1  ;;  %v9094_v40 = vld [vmem:[%s12651_s3 + $0x748] ss:$16 sps:$4 sm:$0xff]  }
 0x35e   :  { %4949 = vmatprep.subr.bf16.mxu0 %v9087_v15  ;;  %5020 = vmatprep.subr.bf16.mxu1 %v9088_v5  ;;  %v4473_v56 = vmax.f32 %v11898_v6, %v11900_v57  ;;  %v11910_v28 = vpop.f32.mrb[75].mxu0  ;;  %v11912_v54 = vpop.f32.mrb[75].mxu1  ;;  %v8793_v57 = vld [vmem:[%s12653_s5 + $0x158] sm:$0xff]  }
 0x35f   :  { %v4474_v14 = vmax.f32 %v11910_v28, %v11912_v54  ;;  %v8792_v54 = vld [vmem:[%s12653_s5 + $0x198] sm:$0xff]  }
 0x361   :  { %4950 = vmatpush1.bf16.msra.mxu0 %v9089_v36  ;;  %5021 = vmatpush1.bf16.msra.mxu1 %v9090_v45  ;;  %v9095_v36 = vld [vmem:[%s12651_s3 + $0x764] ss:$16 sps:$4 sm:$0xff]   ;;  %v9096_v45 = vld [vmem:[%s12651_s3 + $0x76c] ss:$16 sps:$4 sm:$0xff]  }
 0x362   :  { %4951 = vmatprep.subr.bf16.mxu0 %v9091_v48  ;;  %5022 = vmatprep.subr.bf16.mxu1 %v9092_v25 }
 0x363   :  { %v11928_v12 = vpop.f32.mrb[76].mxu0  ;;  %v11930_v59 = vpop.f32.mrb[76].mxu1 }
 0x364   :  { %v4475_v37 = vmax.f32 %v11928_v12, %v11930_v59  ;;  %v11934_v33 = vpop.f32.mrb[77].mxu0  ;;  %v11936_v16 = vpop.f32.mrb[77].mxu1  ;;  %v8799_v59 = vld [vmem:[%s12653_s5 + $0x1e8] sm:$0xff]  }
 0x365   :  { %4952 = vmatpush1.bf16.msra.mxu0 %v9093_v47  ;;  %5023 = vmatpush1.bf16.msra.mxu1 %v9094_v40  ;;  %v4476_v50 = vmax.f32 %v11934_v33, %v11936_v16  ;;  %v4361_v15 = vpop.f32.mrb[78].mxu0  ;;  %v4432_v5 = vpop.f32.mrb[78].mxu1  ;;  %v9097_v47 = vld [vmem:[%s12651_s3 + $0x760] ss:$16 sps:$4 sm:$0xff]   ;;  %v9098_v40 = vld [vmem:[%s12651_s3 + $0x768] ss:$16 sps:$4 sm:$0xff]  }
 0x366   :  { %4953 = vmatprep.subr.bf16.mxu0 %v9095_v36  ;;  %5024 = vmatprep.subr.bf16.mxu1 %v9096_v45  ;;  %v4362_v48 = vpop.f32.mrb[79].mxu0  ;;  %v4433_v25 = vpop.f32.mrb[79].mxu1  ;;  %v9099_v15 = vld [vmem:[%s12651_s3 + $0x784] ss:$16 sps:$4 sm:$0xff]   ;;  %v9100_v5 = vld [vmem:[%s12651_s3 + $0x78c] ss:$16 sps:$4 sm:$0xff]  }
 0x367   :  { %v9101_v36 = vld [vmem:[%s12651_s3 + $0x780] ss:$16 sps:$4 sm:$0xff]   ;;  %v9102_v45 = vld [vmem:[%s12651_s3 + $0x788] ss:$16 sps:$4 sm:$0xff]   ;;  %v9103_v48 = vld [vmem:[%s12651_s3 + $0x7a4] ss:$16 sps:$4 sm:$0xff]  }
 0x368   :  { %v9104_v25 = vld [vmem:[%s12651_s3 + $0x7ac] ss:$16 sps:$4 sm:$0xff]   ;;  %v8798_v33 = vld [vmem:[%s12653_s5 + $0x120] sm:$0xff]  }
 0x369   :  { %4954 = vmatpush1.bf16.msra.mxu0 %v9097_v47  ;;  %5025 = vmatpush1.bf16.msra.mxu1 %v9098_v40  ;;  %v9105_v47 = vld [vmem:[%s12651_s3 + $0x7a0] ss:$16 sps:$4 sm:$0xff]   ;;  %v9106_v40 = vld [vmem:[%s12651_s3 + $0x7a8] ss:$16 sps:$4 sm:$0xff]  }
 0x36a   :  { %4955 = vmatprep.subr.bf16.mxu0 %v9099_v15  ;;  %5026 = vmatprep.subr.bf16.mxu1 %v9100_v5  ;;  %v9107_v15 = vld [vmem:[%s12651_s3 + $0x7c4] ss:$16 sps:$4 sm:$0xff]   ;;  %v9108_v5 = vld [vmem:[%s12651_s3 + $0x7cc] ss:$16 sps:$4 sm:$0xff]  }
 0x36b   :  { %v8801_v16 = vld [vmem:[%s12653_s5 + $0x168] sm:$0xff]  }
 0x36d   :  { %4956 = vmatpush1.bf16.msra.mxu0 %v9101_v36  ;;  %5027 = vmatpush1.bf16.msra.mxu1 %v9102_v45  ;;  %v9109_v36 = vld [vmem:[%s12651_s3 + $0x7c0] ss:$16 sps:$4 sm:$0xff]   ;;  %v9110_v45 = vld [vmem:[%s12651_s3 + $0x7c8] ss:$16 sps:$4 sm:$0xff]  }
 0x36e   :  { %4957 = vmatprep.subr.bf16.mxu0 %v9103_v48  ;;  %5028 = vmatprep.subr.bf16.mxu1 %v9104_v25  ;;  %v9111_v48 = vld [vmem:[%s12651_s3 + $0x7e4] ss:$16 sps:$4 sm:$0xff]   ;;  %v9112_v25 = vld [vmem:[%s12651_s3 + $0x7ec] ss:$16 sps:$4 sm:$0xff]  }
 0x371   :  { %4958 = vmatpush1.bf16.msra.mxu0 %v9105_v47  ;;  %5029 = vmatpush1.bf16.msra.mxu1 %v9106_v40  ;;  %v9113_v47 = vld [vmem:[%s12651_s3 + $0x7e0] ss:$16 sps:$4 sm:$0xff]   ;;  %v9114_v40 = vld [vmem:[%s12651_s3 + $0x7e8] ss:$16 sps:$4 sm:$0xff]  }
 0x372   :  { %4959 = vmatprep.subr.bf16.mxu0 %v9107_v15  ;;  %5030 = vmatprep.subr.bf16.mxu1 %v9108_v5  ;;  %v9115_v15 = vld [vmem:[%s12651_s3 + $0x804] ss:$16 sps:$4 sm:$0xff]   ;;  %v9116_v5 = vld [vmem:[%s12651_s3 + $0x80c] ss:$16 sps:$4 sm:$0xff]  }
 0x375   :  { %4960 = vmatpush1.bf16.msra.mxu0 %v9109_v36  ;;  %5031 = vmatpush1.bf16.msra.mxu1 %v9110_v45  ;;  %v9117_v36 = vld [vmem:[%s12651_s3 + $0x800] ss:$16 sps:$4 sm:$0xff]   ;;  %v9118_v45 = vld [vmem:[%s12651_s3 + $0x808] ss:$16 sps:$4 sm:$0xff]  }
 0x376   :  { %4961 = vmatprep.subr.bf16.mxu0 %v9111_v48  ;;  %5032 = vmatprep.subr.bf16.mxu1 %v9112_v25  ;;  %v9119_v48 = vld [vmem:[%s12651_s3 + $0x824] ss:$16 sps:$4 sm:$0xff]   ;;  %v9122_v25 = vld [vmem:[%s12651_s3 + $0x828] ss:$16 sps:$4 sm:$0xff]  }
 0x379   :  { %4962 = vmatpush1.bf16.msra.mxu0 %v9113_v47  ;;  %5033 = vmatpush1.bf16.msra.mxu1 %v9114_v40  ;;  %v9123_v47 = vld [vmem:[%s12651_s3 + $0x844] ss:$16 sps:$4 sm:$0xff]   ;;  %v9124_v40 = vld [vmem:[%s12651_s3 + $0x84c] ss:$16 sps:$4 sm:$0xff]  }
 0x37a   :  { %5145 = vmatprep.subr.bf16.mxu0 %v9115_v15  ;;  %5216 = vmatprep.subr.bf16.mxu1 %v9116_v5  ;;  %v9125_v15 = vld [vmem:[%s12651_s3 + $0x840] ss:$16 sps:$4 sm:$0xff]   ;;  %v9126_v5 = vld [vmem:[%s12651_s3 + $0x848] ss:$16 sps:$4 sm:$0xff]  }
 0x37c   :  { %4964 = vmatmul.mubr.bf16.vlgmr.msra.gmra.mrb[80].mxu0 %v10027_v23  ;;  %5035 = vmatmul.mubr.bf16.vlgmr.msra.gmra.mrb[80].mxu1 %v10027_v23  ;;  %v9120_v23 = vld [vmem:[%s12651_s3 + $0x82c] ss:$16 sps:$4 sm:$0xff]  }
 0x37d   :  { %4973 = vmatprep.mubr.bf16.mxu0 %v10055_v10  ;;  %5044 = vmatprep.mubr.bf16.mxu1 %v10055_v10  ;;  %v9121_v10 = vld [vmem:[%s12651_s3 + $0x820] ss:$16 sps:$4 sm:$0xff]  }
 0x37e   :  { %5146 = vmatpush1.bf16.msra.mxu0 %v9117_v36  ;;  %5217 = vmatpush1.bf16.msra.mxu1 %v9118_v45  ;;  %v9127_v36 = vld [vmem:[%s12651_s3 + $0x864] ss:$16 sps:$4 sm:$0xff]   ;;  %v9130_v45 = vld [vmem:[%s12651_s3 + $0x868] ss:$16 sps:$4 sm:$0xff]  }
 0x37f   :  { %5147 = vmatprep.subr.bf16.mxu0 %v9119_v48  ;;  %5218 = vmatprep.subr.bf16.mxu1 %v9120_v23  ;;  %v9131_v48 = vld [vmem:[%s12651_s3 + $0x884] ss:$16 sps:$4 sm:$0xff]   ;;  %v9132_v23 = vld [vmem:[%s12651_s3 + $0x88c] ss:$16 sps:$4 sm:$0xff]  }
 0x382   :  { %5148 = vmatpush1.bf16.msra.mxu0 %v9121_v10  ;;  %5219 = vmatpush1.bf16.msra.mxu1 %v9122_v25  ;;  %v9133_v10 = vld [vmem:[%s12651_s3 + $0x880] ss:$16 sps:$4 sm:$0xff]   ;;  %v9134_v25 = vld [vmem:[%s12651_s3 + $0x888] ss:$16 sps:$4 sm:$0xff]  }
 0x383   :  { %5149 = vmatprep.subr.bf16.mxu0 %v9123_v47  ;;  %5220 = vmatprep.subr.bf16.mxu1 %v9124_v40  ;;  %v9135_v47 = vld [vmem:[%s12651_s3 + $0x8a4] ss:$16 sps:$4 sm:$0xff]   ;;  %v9137_v40 = vld [vmem:[%s12651_s3 + $0x8a0] ss:$16 sps:$4 sm:$0xff]  }
 0x384   :  { %4974 = vmatmul.mubr.bf16.gmra.mrb[84].mxu0 %v10051_v8  ;;  %5045 = vmatmul.mubr.bf16.gmra.mrb[84].mxu1 %v10051_v8  ;;  %v9128_v8 = vld [vmem:[%s12651_s3 + $0x86c] ss:$16 sps:$4 sm:$0xff]  }
 0x385   :  { %4983 = vmatprep.mubr.bf16.mxu0 %v10083_v62  ;;  %5054 = vmatprep.mubr.bf16.mxu1 %v10083_v62  ;;  %v9129_v62 = vld [vmem:[%s12651_s3 + $0x860] ss:$16 sps:$4 sm:$0xff]  }
 0x386   :  { %5150 = vmatpush1.bf16.msra.mxu0 %v9125_v15  ;;  %5221 = vmatpush1.bf16.msra.mxu1 %v9126_v5  ;;  %v9138_v15 = vld [vmem:[%s12651_s3 + $0x8a8] ss:$16 sps:$4 sm:$0xff]   ;;  %v9139_v5 = vld [vmem:[%s12651_s3 + $0x8c4] ss:$16 sps:$4 sm:$0xff]  }
 0x387   :  { %5151 = vmatprep.subr.bf16.mxu0 %v9127_v36  ;;  %5222 = vmatprep.subr.bf16.mxu1 %v9128_v8  ;;  %v9140_v36 = vld [vmem:[%s12651_s3 + $0x8cc] ss:$16 sps:$4 sm:$0xff]   ;;  %v9141_v8 = vld [vmem:[%s12651_s3 + $0x8c0] ss:$16 sps:$4 sm:$0xff]  }
 0x38a   :  { %5152 = vmatpush1.bf16.msra.mxu0 %v9129_v62  ;;  %5223 = vmatpush1.bf16.msra.mxu1 %v9130_v45  ;;  %v9142_v62 = vld [vmem:[%s12651_s3 + $0x8c8] ss:$16 sps:$4 sm:$0xff]   ;;  %v9143_v45 = vld [vmem:[%s12651_s3 + $0x8e4] ss:$16 sps:$4 sm:$0xff]  }
 0x38b   :  { %5153 = vmatprep.subr.bf16.mxu0 %v9131_v48  ;;  %5224 = vmatprep.subr.bf16.mxu1 %v9132_v23  ;;  %v9144_v48 = vld [vmem:[%s12651_s3 + $0x8ec] ss:$16 sps:$4 sm:$0xff]   ;;  %v9146_v23 = vld [vmem:[%s12651_s3 + $0x8e8] ss:$16 sps:$4 sm:$0xff]  }
 0x38c   :  { %4984 = vmatmul.mubr.bf16.gmra.mrb[88].mxu0 %v10079_v61  ;;  %5055 = vmatmul.mubr.bf16.gmra.mrb[88].mxu1 %v10079_v61  ;;  %v9136_v61 = vld [vmem:[%s12651_s3 + $0x8ac] ss:$16 sps:$4 sm:$0xff]  }
 0x38d   :  { %4993 = vmatprep.mubr.bf16.mxu0 %v11134_v60  ;;  %5064 = vmatprep.mubr.bf16.mxu1 %v11134_v60 }
 0x38e   :  { %5154 = vmatpush1.bf16.msra.mxu0 %v9133_v10  ;;  %5225 = vmatpush1.bf16.msra.mxu1 %v9134_v25  ;;  %v9147_v10 = vld [vmem:[%s12651_s3 + $0x904] ss:$16 sps:$4 sm:$0xff]   ;;  %v9148_v25 = vld [vmem:[%s12651_s3 + $0x90c] ss:$16 sps:$4 sm:$0xff]  }
 0x38f   :  { %5155 = vmatprep.subr.bf16.mxu0 %v9135_v47  ;;  %5226 = vmatprep.subr.bf16.mxu1 %v9136_v61  ;;  %v9149_v47 = vld [vmem:[%s12651_s3 + $0x900] ss:$16 sps:$4 sm:$0xff]   ;;  %v9150_v61 = vld [vmem:[%s12651_s3 + $0x908] ss:$16 sps:$4 sm:$0xff]  }
 0x392   :  { %5156 = vmatpush1.bf16.msra.mxu0 %v9137_v40  ;;  %5227 = vmatpush1.bf16.msra.mxu1 %v9138_v15  ;;  %v9151_v40 = vld [vmem:[%s12651_s3 + $0x924] ss:$16 sps:$4 sm:$0xff]   ;;  %v9152_v15 = vld [vmem:[%s12651_s3 + $0x92c] ss:$16 sps:$4 sm:$0xff]  }
 0x393   :  { %5157 = vmatprep.subr.bf16.mxu0 %v9139_v5  ;;  %5228 = vmatprep.subr.bf16.mxu1 %v9140_v36  ;;  %v9153_v5 = vld [vmem:[%s12651_s3 + $0x920] ss:$16 sps:$4 sm:$0xff]   ;;  %v9154_v36 = vld [vmem:[%s12651_s3 + $0x928] ss:$16 sps:$4 sm:$0xff]  }
 0x394   :  { %4994 = vmatmul.mubr.bf16.gmra.mrb[92].mxu0 %v11166_v13  ;;  %5065 = vmatmul.mubr.bf16.gmra.mrb[92].mxu1 %v11166_v13 }
 0x395   :  { %5177 = vmatprep.mubr.bf16.mxu0 %v10211_v24  ;;  %5248 = vmatprep.mubr.bf16.mxu1 %v10211_v24  ;;  %v9145_v24 = vld [vmem:[%s12651_s3 + $0x8e0] ss:$16 sps:$4 sm:$0xff]  }
 0x396   :  { %5158 = vmatpush1.bf16.msra.mxu0 %v9141_v8  ;;  %5229 = vmatpush1.bf16.msra.mxu1 %v9142_v62  ;;  %v9155_v8 = vld [vmem:[%s12651_s3 + $0x944] ss:$16 sps:$4 sm:$0xff]   ;;  %v9156_v62 = vld [vmem:[%s12651_s3 + $0x94c] ss:$16 sps:$4 sm:$0xff]  }
 0x397   :  { %5159 = vmatprep.subr.bf16.mxu0 %v9143_v45  ;;  %5230 = vmatprep.subr.bf16.mxu1 %v9144_v48  ;;  %v9157_v45 = vld [vmem:[%s12651_s3 + $0x940] ss:$16 sps:$4 sm:$0xff]   ;;  %v9158_v48 = vld [vmem:[%s12651_s3 + $0x948] ss:$16 sps:$4 sm:$0xff]  }
 0x39a   :  { %5160 = vmatpush1.bf16.msra.mxu0 %v9145_v24  ;;  %5231 = vmatpush1.bf16.msra.mxu1 %v9146_v23  ;;  %v9159_v24 = vld [vmem:[%s12651_s3 + $0x964] ss:$16 sps:$4 sm:$0xff]   ;;  %v9160_v23 = vld [vmem:[%s12651_s3 + $0x96c] ss:$16 sps:$4 sm:$0xff]  }
 0x39b   :  { %5161 = vmatprep.subr.bf16.mxu0 %v9147_v10  ;;  %5232 = vmatprep.subr.bf16.mxu1 %v9148_v25  ;;  %v9161_v10 = vld [vmem:[%s12651_s3 + $0x960] ss:$16 sps:$4 sm:$0xff]   ;;  %v9162_v25 = vld [vmem:[%s12651_s3 + $0x968] ss:$16 sps:$4 sm:$0xff]  }
 0x39e   :  { %5162 = vmatpush1.bf16.msra.mxu0 %v9149_v47  ;;  %5233 = vmatpush1.bf16.msra.mxu1 %v9150_v61  ;;  %v9163_v47 = vld [vmem:[%s12651_s3 + $0x984] ss:$16 sps:$4 sm:$0xff]   ;;  %v9164_v61 = vld [vmem:[%s12651_s3 + $0x98c] ss:$16 sps:$4 sm:$0xff]  }
 0x39f   :  { %5163 = vmatprep.subr.bf16.mxu0 %v9151_v40  ;;  %5234 = vmatprep.subr.bf16.mxu1 %v9152_v15  ;;  %v9165_v40 = vld [vmem:[%s12651_s3 + $0x980] ss:$16 sps:$4 sm:$0xff]   ;;  %v9166_v15 = vld [vmem:[%s12651_s3 + $0x988] ss:$16 sps:$4 sm:$0xff]  }
 0x3a2   :  { %5164 = vmatpush1.bf16.msra.mxu0 %v9153_v5  ;;  %5235 = vmatpush1.bf16.msra.mxu1 %v9154_v36  ;;  %v9167_v5 = vld [vmem:[%s12651_s3 + $0x9a4] ss:$16 sps:$4 sm:$0xff]   ;;  %v9168_v36 = vld [vmem:[%s12651_s3 + $0x9ac] ss:$16 sps:$4 sm:$0xff]  }
 0x3a3   :  { %5165 = vmatprep.subr.bf16.mxu0 %v9155_v8  ;;  %5236 = vmatprep.subr.bf16.mxu1 %v9156_v62  ;;  %v9169_v8 = vld [vmem:[%s12651_s3 + $0x9a0] ss:$16 sps:$4 sm:$0xff]   ;;  %v9170_v62 = vld [vmem:[%s12651_s3 + $0x9a8] ss:$16 sps:$4 sm:$0xff]  }
 0x3a6   :  { %5166 = vmatpush1.bf16.msra.mxu0 %v9157_v45  ;;  %5237 = vmatpush1.bf16.msra.mxu1 %v9158_v48  ;;  %v9171_v45 = vld [vmem:[%s12651_s3 + $0x9c4] ss:$16 sps:$4 sm:$0xff]   ;;  %v9172_v48 = vld [vmem:[%s12651_s3 + $0x9cc] ss:$16 sps:$4 sm:$0xff]  }
 0x3a7   :  { %5167 = vmatprep.subr.bf16.mxu0 %v9159_v24  ;;  %5238 = vmatprep.subr.bf16.mxu1 %v9160_v23  ;;  %v9173_v24 = vld [vmem:[%s12651_s3 + $0x9c0] ss:$16 sps:$4 sm:$0xff]   ;;  %v9174_v23 = vld [vmem:[%s12651_s3 + $0x9c8] ss:$16 sps:$4 sm:$0xff]  }
 0x3aa   :  { %5168 = vmatpush1.bf16.msra.mxu0 %v9161_v10  ;;  %5239 = vmatpush1.bf16.msra.mxu1 %v9162_v25  ;;  %v9175_v10 = vld [vmem:[%s12651_s3 + $0x9e4] ss:$16 sps:$4 sm:$0xff]   ;;  %v9176_v25 = vld [vmem:[%s12651_s3 + $0x9ec] ss:$16 sps:$4 sm:$0xff]  }
 0x3ab   :  { %5169 = vmatprep.subr.bf16.mxu0 %v9163_v47  ;;  %5240 = vmatprep.subr.bf16.mxu1 %v9164_v61  ;;  %v8747_v47 = vld [vmem:[%s12653_s5 + $0x40] sm:$0xff]  }
 0x3ac   :  { %v8749_v61 = vld [vmem:[%s12653_s5 + $0xc0] sm:$0xff]  }
 0x3ae   :  { %5170 = vmatpush1.bf16.msra.mxu0 %v9165_v40  ;;  %5241 = vmatpush1.bf16.msra.mxu1 %v9166_v15  ;;  %v9177_v40 = vld [vmem:[%s12651_s3 + $0x9e0] ss:$16 sps:$4 sm:$0xff]   ;;  %v9178_v15 = vld [vmem:[%s12651_s3 + $0x9e8] ss:$16 sps:$4 sm:$0xff]  }
 0x3af   :  { %5171 = vmatprep.subr.bf16.mxu0 %v9167_v5  ;;  %5242 = vmatprep.subr.bf16.mxu1 %v9168_v36  ;;  %v8748_v5 = vld [vmem:[%s12653_s5] sm:$0xff]  }
 0x3b0   :  { %v8750_v36 = vld [vmem:[%s12653_s5 + $0x80] sm:$0xff]  }
 0x3b2   :  { %5172 = vmatpush1.bf16.msra.mxu0 %v9169_v8  ;;  %5243 = vmatpush1.bf16.msra.mxu1 %v9170_v62  ;;  %v8751_v8 = vld [vmem:[%s12653_s5 + $0x48] sm:$0xff]  }
 0x3b3   :  { %5173 = vmatprep.subr.bf16.mxu0 %v9171_v45  ;;  %5244 = vmatprep.subr.bf16.mxu1 %v9172_v48  ;;  %v8753_v62 = vld [vmem:[%s12653_s5 + $0xc8] sm:$0xff]  }
 0x3b4   :  { %v8752_v45 = vld [vmem:[%s12653_s5 + $0x8] sm:$0xff]  }
 0x3b5   :  { %v8754_v48 = vld [vmem:[%s12653_s5 + $0x88] sm:$0xff]  }
 0x3b6   :  { %5174 = vmatpush1.bf16.msra.mxu0 %v9173_v24  ;;  %5245 = vmatpush1.bf16.msra.mxu1 %v9174_v23  ;;  %v8756_v24 = vld [vmem:[%s12653_s5 + $0x10] sm:$0xff]  }
 0x3b7   :  { %5175 = vmatprep.subr.bf16.mxu0 %v9175_v10  ;;  %5246 = vmatprep.subr.bf16.mxu1 %v9176_v25  ;;  %v8758_v23 = vld [vmem:[%s12653_s5 + $0x90] sm:$0xff]   ;;  %v8759_v10 = vld [vmem:[%s12653_s5 + $0x58] sm:$0xff]  }
 0x3b8   :  { %v8761_v25 = vld [vmem:[%s12653_s5 + $0xd8] sm:$0xff]  }
 0x3ba   :  { %5176 = vmatpush1.bf16.msra.mxu0 %v9177_v40  ;;  %5247 = vmatpush1.bf16.msra.mxu1 %v9178_v15  ;;  %v8765_v40 = vld [vmem:[%s12653_s5 + $0xe0] sm:$0xff]  }
 0x3bb   :  { %7778 = vmatprep.subr.bf16.mxu1 %v8747_v47  ;;  %7756 = vmatprep.subr.bf16.mxu0 %v8749_v61  ;;  %v8760_v47 = vld [vmem:[%s12653_s5 + $0x18] sm:$0xff]   ;;  %v8766_v15 = vld [vmem:[%s12653_s5 + $0xa0] sm:$0xff]  }
 0x3bc   :  { %v8762_v61 = vld [vmem:[%s12653_s5 + $0x98] sm:$0xff]  }
 0x3bd   :  { %5178 = vmatmul.mubr.bf16.vlgmr.msra.gmra.mrb[80].mxu0 %v10206_v4  ;;  %5249 = vmatmul.mubr.bf16.vlgmr.msra.gmra.mrb[80].mxu1 %v10206_v4  ;;  %v8755_v4 = vld [vmem:[%s12653_s5 + $0x50] sm:$0xff]  }
 0x3be   :  { %5187 = vmatprep.mubr.bf16.mxu0 %v10260_v18  ;;  %5258 = vmatprep.mubr.bf16.mxu1 %v10260_v18  ;;  %v8757_v18 = vld [vmem:[%s12653_s5 + $0xd0] sm:$0xff]  }
 0x3bf   :  { %7779 = vmatpush3.bf16.msra.mxu1 %v8748_v5  ;;  %7757 = vmatpush3.bf16.msra.mxu0 %v8750_v36  ;;  %v8770_v5 = vld [vmem:[%s12653_s5 + $0xa8] sm:$0xff]   ;;  %v8771_v36 = vld [vmem:[%s12653_s5 + $0x70] sm:$0xff]  }
 0x3c0   :  { %7780 = vmatprep.subr.bf16.mxu1 %v8751_v8  ;;  %7758 = vmatprep.subr.bf16.mxu0 %v8753_v62  ;;  %v8772_v8 = vld [vmem:[%s12653_s5 + $0x30] sm:$0xff]  }
 0x3c1   :  { %v8773_v62 = vld [vmem:[%s12653_s5 + $0xf0] sm:$0xff]  }
 0x3c3   :  { %7781 = vmatpush3.bf16.msra.mxu1 %v8752_v45  ;;  %7759 = vmatpush3.bf16.msra.mxu0 %v8754_v48  ;;  %v8774_v45 = vld [vmem:[%s12653_s5 + $0xb0] sm:$0xff]   ;;  %v8775_v48 = vld [vmem:[%s12653_s5 + $0x78] sm:$0xff]  }
 0x3c4   :  { %7782 = vmatprep.subr.bf16.mxu1 %v8755_v4  ;;  %7760 = vmatprep.subr.bf16.mxu0 %v8757_v18  ;;  %v8776_v4 = vld [vmem:[%s12653_s5 + $0x38] sm:$0xff]  }
 0x3c5   :  { %5188 = vmatmul.mubr.bf16.gmra.mrb[84].mxu0 %v10255_v43  ;;  %5259 = vmatmul.mubr.bf16.gmra.mrb[84].mxu1 %v10255_v43  ;;  %v8763_v43 = vld [vmem:[%s12653_s5 + $0x60] sm:$0xff]   ;;  %v8777_v18 = vld [vmem:[%s12653_s5 + $0xf8] sm:$0xff]  }
 0x3c6   :  { %5197 = vmatprep.mubr.bf16.mxu0 %v10320_v55  ;;  %5268 = vmatprep.mubr.bf16.mxu1 %v10320_v55  ;;  %v8764_v55 = vld [vmem:[%s12653_s5 + $0x20] sm:$0xff]  }
 0x3c7   :  { %7783 = vmatpush3.bf16.msra.mxu1 %v8756_v24  ;;  %7761 = vmatpush3.bf16.msra.mxu0 %v8758_v23  ;;  %v8778_v24 = vld [vmem:[%s12653_s5 + $0xb8] sm:$0xff]   ;;  %v8779_v23 = vld [vmem:[%s12653_s5 + $0x1c0] sm:$0xff]  }
 0x3c8   :  { %7784 = vmatprep.subr.bf16.mxu1 %v8759_v10  ;;  %7762 = vmatprep.subr.bf16.mxu0 %v8761_v25  ;;  %v8781_v10 = vld [vmem:[%s12653_s5 + $0x140] sm:$0xff]  }
 0x3c9   :  { %v5343_v25 = vld [vmem:[%s12654_s4] sm:$0x3] }
 0x3cb   :  { %7785 = vmatpush3.bf16.msra.mxu1 %v8760_v47  ;;  %7763 = vmatpush3.bf16.msra.mxu0 %v8762_v61 }
 0x3cc   :  { %7786 = vmatprep.subr.bf16.mxu1 %v8763_v43  ;;  %7764 = vmatprep.subr.bf16.mxu0 %v8765_v40 }
 0x3cd   :  { %5198 = vmatmul.mubr.bf16.gmra.mrb[88].mxu0 %v10309_v31  ;;  %5269 = vmatmul.mubr.bf16.gmra.mrb[88].mxu1 %v10309_v31  ;;  %v8767_v31 = vld [vmem:[%s12653_s5 + $0x68] sm:$0xff]  }
 0x3ce   :  { %5207 = vmatprep.mubr.bf16.mxu0 %v11134_v60  ;;  %5278 = vmatprep.mubr.bf16.mxu1 %v11134_v60  ;;  %v8768_v60 = vld [vmem:[%s12653_s5 + $0x28] sm:$0xff]  }
 0x3cf   :  { %7787 = vmatpush3.bf16.msra.mxu1 %v8764_v55  ;;  %7765 = vmatpush3.bf16.msra.mxu0 %v8766_v15  ;;  %v12334_v55 = vrot.slane %v5343_v25, %v9988_v1 }
 0x3d0   :  { %7788 = vmatprep.subr.bf16.mxu1 %v8767_v31 }
 0x3d3   :  { %7789 = vmatpush3.bf16.msra.mxu1 %v8768_v60  ;;  %v12669_v60 = vld [vmem:[#allocation3_spill] sm:$0xff] }
 0x3d4   :  { %7790 = vmatprep.subr.bf16.mxu1 %v8771_v36 }
 0x3d5   :  { %5208 = vmatmul.mubr.bf16.gmra.mrb[92].mxu0 %v11166_v13  ;;  %5279 = vmatmul.mubr.bf16.gmra.mrb[92].mxu1 %v11166_v13  ;;  %v8769_v13 = vld [vmem:[%s12653_s5 + $0xe8] sm:$0xff]  }
 0x3d6   :  { %7766 = vmatprep.subr.bf16.mxu0 %v8769_v13  ;;  %v12337_v13 = vrot.slane %v5343_v25, %v12669_v60 }
 0x3d7   :  { %7767 = vmatpush3.bf16.msra.mxu0 %v8770_v5  ;;  %7791 = vmatpush3.bf16.msra.mxu1 %v8772_v8 }
 0x3d8   :  { %7768 = vmatprep.subr.bf16.mxu0 %v8773_v62  ;;  %7792 = vmatprep.subr.bf16.mxu1 %v8775_v48 }
 0x3db   :  { %7769 = vmatpush3.bf16.msra.mxu0 %v8774_v45  ;;  %7793 = vmatpush3.bf16.msra.mxu1 %v8776_v4 }
 0x3dc   :  { %7770 = vmatprep.subr.bf16.mxu0 %v8777_v18  ;;  %7822 = vmatprep.subr.bf16.mxu1 %v8779_v23 }
 0x3df   :  { %7771 = vmatpush3.bf16.msra.mxu0 %v8778_v24 }
 0x3e0   :  { %7800 = vmatprep.subr.bf16.mxu0 %v8781_v10 }
 0x490   :  { %v5179_v47 = vpop.f32.mrb[80].mxu0  ;;  %v5250_v61 = vpop.f32.mrb[80].mxu1 }
 0x491   :  { %v5315_v43 = vmax.f32 %v5179_v47, %v5250_v61  ;;  %v5181_v40 = vpop.f32.mrb[81].mxu0  ;;  %v5252_v15 = vpop.f32.mrb[81].mxu1 }
 0x492   :  { %v5316_v31 = vmax.f32 %v5181_v40, %v5252_v15  ;;  %v5183_v5 = vpop.f32.mrb[82].mxu0  ;;  %v5254_v36 = vpop.f32.mrb[82].mxu1 }
 0x493   :  { %v5329_v8 = vmax.f32 %v4463_v39, %v5315_v43  ;;  %v5317_v62 = vmax.f32 %v5183_v5, %v5254_v36  ;;  %v5185_v45 = vpop.f32.mrb[83].mxu0  ;;  %v5256_v48 = vpop.f32.mrb[83].mxu1 }
 0x494   :  { %v5330_v1 = vmax.f32 %v4464_v2, %v5316_v31  ;;  %v5318_v4 = vmax.f32 %v5185_v45, %v5256_v48 }
 0x495   :  { %v5355_v18 = vadd.f32 %v12334_v55, %v5329_v8  ;;  %v5331_v24 = vmax.f32 %v4465_v30, %v5317_v62  ;;  %v8780_v8 = vld [vmem:[%s12653_s5 + $0x180] sm:$0xff]  }
 0x496   :  { %v5356_v23 = vadd.f32 %v12337_v13, %v5330_v1  ;;  %v5332_v35 = vmax.f32 %v4466_v32, %v5318_v4 }
 0x497   :  { %v5357_v17 = vadd.f32 %v12334_v55, %v5331_v24  ;;  %v5369_v11 = vmax.f32 %v5355_v18, 0.0 }
 0x498   :  { %v5358_v39 = vadd.f32 %v12337_v13, %v5332_v35  ;;  %v5189_v10 = vpop.f32.mrb[84].mxu0  ;;  %v5260_v58 = vpop.f32.mrb[84].mxu1  ;;  %v5370_v43 = vmax.f32 %v5356_v23, 0.0  ;;  %v8787_v23 = vld [vmem:[%s12653_s5 + $0x1d0] sm:$0xff]  }
 0x499   :  { %v5371_v2 = vmax.f32 %v5357_v17, 0.0  ;;  %v5319_v25 = vmax.f32 %v5189_v10, %v5260_v58  ;;  %v5191_v47 = vpop.f32.mrb[85].mxu0  ;;  %v5262_v61 = vpop.f32.mrb[85].mxu1 }
 0x49a   :  { %v5372_v51 = vmax.f32 %v5358_v39, 0.0  ;;  %v5320_v63 = vmax.f32 %v5191_v47, %v5262_v61  ;;  %v5193_v30 = vpop.f32.mrb[86].mxu0  ;;  %v5264_v40 = vpop.f32.mrb[86].mxu1 }
 0x49b   :  { %v5383_v15 = vpack.c.bf16 %v5371_v2, %v5369_v11  ;;  %v5333_v21 = vmax.f32 %v4467_v7, %v5319_v25  ;;  %v5321_v42 = vmax.f32 %v5193_v30, %v5264_v40  ;;  %v5195_v32 = vpop.f32.mrb[87].mxu0  ;;  %v5266_v31 = vpop.f32.mrb[87].mxu1  ;;  %v8786_v11 = vld [vmem:[%s12653_s5 + $0x108] sm:$0xff]  }
 0x49c   :  { %v5334_v60 = vmax.f32 %v4468_v44, %v5320_v63  ;;  %v5322_v5 = vmax.f32 %v5195_v32, %v5266_v31  ;;  %v5384_v36 = vpack.c.bf16 %v5372_v51, %v5370_v43  ;;  %v8782_v44 = vld [vmem:[%s12653_s5 + $0x100] sm:$0xff]   ;;  %v8789_v51 = vld [vmem:[%s12653_s5 + $0x150] sm:$0xff]  }
 0x49d   :  { %v5359_v62 = vadd.f32 %v12334_v55, %v5333_v21  ;;  %v5335_v26 = vmax.f32 %v4469_v0, %v5321_v42  ;;  %v5458_v45 = vrot.slane %v5383_v15, 4  ;;  %v8790_v21 = vld [vmem:[%s12653_s5 + $0x110] sm:$0xff]  }
 0x49e   :  { %v5360_v7 = vadd.f32 %v12337_v13, %v5334_v60  ;;  %v5336_v27 = vmax.f32 %v4470_v22, %v5322_v5  ;;  %5726 = vmatprep.mubr.bf16.mxu1 %v5384_v36  ;;  %v5459_v53 = vrot.slane %v5384_v36, 4  ;;  %v8795_v36 = vld [vmem:[%s12653_s5 + $0x1e0] sm:$0xff]  }
 0x49f   :  { %v5361_v9 = vadd.f32 %v12334_v55, %v5335_v26  ;;  %5727 = vmatmul.mubr.bf16.vlgmr.msra.gmra.mrb[96].mxu1 %v5383_v15  ;;  %v5373_v22 = vmax.f32 %v5359_v62, 0.0  ;;  %v8791_v15 = vld [vmem:[%s12653_s5 + $0x1d8] sm:$0xff]  }
 0x4a0   :  { %v5362_v0 = vadd.f32 %v12337_v13, %v5336_v27  ;;  %7823 = vmatpush3.bf16.msra.mxu1 %v8780_v8  ;;  %v5199_v48 = vpop.f32.mrb[88].mxu0  ;;  %v5270_v38 = vpop.f32.mrb[88].mxu1  ;;  %5590 = vmatprep.mubr.bf16.mxu0 %v5459_v53  ;;  %v5374_v35 = vmax.f32 %v5360_v7, 0.0  ;;  %v8794_v27 = vld [vmem:[%s12653_s5 + $0x118] sm:$0xff]  }
 0x4a1   :  { %v5375_v1 = vmax.f32 %v5361_v9, 0.0  ;;  %v5323_v4 = vmax.f32 %v5199_v48, %v5270_v38  ;;  %v5201_v18 = vpop.f32.mrb[89].mxu0  ;;  %v5272_v24 = vpop.f32.mrb[89].mxu1  ;;  %5591 = vmatmul.mubr.bf16.vlgmr.msra.gmra.mrb[96].mxu0 %v5458_v45  ;;  %7824 = vmatprep.subr.bf16.mxu1 %v8783_v46  ;;  %v8796_v48 = vld [vmem:[%s12653_s5 + $0x1a0] sm:$0xff]  }
 0x4a2   :  { %v5376_v17 = vmax.f32 %v5362_v0, 0.0  ;;  %v5324_v39 = vmax.f32 %v5201_v18, %v5272_v24  ;;  %7801 = vmatpush3.bf16.msra.mxu0 %v8782_v44  ;;  %v5203_v10 = vpop.f32.mrb[90].mxu0  ;;  %v5274_v58 = vpop.f32.mrb[90].mxu1  ;;  %v8809_v18 = vld [vmem:[%s12653_s5 + $0x178] sm:$0xff]  }
 0x4a3   :  { %v12392_v2 = vpack.c.bf16 %v5375_v1, %v5373_v22  ;;  %v5337_v25 = vmax.f32 %v4471_v3, %v5323_v4  ;;  %v5325_v47 = vmax.f32 %v5203_v10, %v5274_v58  ;;  %v5205_v61 = vpop.f32.mrb[91].mxu0  ;;  %v5276_v43 = vpop.f32.mrb[91].mxu1  ;;  %7802 = vmatprep.subr.bf16.mxu0 %v8785_v19  ;;  %v8797_v19 = vld [vmem:[%s12653_s5 + $0x160] sm:$0xff]   ;;  %v8804_v22 = vld [vmem:[%s12653_s5 + $0x1b0] sm:$0xff]   ;;  %v8807_v1 = vld [vmem:[%s12653_s5 + $0x1f8] sm:$0xff]  }
 0x4a4   :  { %v5338_v63 = vmax.f32 %v4472_v52, %v5324_v39  ;;  %v5326_v30 = vmax.f32 %v5205_v61, %v5276_v43  ;;  %7825 = vmatpush3.bf16.msra.mxu1 %v8784_v29  ;;  %v5386_v40 = vpack.c.bf16 %v5376_v17, %v5374_v35  ;;  %v8805_v29 = vld [vmem:[%s12653_s5 + $0x170] sm:$0xff]   ;;  %v8808_v24 = vld [vmem:[%s12653_s5 + $0x1b8] sm:$0xff]   ;;  %v8813_v17 = vld [vmem:[%s12653_s5 + $0x240] sm:$0xff]  }
 0x4a5   :  { %v5363_v34 = vadd.f32 %v12334_v55, %v5337_v25  ;;  %v5339_v3 = vmax.f32 %v4473_v56, %v5325_v47  ;;  %7826 = vmatprep.subr.bf16.mxu1 %v8787_v23  ;;  %v8806_v4 = vld [vmem:[%s12653_s5 + $0x130] sm:$0xff]   ;;  %v8811_v23 = vld [vmem:[%s12653_s5 + $0x2c0] sm:$0xff]   ;;  %v8810_v35 = vld [vmem:[%s12653_s5 + $0x138] sm:$0xff]   ;;  %v5939_v10 = vrot.slane %v12392_v2, 4 }
 0x4a6   :  { %v5364_v49 = vadd.f32 %v12337_v13, %v5338_v63  ;;  %v5340_v41 = vmax.f32 %v4474_v14, %v5326_v30  ;;  %7803 = vmatpush3.bf16.msra.mxu0 %v8786_v11  ;;  %5895 = vmatprep.mubr.bf16.mxu0 %v5386_v40  ;;  %v5940_v52 = vrot.slane %v5386_v40, 4  ;;  %v8812_v39 = vld [vmem:[%s12653_s5 + $0x280] sm:$0xff]   ;;  %v8815_v58 = vld [vmem:[%s12653_s5 + $0x2c8] sm:$0xff]   ;;  %v8819_v43 = vld [vmem:[%s12653_s5 + $0x2d0] sm:$0xff]  }
 0x4a7   :  { %v5365_v6 = vadd.f32 %v12334_v55, %v5339_v3  ;;  %7804 = vmatprep.subr.bf16.mxu0 %v8789_v51  ;;  %v5377_v14 = vmax.f32 %v5363_v34, 0.0  ;;  %v8814_v25 = vld [vmem:[%s12653_s5 + $0x200] sm:$0xff]   ;;  %v8817_v47 = vld [vmem:[%s12653_s5 + $0x248] sm:$0xff]   ;;  %v8821_v63 = vld [vmem:[%s12653_s5 + $0x250] sm:$0xff]  }
 0x4a8   :  { %v5366_v56 = vadd.f32 %v12337_v13, %v5340_v41  ;;  %7827 = vmatpush3.bf16.msra.mxu1 %v8788_v20  ;;  %v5209_v42 = vpop.f32.mrb[92].mxu0  ;;  %v5280_v28 = vpop.f32.mrb[92].mxu1  ;;  %6071 = vmatprep.mubr.bf16.mxu1 %v5940_v52  ;;  %v5378_v8 = vmax.f32 %v5364_v49, 0.0  ;;  %v8816_v61 = vld [vmem:[%s12653_s5 + $0x288] sm:$0xff]   ;;  %v8823_v30 = vld [vmem:[%s12653_s5 + $0x2d8] sm:$0xff]   ;;  %v8822_v40 = vld [vmem:[%s12653_s5 + $0x210] sm:$0xff]  }
 0x4a9   :  { %v5379_v32 = vmax.f32 %v5365_v6, 0.0  ;;  %v5327_v31 = vmax.f32 %v5209_v42, %v5280_v28  ;;  %v5211_v60 = vpop.f32.mrb[93].mxu0  ;;  %v5282_v5 = vpop.f32.mrb[93].mxu1  ;;  %7828 = vmatprep.subr.bf16.mxu1 %v8791_v15  ;;  %v8818_v51 = vld [vmem:[%s12653_s5 + $0x208] sm:$0xff]   ;;  %v8825_v20 = vld [vmem:[%s12653_s5 + $0x258] sm:$0xff]   ;;  %v8827_v3 = vld [vmem:[%s12653_s5 + $0x2e0] sm:$0xff]  }
 0x4aa   :  { %v5380_v62 = vmax.f32 %v5366_v56, 0.0  ;;  %v5328_v26 = vmax.f32 %v5211_v60, %v5282_v5  ;;  %7805 = vmatpush3.bf16.msra.mxu0 %v8790_v21  ;;  %v5213_v46 = vpop.f32.mrb[94].mxu0  ;;  %v5284_v7 = vpop.f32.mrb[94].mxu1  ;;  %v8824_v34 = vld [vmem:[%s12653_s5 + $0x298] sm:$0xff]   ;;  %v8829_v49 = vld [vmem:[%s12653_s5 + $0x260] sm:$0xff]   ;;  %v8831_v52 = vld [vmem:[%s12653_s5 + $0x2e8] sm:$0xff]  }
 0x4ab   :  { %v12434_v53 = vpack.c.bf16 %v5379_v32, %v5377_v14  ;;  %v5341_v44 = vmax.f32 %v4475_v37, %v5327_v31  ;;  %v5214_v45 = vpop.f32.mrb[95].mxu0  ;;  %v5285_v9 = vpop.f32.mrb[95].mxu1  ;;  %7806 = vmatprep.subr.bf16.mxu0 %v8793_v57  ;;  %v8826_v15 = vld [vmem:[%s12653_s5 + $0x218] sm:$0xff]   ;;  %v8828_v41 = vld [vmem:[%s12653_s5 + $0x2a0] sm:$0xff]   ;;  %v8833_v6 = vld [vmem:[%s12653_s5 + $0x268] sm:$0xff]  }
 0x4ac   :  { %v5342_v0 = vmax.f32 %v4476_v50, %v5328_v26  ;;  %7829 = vmatpush3.bf16.msra.mxu1 %v8792_v54  ;;  %v5388_v38 = vpack.c.bf16 %v5380_v62, %v5378_v8  ;;  %v8800_v50 = vld [vmem:[%s12653_s5 + $0x1a8] sm:$0xff]   ;;  %v8830_v21 = vld [vmem:[%s12653_s5 + $0x220] sm:$0xff]   ;;  %v8835_v56 = vld [vmem:[%s12653_s5 + $0x2f0] sm:$0xff]  }
 0x4ad   :  { %v12449_v12 = vadd.f32 %v12334_v55, %v5341_v44  ;;  %7830 = vmatprep.subr.bf16.mxu1 %v8795_v36  ;;  %v8803_v55 = vld [vmem:[%s12653_s5 + $0x1f0] sm:$0xff]   ;;  %v8832_v57 = vld [vmem:[%s12653_s5 + $0x2a8] sm:$0xff]   ;;  %v8839_v14 = vld [vmem:[%s12653_s5 + $0x2f8] sm:$0xff]   ;;  %v6285_v62 = vrot.slane %v12434_v53, 4 }
 0x4ae   :  { %v12455_v37 = vadd.f32 %v12337_v13, %v5342_v0  ;;  %7807 = vmatpush3.bf16.msra.mxu0 %v8794_v27  ;;  %v8802_v13 = vld [vmem:[%s12653_s5 + $0x128] sm:$0xff]   ;;  %v6286_v11 = vrot.slane %v5388_v38, 4  ;;  %v8837_v28 = vld [vmem:[%s12653_s5 + $0x270] sm:$0xff]   ;;  %v8841_v31 = vld [vmem:[%s12653_s5 + $0x278] sm:$0xff]  }
 0x4af   :  { %7808 = vmatprep.subr.bf16.mxu0 %v8797_v19  ;;  %v8834_v42 = vld [vmem:[%s12653_s5 + $0x228] sm:$0xff]   ;;  %v8836_v54 = vld [vmem:[%s12653_s5 + $0x2b0] sm:$0xff]   ;;  %v8840_v60 = vld [vmem:[%s12653_s5 + $0x2b8] sm:$0xff]  }
 0x4b0   :  { %7831 = vmatpush3.bf16.msra.mxu1 %v8796_v48  ;;  %v8838_v32 = vld [vmem:[%s12653_s5 + $0x230] sm:$0xff]   ;;  %v8842_v5 = vld [vmem:[%s12653_s5 + $0x238] sm:$0xff]   ;;  %v8843_v36 = vld [vmem:[%s12653_s5 + $0x340] sm:$0xff]   ;;  %v5382_v8 = vmax.f32 %v12455_v37, 0.0 }
 0x4b1   :  { %7832 = vmatprep.subr.bf16.mxu1 %v8799_v59  ;;  %v8844_v26 = vld [vmem:[%s12653_s5 + $0x300] sm:$0xff]   ;;  %v8845_v46 = vld [vmem:[%s12653_s5 + $0x348] sm:$0xff]   ;;  %v8847_v44 = vld [vmem:[%s12653_s5 + $0x350] sm:$0xff]  }
 0x4b2   :  { %7809 = vmatpush3.bf16.msra.mxu0 %v8798_v33  ;;  %v5390_v7 = vpack.c.bf16 %v5382_v8, %v5382_v8  ;;  %v8846_v27 = vld [vmem:[%s12653_s5 + $0x308] sm:$0xff]   ;;  %v8848_v45 = vld [vmem:[%s12653_s5 + $0x310] sm:$0xff]   ;;  %v8850_v9 = vld [vmem:[%s12653_s5 + $0x318] sm:$0xff]  }
 0x4b3   :  { %7810 = vmatprep.subr.bf16.mxu0 %v8801_v16  ;;  %v8851_v19 = vld [vmem:[%s12653_s5 + $0x360] sm:$0xff]   ;;  %v8853_v48 = vld [vmem:[%s12653_s5 + $0x368] sm:$0xff]   ;;  %v8855_v59 = vld [vmem:[%s12653_s5 + $0x370] sm:$0xff]  }
 0x4b4   :  { %7833 = vmatpush3.bf16.msra.mxu1 %v8800_v50  ;;  %v8852_v0 = vld [vmem:[%s12653_s5 + $0x320] sm:$0xff]   ;;  %v8856_v37 = vld [vmem:[%s12653_s5 + $0x330] sm:$0xff]   ;;  %v8857_v33 = vld [vmem:[%s12653_s5 + $0x378] sm:$0xff]   ;;  %v5381_v50 = vmax.f32 %v12449_v12, 0.0 }
 0x4b5   :  { %7834 = vmatprep.subr.bf16.mxu1 %v8803_v55  ;;  %v8858_v16 = vld [vmem:[%s12653_s5 + $0x338] sm:$0xff]  }
 0x4b6   :  { %7811 = vmatpush3.bf16.msra.mxu0 %v8802_v13  ;;  %v5389_v55 = vpack.c.bf16 %v5381_v50, %v5381_v50 }
 0x4b7   :  { %7812 = vmatprep.subr.bf16.mxu0 %v8805_v29 }
 0x4b8   :  { %7835 = vmatpush3.bf16.msra.mxu1 %v8804_v22 }
 0x4b9   :  { %7836 = vmatprep.subr.bf16.mxu1 %v8807_v1 }
 0x4ba   :  { %7813 = vmatpush3.bf16.msra.mxu0 %v8806_v4 }
 0x4bb   :  { %7814 = vmatprep.subr.bf16.mxu0 %v8809_v18 }
 0x4bc   :  { %7837 = vmatpush3.bf16.msra.mxu1 %v8808_v24 }
 0x4bd   :  { %7866 = vmatprep.subr.bf16.mxu1 %v8811_v23 }
 0x4be   :  { %7815 = vmatpush3.bf16.msra.mxu0 %v8810_v35 }
 0x4bf   :  { %6072 = vmatmul.mubr.bf16.vlgmr.msra.gmra.mrb[100].mxu1 %v5939_v10  ;;  %7844 = vmatprep.subr.bf16.mxu0 %v8813_v17 }
 0x4c0   :  { %7867 = vmatpush3.bf16.msra.mxu1 %v8812_v39  ;;  %6417 = vmatprep.mubr.bf16.mxu1 %v6286_v11 }
 0x4c1   :  { %5896 = vmatmul.mubr.bf16.vlgmr.msra.gmra.mrb[100].mxu0 %v12392_v2  ;;  %7868 = vmatprep.subr.bf16.mxu1 %v8815_v58  ;;  %v8820_v2 = vld [vmem:[%s12653_s5 + $0x290] sm:$0xff]  }
 0x4c2   :  { %7845 = vmatpush3.bf16.msra.mxu0 %v8814_v25  ;;  %6241 = vmatprep.mubr.bf16.mxu0 %v5388_v38  ;;  %v8854_v38 = vld [vmem:[%s12653_s5 + $0x328] sm:$0xff]  }
 0x4c3   :  { %7846 = vmatprep.subr.bf16.mxu0 %v8817_v47 }
 0x4c4   :  { %7869 = vmatpush3.bf16.msra.mxu1 %v8816_v61 }
 0x4c5   :  { %7870 = vmatprep.subr.bf16.mxu1 %v8819_v43 }
 0x4c6   :  { %7847 = vmatpush3.bf16.msra.mxu0 %v8818_v51 }
 0x4c7   :  { %7848 = vmatprep.subr.bf16.mxu0 %v8821_v63 }
 0x4c8   :  { %7871 = vmatpush3.bf16.msra.mxu1 %v8820_v2 }
 0x4c9   :  { %7872 = vmatprep.subr.bf16.mxu1 %v8823_v30 }
 0x4ca   :  { %7849 = vmatpush3.bf16.msra.mxu0 %v8822_v40 }
 0x4cb   :  { %7850 = vmatprep.subr.bf16.mxu0 %v8825_v20 }
 0x4cc   :  { %7873 = vmatpush3.bf16.msra.mxu1 %v8824_v34 }
 0x4cd   :  { %7874 = vmatprep.subr.bf16.mxu1 %v8827_v3 }
 0x4ce   :  { %7851 = vmatpush3.bf16.msra.mxu0 %v8826_v15 }
 0x4cf   :  { %7852 = vmatprep.subr.bf16.mxu0 %v8829_v49 }
 0x4d0   :  { %7875 = vmatpush3.bf16.msra.mxu1 %v8828_v41 }
 0x4d1   :  { %7876 = vmatprep.subr.bf16.mxu1 %v8831_v52 }
 0x4d2   :  { %7853 = vmatpush3.bf16.msra.mxu0 %v8830_v21 }
 0x4d3   :  { %7854 = vmatprep.subr.bf16.mxu0 %v8833_v6 }
 0x4d4   :  { %7877 = vmatpush3.bf16.msra.mxu1 %v8832_v57 }
 0x4d5   :  { %7878 = vmatprep.subr.bf16.mxu1 %v8835_v56 }
 0x4d6   :  { %7855 = vmatpush3.bf16.msra.mxu0 %v8834_v42 }
 0x4d7   :  { %7856 = vmatprep.subr.bf16.mxu0 %v8837_v28 }
 0x4d8   :  { %7879 = vmatpush3.bf16.msra.mxu1 %v8836_v54 }
 0x4d9   :  { %7880 = vmatprep.subr.bf16.mxu1 %v8839_v14 }
 0x4da   :  { %7857 = vmatpush3.bf16.msra.mxu0 %v8838_v32  ;;  %v7709_v32 = vld [vmem:[%s12655_s6] ss:$0 sm:$0xff] }
 0x4db   :  { %7858 = vmatprep.subr.bf16.mxu0 %v8841_v31 }
 0x4dc   :  { %7881 = vmatpush3.bf16.msra.mxu1 %v8840_v60 }
 0x4de   :  { %7859 = vmatpush3.bf16.msra.mxu0 %v8842_v5 }
 0x4df   :  { %6418 = vmatmul.mubr.bf16.vlgmr.msra.gmra.mrb[104].mxu1 %v6285_v62  ;;  %7888 = vmatprep.subr.bf16.mxu0 %v8843_v36 }
 0x4e1   :  { %6242 = vmatmul.mubr.bf16.vlgmr.msra.gmra.mrb[104].mxu0 %v12434_v53  ;;  %v8849_v53 = vld [vmem:[%s12653_s5 + $0x358] sm:$0xff]  }
 0x4e2   :  { %7889 = vmatpush3.bf16.msra.mxu0 %v8844_v26  ;;  %6587 = vmatprep.mubr.bf16.mxu0 %v5390_v7 }
 0x4e3   :  { %7890 = vmatprep.subr.bf16.mxu0 %v8845_v46 }
 0x4e6   :  { %7891 = vmatpush3.bf16.msra.mxu0 %v8846_v27 }
 0x4e7   :  { %7892 = vmatprep.subr.bf16.mxu0 %v8847_v44 }
 0x4ea   :  { %7893 = vmatpush3.bf16.msra.mxu0 %v8848_v45 }
 0x4eb   :  { %7894 = vmatprep.subr.bf16.mxu0 %v8849_v53 }
 0x4ee   :  { %7895 = vmatpush3.bf16.msra.mxu0 %v8850_v9 }
 0x4ef   :  { %7896 = vmatprep.subr.bf16.mxu0 %v8851_v19 }
 0x4f2   :  { %7897 = vmatpush3.bf16.msra.mxu0 %v8852_v0 }
 0x4f3   :  { %7898 = vmatprep.subr.bf16.mxu0 %v8853_v48 }
 0x4f6   :  { %7899 = vmatpush3.bf16.msra.mxu0 %v8854_v38 }
 0x4f7   :  { %7900 = vmatprep.subr.bf16.mxu0 %v8855_v59 }
 0x4fa   :  { %7901 = vmatpush3.bf16.msra.mxu0 %v8856_v37 }
 0x4fb   :  { %7902 = vmatprep.subr.bf16.mxu0 %v8857_v33 }
 0x4fe   :  { %7903 = vmatpush3.bf16.msra.mxu0 %v8858_v16 }
 0x501   :  { %6588 = vmatmul.mubr.bf16.vlgmr.msra.gmra.mrb[108].mxu0 %v5389_v55 }
 0x572   :  { %v7794_v13 = vpop.f32.mrb[96].mxu1 }
 0x573   :  { %v7795_v29 = vpop.f32.mrb[97].mxu1 }
 0x574   :  { %v7796_v22 = vadd.f32 %v7795_v29, %v7794_v13  ;;  %v7772_v1 = vpop.f32.mrb[96].mxu0  ;;  %v7797_v4 = vpop.f32.mrb[98].mxu1 }
 0x575   :  { %v7773_v18 = vpop.f32.mrb[97].mxu0  ;;  %v7798_v24 = vpop.f32.mrb[99].mxu1 }
 0x576   :  { %v7774_v23 = vadd.f32 %v7773_v18, %v7772_v1  ;;  %v7775_v35 = vpop.f32.mrb[98].mxu0 }
 0x577   :  { %v7776_v17 = vpop.f32.mrb[99].mxu0 }
 0x578   :  { %v5729_v39 = vadd.f32 %v7796_v22, %v7774_v23 }
 0x592   :  { %v7838_v10 = vpop.f32.mrb[100].mxu1 }
 0x593   :  { %v7839_v58 = vpop.f32.mrb[101].mxu1 }
 0x594   :  { %v7840_v11 = vadd.f32 %v7839_v58, %v7838_v10  ;;  %v7816_v25 = vpop.f32.mrb[100].mxu0  ;;  %v7841_v12 = vpop.f32.mrb[102].mxu1 }
 0x595   :  { %v7817_v47 = vpop.f32.mrb[101].mxu0  ;;  %v7842_v61 = vpop.f32.mrb[103].mxu1 }
 0x596   :  { %v7818_v43 = vadd.f32 %v7817_v47, %v7816_v25  ;;  %v7819_v51 = vpop.f32.mrb[102].mxu0 }
 0x597   :  { %v7820_v63 = vpop.f32.mrb[103].mxu0 }
 0x598   :  { %v5903_v2 = vadd.f32 %v7818_v43, %v5729_v39 }
 0x59a   :  { %v6079_v30 = vadd.f32 %v7840_v11, %v5903_v2 }
 0x5b2   :  { %v7882_v40 = vpop.f32.mrb[104].mxu1 }
 0x5b3   :  { %v7883_v20 = vpop.f32.mrb[105].mxu1 }
 0x5b4   :  { %v7884_v34 = vadd.f32 %v7883_v20, %v7882_v40  ;;  %v7860_v3 = vpop.f32.mrb[104].mxu0  ;;  %v7885_v15 = vpop.f32.mrb[106].mxu1 }
 0x5b5   :  { %v7861_v49 = vpop.f32.mrb[105].mxu0  ;;  %v7886_v41 = vpop.f32.mrb[107].mxu1 }
 0x5b6   :  { %v7862_v52 = vadd.f32 %v7861_v49, %v7860_v3  ;;  %v7863_v21 = vpop.f32.mrb[106].mxu0 }
 0x5b7   :  { %v7864_v6 = vpop.f32.mrb[107].mxu0 }
 0x5b8   :  { %v6249_v57 = vadd.f32 %v7862_v52, %v6079_v30 }
 0x5ba   :  { %v6425_v56 = vadd.f32 %v7884_v34, %v6249_v57 }
 0x5d4   :  { %v7904_v42 = vpop.f32.mrb[108].mxu0 }
 0x5d5   :  { %v7905_v28 = vpop.f32.mrb[109].mxu0 }
 0x5d6   :  { %v7906_v54 = vadd.f32 %v7905_v28, %v7904_v42  ;;  %v7907_v14 = vpop.f32.mrb[110].mxu0 }
 0x5d7   :  { %v7908_v31 = vpop.f32.mrb[111].mxu0 }
 0x5d8   :  { %v6595_v60 = vadd.f32 %v7906_v54, %v6425_v56 }
 0x5da   :  { %v6603_v5 = vadd.f32 %v7709_v32, %v6595_v60 }
 0x5dc   :  { %6604 = vst [vmem:[%s12656_s7] sm:$0xff] %v6603_v5 }

</bundles_post_ra>
